<compile_context>
chip_gen: v7x
topology: tpu7x:2x2x1
jax: 0.10.0
libtpu: 0.0.40
codegen_flags: <defaults>
</compile_context>

<pallas_src>
import functools
import math

import jax
import jax.numpy as jnp
from jax import lax
from jax.experimental import pallas as pl
from jax.experimental.pallas import tpu as pltpu

NEG_INF = -1e9
LN_EPS = 1e-5
ROW_BLOCK = 256  # M-tile cap for row-wise kernels


def _bm(M):
    return M if M <= ROW_BLOCK else ROW_BLOCK


def _layernorm(z, g, b):
    mu = jnp.mean(z, axis=-1, keepdims=True)
    var = jnp.mean(jnp.square(z - mu), axis=-1, keepdims=True)
    return (z - mu) * lax.rsqrt(var + LN_EPS) * g + b


# ------------------------------------------------------------------ kernels

def linear_kernel(x_ref, w_ref, b_ref, o_ref):
    acc = jnp.dot(x_ref[...].astype(jnp.bfloat16),
                  w_ref[...].astype(jnp.bfloat16),
                  preferred_element_type=jnp.float32)
    o_ref[...] = (acc + b_ref[...]).astype(o_ref.dtype)


def linear(x, w, b):
    M, K = x.shape
    N = w.shape[1]
    bm = _bm(M)
    return pl.pallas_call(
        linear_kernel,
        out_shape=jax.ShapeDtypeStruct((M, N), x.dtype),
        grid=(pl.cdiv(M, bm),),
        in_specs=[
            pl.BlockSpec((bm, K), lambda i: (i, 0)),
            pl.BlockSpec((K, N), lambda i: (0, 0)),
            pl.BlockSpec((1, N), lambda i: (0, 0)),
        ],
        out_specs=pl.BlockSpec((bm, N), lambda i: (i, 0)),
        compiler_params=pltpu.CompilerParams(dimension_semantics=("parallel",)),
    )(x, w, b.reshape(1, N))


def proj_add_ln_kernel(x_ref, w_ref, b_ref, res_ref, g_ref, bt_ref, o_ref):
    # y = x @ W + b ; z = y + residual ; out = LayerNorm(z) * g + beta
    y = jnp.dot(x_ref[...].astype(jnp.bfloat16),
                w_ref[...].astype(jnp.bfloat16),
                preferred_element_type=jnp.float32) + b_ref[...]
    z = y + res_ref[...].astype(jnp.float32)
    o_ref[...] = _layernorm(z, g_ref[...], bt_ref[...]).astype(o_ref.dtype)


def proj_add_ln(x, w, b, res, gamma, beta):
    M, K = x.shape
    N = w.shape[1]
    bm = _bm(M)
    return pl.pallas_call(
        proj_add_ln_kernel,
        out_shape=jax.ShapeDtypeStruct((M, N), res.dtype),
        grid=(pl.cdiv(M, bm),),
        in_specs=[
            pl.BlockSpec((bm, K), lambda i: (i, 0)),
            pl.BlockSpec((K, N), lambda i: (0, 0)),
            pl.BlockSpec((1, N), lambda i: (0, 0)),
            pl.BlockSpec((bm, N), lambda i: (i, 0)),
            pl.BlockSpec((1, N), lambda i: (0, 0)),
            pl.BlockSpec((1, N), lambda i: (0, 0)),
        ],
        out_specs=pl.BlockSpec((bm, N), lambda i: (i, 0)),
        compiler_params=pltpu.CompilerParams(dimension_semantics=("parallel",)),
    )(x, w, b.reshape(1, N), res, gamma.reshape(1, N), beta.reshape(1, N))


def ffn_add_ln_kernel(x_ref, w1_ref, b1_ref, w2_ref, b2_ref, g_ref, bt_ref, o_ref):
    x = x_ref[...].astype(jnp.float32)
    h = jnp.dot(x.astype(jnp.bfloat16), w1_ref[...].astype(jnp.bfloat16),
                preferred_element_type=jnp.float32) + b1_ref[...]
    # TODO(synk): PyTorch nn.GELU defaults to the exact erf form; tanh approx used here.
    h = jax.nn.gelu(h, approximate=True)
    y = jnp.dot(h.astype(jnp.bfloat16), w2_ref[...].astype(jnp.bfloat16),
                preferred_element_type=jnp.float32) + b2_ref[...]
    z = y + x  # residual
    o_ref[...] = _layernorm(z, g_ref[...], bt_ref[...]).astype(o_ref.dtype)


def ffn_add_ln(x, w1, b1, w2, b2, gamma, beta):
    M, D = x.shape
    F = w1.shape[1]
    bm = _bm(M)
    # TODO(synk): for large dim_feedforward / v7x's 64 MiB VMEM, tile the F axis
    # with a reduction grid axis instead of whole-weight blocks.
    return pl.pallas_call(
        ffn_add_ln_kernel,
        out_shape=jax.ShapeDtypeStruct((M, D), x.dtype),
        grid=(pl.cdiv(M, bm),),
        in_specs=[
            pl.BlockSpec((bm, D), lambda i: (i, 0)),
            pl.BlockSpec((D, F), lambda i: (0, 0)),
            pl.BlockSpec((1, F), lambda i: (0, 0)),
            pl.BlockSpec((F, D), lambda i: (0, 0)),
            pl.BlockSpec((1, D), lambda i: (0, 0)),
            pl.BlockSpec((1, D), lambda i: (0, 0)),
            pl.BlockSpec((1, D), lambda i: (0, 0)),
        ],
        out_specs=pl.BlockSpec((bm, D), lambda i: (i, 0)),
        compiler_params=pltpu.CompilerParams(dimension_semantics=("parallel",)),
    )(x, w1, b1.reshape(1, F), w2, b2.reshape(1, D),
      gamma.reshape(1, D), beta.reshape(1, D))


# ------------------------------------------------------ attention kernels

def _mha_core(q, k, v, key_mask, o_ref, *, num_heads, scale, causal):
    """q:(Sq,D) f32, k/v:(Sk,D) f32, key_mask:(1,Sk) f32 (1=real, 0=pad)."""
    Sq, D = q.shape
    Sk = k.shape[0]
    Dh = D // num_heads
    neg = jnp.float32(NEG_INF)

    bias = (1.0 - key_mask) * neg                      # (1, Sk), f32
    if causal:
        row = lax.broadcasted_iota(jnp.int32, (Sq, Sk), 0)
        col = lax.broadcasted_iota(jnp.int32, (Sq, Sk), 1)
        bias = bias + jnp.where(col > row, neg, jnp.float32(0.0))  # (Sq, Sk)

    q = q * jnp.float32(scale)
    outs = []
    for h in range(num_heads):                         # static unroll
        sl = slice(h * Dh, (h + 1) * Dh)
        qh = q[:, sl].astype(jnp.bfloat16)
        kh = k[:, sl].astype(jnp.bfloat16)
        vh = v[:, sl].astype(jnp.bfloat16)
        s = lax.dot_general(qh, kh, (((1,), (1,)), ((), ())),
                            preferred_element_type=jnp.float32)    # (Sq, Sk)
        s = s + bias
        s = s - jnp.max(s, axis=-1, keepdims=True)
        p = jnp.exp(s)
        p = p * pl.reciprocal(jnp.sum(p, axis=-1, keepdims=True), approx=True)
        outs.append(jnp.dot(p.astype(jnp.bfloat16), vh,
                            preferred_element_type=jnp.float32))   # (Sq, Dh)
    o = jnp.concatenate(outs, axis=-1)                 # (Sq, D) lane-dense
    o_ref[0] = o.astype(o_ref.dtype)


def self_attn_kernel(qkv_ref, mask_ref, o_ref, *, num_heads, scale, causal):
    D = o_ref.shape[-1]
    x = qkv_ref[0].astype(jnp.float32)                 # (S, 3D)
    q = x[:, 0:D]
    k = x[:, D:2 * D]
    v = x[:, 2 * D:3 * D]
    _mha_core(q, k, v, mask_ref[0].astype(jnp.float32), o_ref,
              num_heads=num_heads, scale=scale, causal=causal)


def cross_attn_kernel(q_ref, kv_ref, mask_ref, o_ref, *, num_heads, scale):
    D = o_ref.shape[-1]
    q = q_ref[0].astype(jnp.float32)                   # (Sq, D)
    kv = kv_ref[0].astype(jnp.float32)                 # (Sk, 2D)
    k = kv[:, 0:D]
    v = kv[:, D:2 * D]
    _mha_core(q, k, v, mask_ref[0].astype(jnp.float32), o_ref,
              num_heads=num_heads, scale=scale, causal=False)


def self_attention(qkv, key_mask, *, num_heads, causal):
    B, S, D3 = qkv.shape
    D = D3 // 3
    scale = 1.0 / math.sqrt(D // num_heads)
    kern = functools.partial(self_attn_kernel, num_heads=num_heads,
                             scale=scale, causal=causal)
    return pl.pallas_call(
        kern,
        out_shape=jax.ShapeDtypeStruct((B, S, D), jnp.float32),
        grid=(B,),
        in_specs=[
            pl.BlockSpec((1, S, D3), lambda b: (b, 0, 0)),
            pl.BlockSpec((1, 1, S), lambda b: (b, 0, 0)),
        ],
        out_specs=pl.BlockSpec((1, S, D), lambda b: (b, 0, 0)),
        compiler_params=pltpu.CompilerParams(dimension_semantics=("parallel",)),
    )(qkv, key_mask)


def cross_attention(q, kv, key_mask, *, num_heads):
    B, Sq, D = q.shape
    Sk = kv.shape[1]
    scale = 1.0 / math.sqrt(D // num_heads)
    kern = functools.partial(cross_attn_kernel, num_heads=num_heads, scale=scale)
    return pl.pallas_call(
        kern,
        out_shape=jax.ShapeDtypeStruct((B, Sq, D), jnp.float32),
        grid=(B,),
        in_specs=[
            pl.BlockSpec((1, Sq, D), lambda b: (b, 0, 0)),
            pl.BlockSpec((1, Sk, 2 * D), lambda b: (b, 0, 0)),
            pl.BlockSpec((1, 1, Sk), lambda b: (b, 0, 0)),
        ],
        out_specs=pl.BlockSpec((1, Sq, D), lambda b: (b, 0, 0)),
        compiler_params=pltpu.CompilerParams(dimension_semantics=("parallel",)),
    )(q, kv, key_mask)


# ------------------------------------------------------------- model pieces

def data_embedding(ids, tok_emb, pos_emb):
    B, S = ids.shape
    x = jnp.take(tok_emb, ids, axis=0)                 # (B, S, D)
    return x + pos_emb[:S][None, :, :]                 # dropout: identity (eval)


def encoder_layer(x, p, key_mask, num_heads):
    B, S, D = x.shape
    x2 = x.reshape(B * S, D)
    qkv = linear(x2, p["attn"]["wqkv"], p["attn"]["bqkv"]).reshape(B, S, 3 * D)
    a = self_attention(qkv, key_mask, num_heads=num_heads, causal=False)
    x2 = proj_add_ln(a.reshape(B * S, D), p["attn"]["wo"], p["attn"]["bo"],
                     x2, p["ln1_g"], p["ln1_b"])
    x2 = ffn_add_ln(x2, p["w1"], p["b1"], p["w2"], p["b2"], p["ln2_g"], p["ln2_b"])
    return x2.reshape(B, S, D)


def decoder_layer(x, enc, p, dec_key_mask, enc_key_mask, num_heads):
    B, S, D = x.shape
    Se = enc.shape[1]
    x2 = x.reshape(B * S, D)

    # masked (causal) self-attention
    qkv = linear(x2, p["self_attn"]["wqkv"], p["self_attn"]["bqkv"]).reshape(B, S, 3 * D)
    a = self_attention(qkv, dec_key_mask, num_heads=num_heads, causal=True)
    x2 = proj_add_ln(a.reshape(B * S, D), p["self_attn"]["wo"], p["self_attn"]["bo"],
                     x2, p["ln1_g"], p["ln1_b"])

    # cross-attention over the encoder output
    q = linear(x2, p["cross_attn"]["wq"], p["cross_attn"]["bq"]).reshape(B, S, D)
    kv = linear(enc.reshape(B * Se, D), p["cross_attn"]["wkv"],
                p["cross_attn"]["bkv"]).reshape(B, Se, 2 * D)
    c = cross_attention(q, kv, enc_key_mask, num_heads=num_heads)
    x2 = proj_add_ln(c.reshape(B * S, D), p["cross_attn"]["wo"], p["cross_attn"]["bo"],
                     x2, p["ln2_g"], p["ln2_b"])

    # feed-forward
    x2 = ffn_add_ln(x2, p["w1"], p["b1"], p["w2"], p["b2"], p["ln3_g"], p["ln3_b"])
    return x2.reshape(B, S, D)


def stack_forward(params, cfg, enc_ids, dec_ids, enc_padding_mask, dec_padding_mask):
    """Replicates Stack.forward(use_cache=False, enc_encoding=None).

    padding masks: (B, S) float/int, 1 = real token, 0 = pad."""
    H = cfg["num_heads"]
    D = cfg["d_model"]
    B, Se = enc_ids.shape
    _, Sd = dec_ids.shape

    enc_key_mask = enc_padding_mask.astype(jnp.float32).reshape(B, 1, Se)
    dec_key_mask = dec_padding_mask.astype(jnp.float32).reshape(B, 1, Sd)

    # encode
    x = data_embedding(enc_ids, params["enc_tok_emb"], params["enc_pos_emb"])
    for lp in params["enc_layers"]:
        x = encoder_layer(x, lp, enc_key_mask, H)
    enc_out = x

    # decode
    y = data_embedding(dec_ids, params["dec_tok_emb"], params["dec_pos_emb"])
    for lp in params["dec_layers"]:
        y = decoder_layer(y, enc_out, lp, dec_key_mask, enc_key_mask, H)

    # final projection (vocab padded to 128-lane multiple; slice back)
    V = cfg["dec_vocab_size"]
    logits = linear(y.reshape(B * Sd, D), params["w_out_p"], params["b_out_p"])
    logits = logits.reshape(B, Sd, -1)[:, :, :V]
    return logits


# ---------------------------------------------------------------- init

def init_params(key, cfg):
    D = cfg["d_model"]
    F = cfg["dim_feedforward"]
    V = cfg["dec_vocab_size"]
    Vp = ((V + 127) // 128) * 128
    std = 0.02
    ks = iter(jax.random.split(key, 512))

    def w(shape):
        return jax.random.normal(next(ks), shape, jnp.float32) * std

    def self_attn_params():
        return {"wqkv": w((D, 3 * D)), "bqkv": jnp.zeros((3 * D,), jnp.float32),
                "wo": w((D, D)), "bo": jnp.zeros((D,), jnp.float32)}

    def cross_attn_params():
        return {"wq": w((D, D)), "bq": jnp.zeros((D,), jnp.float32),
                "wkv": w((D, 2 * D)), "bkv": jnp.zeros((2 * D,), jnp.float32),
                "wo": w((D, D)), "bo": jnp.zeros((D,), jnp.float32)}

    def enc_layer_params():
        return {"attn": self_attn_params(),
                "ln1_g": jnp.ones((D,), jnp.float32), "ln1_b": jnp.zeros((D,), jnp.float32),
                "w1": w((D, F)), "b1": jnp.zeros((F,), jnp.float32),
                "w2": w((F, D)), "b2": jnp.zeros((D,), jnp.float32),
                "ln2_g": jnp.ones((D,), jnp.float32), "ln2_b": jnp.zeros((D,), jnp.float32)}

    def dec_layer_params():
        return {"self_attn": self_attn_params(), "cross_attn": cross_attn_params(),
                "ln1_g": jnp.ones((D,), jnp.float32), "ln1_b": jnp.zeros((D,), jnp.float32),
                "ln2_g": jnp.ones((D,), jnp.float32), "ln2_b": jnp.zeros((D,), jnp.float32),
                "w1": w((D, F)), "b1": jnp.zeros((F,), jnp.float32),
                "w2": w((F, D)), "b2": jnp.zeros((D,), jnp.float32),
                "ln3_g": jnp.ones((D,), jnp.float32), "ln3_b": jnp.zeros((D,), jnp.float32)}

    w_out = w((D, V))
    return {
        "enc_tok_emb": w((cfg["enc_vocab_size"], D)),
        "enc_pos_emb": w((cfg["max_seq_len"], D)),
        "dec_tok_emb": w((cfg["dec_vocab_size"], D)),
        "dec_pos_emb": w((cfg["max_seq_len"], D)),
        "enc_layers": [enc_layer_params() for _ in range(cfg["num_encoder_layers"])],
        "dec_layers": [dec_layer_params() for _ in range(cfg["num_decoder_layers"])],
        "w_out_p": jnp.pad(w_out, ((0, 0), (0, Vp - V))),
        "b_out_p": jnp.zeros((Vp,), jnp.float32),
    }


# ---------------------------------------------------------------- main

if __name__ == "__main__":
    cfg = dict(
        enc_vocab_size=64, dec_vocab_size=64, max_seq_len=32,
        d_model=128, num_heads=4, dim_feedforward=128,
        num_encoder_layers=2, num_decoder_layers=2,
        pad_token_id=0, bos_token_id=2, eos_token_id=3,
    )

    key = jax.random.PRNGKey(0)
    kp, ke, kd = jax.random.split(key, 3)
    params = init_params(kp, cfg)

    B, Se, Sd = 2, 16, 8
    enc_ids = jax.random.randint(ke, (B, Se), 4, cfg["enc_vocab_size"], jnp.int32)
    dec_ids = jax.random.randint(kd, (B, Sd), 4, cfg["dec_vocab_size"], jnp.int32)

    # pad the tail of each sequence (mask convention: 1 = real token, 0 = pad)
    enc_padding_mask = jnp.concatenate(
        [jnp.ones((B, Se - 3), jnp.float32), jnp.zeros((B, 3), jnp.float32)], axis=1)
    dec_padding_mask = jnp.concatenate(
        [jnp.ones((B, Sd - 2), jnp.float32), jnp.zeros((B, 2), jnp.float32)], axis=1)
    enc_ids = enc_ids * enc_padding_mask.astype(jnp.int32)
    dec_ids = dec_ids * dec_padding_mask.astype(jnp.int32)

    fwd = jax.jit(functools.partial(stack_forward, params, cfg))
    out = fwd(enc_ids, dec_ids, enc_padding_mask, dec_padding_mask)
    out = jax.block_until_ready(out)

    assert out.shape == (B, Sd, cfg["dec_vocab_size"])
    assert bool(jnp.all(jnp.isfinite(out)))
    print("KERNEL_OK")
</pallas_src>

<mosaic_0001>
module attributes {stable_mosaic.version = 11 : i64} {
  func.func @linear_kernel(%arg0: i32, %arg1: memref<32x128xf32, #tpu.memory_space<vmem>>, %arg2: memref<128x384xf32, #tpu.memory_space<vmem>>, %arg3: memref<1x384xf32, #tpu.memory_space<vmem>>, %arg4: memref<32x384xf32, #tpu.memory_space<vmem>>) attributes {dimension_semantics = [#tpu.dimension_semantics<parallel>], iteration_bounds = array<i64: 1>, scalar_prefetch = 0 : i64, scratch_operands = 0 : i64, tpu.core_type = #tpu.core_type<tc>, window_params = [{transform_indices = @transform_0, window_bounds = array<i64: 32, 128>}, {pipeline_mode = #tpu.pipeline_mode<synchronous>, transform_indices = @transform_1, window_bounds = array<i64: 128, 384>}, {pipeline_mode = #tpu.pipeline_mode<synchronous>, transform_indices = @transform_2, window_bounds = array<i64: 1, 384>}, {transform_indices = @transform_3, window_bounds = array<i64: 32, 384>}]} {
    %c0 = arith.constant 0 : index
    %c0_0 = arith.constant 0 : index
    %0 = vector.load %arg1[%c0, %c0_0] : memref<32x128xf32, #tpu.memory_space<vmem>>, vector<32x128xf32>
    %1 = arith.truncf %0 : vector<32x128xf32> to vector<32x128xbf16>
    %c0_1 = arith.constant 0 : index
    %c0_2 = arith.constant 0 : index
    %2 = vector.load %arg2[%c0_1, %c0_2] : memref<128x384xf32, #tpu.memory_space<vmem>>, vector<128x384xf32>
    %3 = arith.truncf %2 : vector<128x384xf32> to vector<128x384xbf16>
    %cst = arith.constant dense<0.000000e+00> : vector<32x384xf32>
    %4 = tpu.matmul %1, %3, %cst {dimension_numbers = #tpu.dot_dimension_numbers<[1], [0], [0], [1], [0, 0, 1, 1], [], []>} : vector<32x128xbf16>, vector<128x384xbf16>, vector<32x384xf32> -> vector<32x384xf32>
    %c0_3 = arith.constant 0 : index
    %c0_4 = arith.constant 0 : index
    %5 = vector.load %arg3[%c0_3, %c0_4] : memref<1x384xf32, #tpu.memory_space<vmem>>, vector<1x384xf32>
    %6 = vector.broadcast %5 : vector<1x384xf32> to vector<32x384xf32>
    %7 = arith.addf %4, %6 : vector<32x384xf32>
    %c0_5 = arith.constant 0 : index
    %c0_6 = arith.constant 0 : index
    %8 = vector.load %arg4[%c0_5, %c0_6] : memref<32x384xf32, #tpu.memory_space<vmem>>, vector<32x384xf32>
    tpu.vector_store %arg4[%c0_5, %c0_6], %7 {strides = array<i32>} : memref<32x384xf32, #tpu.memory_space<vmem>>, vector<32x384xf32>,
    return
  }
  func.func @transform_0(%arg0: i32) -> (i32, i32) {
    %c0_i32 = arith.constant 0 : i32
    %c0_i32_0 = arith.constant 0 : i32
    return %arg0, %c0_i32 : i32, i32
  }
  func.func @transform_1(%arg0: i32) -> (i32, i32) {
    %c0_i32 = arith.constant 0 : i32
    %c0_i32_0 = arith.constant 0 : i32
    %c0_i32_1 = arith.constant 0 : i32
    return %c0_i32, %c0_i32_0 : i32, i32
  }
  func.func @transform_2(%arg0: i32) -> (i32, i32) {
    %c0_i32 = arith.constant 0 : i32
    %c0_i32_0 = arith.constant 0 : i32
    %c0_i32_1 = arith.constant 0 : i32
    return %c0_i32, %c0_i32_0 : i32, i32
  }
  func.func @transform_3(%arg0: i32) -> (i32, i32) {
    %c0_i32 = arith.constant 0 : i32
    %c0_i32_0 = arith.constant 0 : i32
    return %arg0, %c0_i32 : i32, i32
  }
}

module attributes {stable_mosaic.version = 11 : i64} {
  func.func @self_attn_kernel(%arg0: i32, %arg1: memref<1x16x384xf32, #tpu.memory_space<vmem>>, %arg2: memref<1x1x16xf32, #tpu.memory_space<vmem>>, %arg3: memref<1x16x128xf32, #tpu.memory_space<vmem>>) attributes {dimension_semantics = [#tpu.dimension_semantics<parallel>], iteration_bounds = array<i64: 2>, scalar_prefetch = 0 : i64, scratch_operands = 0 : i64, tpu.core_type = #tpu.core_type<tc>, window_params = [{transform_indices = @transform_0, window_bounds = array<i64: 1, 16, 384>}, {transform_indices = @transform_1, window_bounds = array<i64: 1, 1, 16>}, {transform_indices = @transform_2, window_bounds = array<i64: 1, 16, 128>}]} {
    %c0 = arith.constant 0 : index
    %c0_0 = arith.constant 0 : index
    %c0_1 = arith.constant 0 : index
    %0 = vector.load %arg1[%c0, %c0_0, %c0_1] : memref<1x16x384xf32, #tpu.memory_space<vmem>>, vector<1x16x384xf32>
    %1 = vector.shape_cast %0 : vector<1x16x384xf32> to vector<16x384xf32>
    %2 = vector.extract_strided_slice %1 {offsets = [0, 0], sizes = [16, 128], strides = [1, 1]} : vector<16x384xf32> to vector<16x128xf32>
    %3 = vector.extract_strided_slice %1 {offsets = [0, 128], sizes = [16, 128], strides = [1, 1]} : vector<16x384xf32> to vector<16x128xf32>
    %4 = vector.extract_strided_slice %1 {offsets = [0, 256], sizes = [16, 128], strides = [1, 1]} : vector<16x384xf32> to vector<16x128xf32>
    %c0_2 = arith.constant 0 : index
    %c0_3 = arith.constant 0 : index
    %c0_4 = arith.constant 0 : index
    %5 = vector.load %arg2[%c0_2, %c0_3, %c0_4] : memref<1x1x16xf32, #tpu.memory_space<vmem>>, vector<1x1x16xf32>
    %6 = vector.shape_cast %5 : vector<1x1x16xf32> to vector<1x16xf32>
    %cst = arith.constant 1.000000e+00 : f32
    %7 = vector.broadcast %cst : f32 to vector<1x16xf32>
    %8 = arith.subf %7, %6 : vector<1x16xf32>
    %cst_5 = arith.constant -1.000000e+09 : f32
    %9 = vector.broadcast %cst_5 : f32 to vector<1x16xf32>
    %10 = arith.mulf %8, %9 : vector<1x16xf32>
    %cst_6 = arith.constant 0.176776692 : f32
    %11 = vector.broadcast %cst_6 : f32 to vector<16x128xf32>
    %12 = arith.mulf %2, %11 : vector<16x128xf32>
    %13 = vector.extract_strided_slice %12 {offsets = [0, 0], sizes = [16, 32], strides = [1, 1]} : vector<16x128xf32> to vector<16x32xf32>
    %14 = arith.truncf %13 : vector<16x32xf32> to vector<16x32xbf16>
    %15 = vector.extract_strided_slice %3 {offsets = [0, 0], sizes = [16, 32], strides = [1, 1]} : vector<16x128xf32> to vector<16x32xf32>
    %16 = arith.truncf %15 : vector<16x32xf32> to vector<16x32xbf16>
    %17 = vector.extract_strided_slice %4 {offsets = [0, 0], sizes = [16, 32], strides = [1, 1]} : vector<16x128xf32> to vector<16x32xf32>
    %18 = arith.truncf %17 : vector<16x32xf32> to vector<16x32xbf16>
    %cst_7 = arith.constant dense<0.000000e+00> : vector<16x16xf32>
    %19 = tpu.matmul %14, %16, %cst_7 {dimension_numbers = #tpu.dot_dimension_numbers<[1], [1], [0], [0], [0, 0, 1, 0], [], []>} : vector<16x32xbf16>, vector<16x32xbf16>, vector<16x16xf32> -> vector<16x16xf32>
    %20 = vector.broadcast %10 : vector<1x16xf32> to vector<16x16xf32>
    %21 = arith.addf %19, %20 : vector<16x16xf32>
    %cst_8 = arith.constant dense<0xFF800000> : vector<16xf32>
    %22 = vector.multi_reduction <maximumf>, %21, %cst_8 [1] : vector<16x16xf32> to vector<16xf32>
    %23 = vector.shape_cast %22 : vector<16xf32> to vector<16x1xf32>
    %24 = vector.broadcast %23 : vector<16x1xf32> to vector<16x16xf32>
    %25 = arith.subf %21, %24 : vector<16x16xf32>
    %26 = math.exp %25 : vector<16x16xf32>
    %cst_9 = arith.constant dense<0.000000e+00> : vector<16xf32>
    %27 = vector.multi_reduction <add>, %26, %cst_9 [1] : vector<16x16xf32> to vector<16xf32>
    %28 = vector.shape_cast %27 : vector<16xf32> to vector<16x1xf32>
    %29 = tpu.reciprocal %28 {approx = true} : vector<16x1xf32> -> vector<16x1xf32>
    %30 = vector.broadcast %29 : vector<16x1xf32> to vector<16x16xf32>
    %31 = arith.mulf %26, %30 : vector<16x16xf32>
    %32 = arith.truncf %31 : vector<16x16xf32> to vector<16x16xbf16>
    %cst_10 = arith.constant dense<0.000000e+00> : vector<16x32xf32>
    %33 = tpu.matmul %32, %18, %cst_10 {dimension_numbers = #tpu.dot_dimension_numbers<[1], [0], [0], [1], [0, 0, 1, 1], [], []>} : vector<16x16xbf16>, vector<16x32xbf16>, vector<16x32xf32> -> vector<16x32xf32>
    %34 = vector.extract_strided_slice %12 {offsets = [0, 32], sizes = [16, 32], strides = [1, 1]} : vector<16x128xf32> to vector<16x32xf32>
    %35 = arith.truncf %34 : vector<16x32xf32> to vector<16x32xbf16>
    %36 = vector.extract_strided_slice %3 {offsets = [0, 32], sizes = [16, 32], strides = [1, 1]} : vector<16x128xf32> to vector<16x32xf32>
    %37 = arith.truncf %36 : vector<16x32xf32> to vector<16x32xbf16>
    %38 = vector.extract_strided_slice %4 {offsets = [0, 32], sizes = [16, 32], strides = [1, 1]} : vector<16x128xf32> to vector<16x32xf32>
    %39 = arith.truncf %38 : vector<16x32xf32> to vector<16x32xbf16>
    %cst_11 = arith.constant dense<0.000000e+00> : vector<16x16xf32>
    %40 = tpu.matmul %35, %37, %cst_11 {dimension_numbers = #tpu.dot_dimension_numbers<[1], [1], [0], [0], [0, 0, 1, 0], [], []>} : vector<16x32xbf16>, vector<16x32xbf16>, vector<16x16xf32> -> vector<16x16xf32>
    %41 = vector.broadcast %10 : vector<1x16xf32> to vector<16x16xf32>
    %42 = arith.addf %40, %41 : vector<16x16xf32>
    %cst_12 = arith.constant dense<0xFF800000> : vector<16xf32>
    %43 = vector.multi_reduction <maximumf>, %42, %cst_12 [1] : vector<16x16xf32> to vector<16xf32>
    %44 = vector.shape_cast %43 : vector<16xf32> to vector<16x1xf32>
    %45 = vector.broadcast %44 : vector<16x1xf32> to vector<16x16xf32>
    %46 = arith.subf %42, %45 : vector<16x16xf32>
    %47 = math.exp %46 : vector<16x16xf32>
    %cst_13 = arith.constant dense<0.000000e+00> : vector<16xf32>
    %48 = vector.multi_reduction <add>, %47, %cst_13 [1] : vector<16x16xf32> to vector<16xf32>
    %49 = vector.shape_cast %48 : vector<16xf32> to vector<16x1xf32>
    %50 = tpu.reciprocal %49 {approx = true} : vector<16x1xf32> -> vector<16x1xf32>
    %51 = vector.broadcast %50 : vector<16x1xf32> to vector<16x16xf32>
    %52 = arith.mulf %47, %51 : vector<16x16xf32>
    %53 = arith.truncf %52 : vector<16x16xf32> to vector<16x16xbf16>
    %cst_14 = arith.constant dense<0.000000e+00> : vector<16x32xf32>
    %54 = tpu.matmul %53, %39, %cst_14 {dimension_numbers = #tpu.dot_dimension_numbers<[1], [0], [0], [1], [0, 0, 1, 1], [], []>} : vector<16x16xbf16>, vector<16x32xbf16>, vector<16x32xf32> -> vector<16x32xf32>
    %55 = vector.extract_strided_slice %12 {offsets = [0, 64], sizes = [16, 32], strides = [1, 1]} : vector<16x128xf32> to vector<16x32xf32>
    %56 = arith.truncf %55 : vector<16x32xf32> to vector<16x32xbf16>
    %57 = vector.extract_strided_slice %3 {offsets = [0, 64], sizes = [16, 32], strides = [1, 1]} : vector<16x128xf32> to vector<16x32xf32>
    %58 = arith.truncf %57 : vector<16x32xf32> to vector<16x32xbf16>
    %59 = vector.extract_strided_slice %4 {offsets = [0, 64], sizes = [16, 32], strides = [1, 1]} : vector<16x128xf32> to vector<16x32xf32>
    %60 = arith.truncf %59 : vector<16x32xf32> to vector<16x32xbf16>
    %cst_15 = arith.constant dense<0.000000e+00> : vector<16x16xf32>
    %61 = tpu.matmul %56, %58, %cst_15 {dimension_numbers = #tpu.dot_dimension_numbers<[1], [1], [0], [0], [0, 0, 1, 0], [], []>} : vector<16x32xbf16>, vector<16x32xbf16>, vector<16x16xf32> -> vector<16x16xf32>
    %62 = vector.broadcast %10 : vector<1x16xf32> to vector<16x16xf32>
    %63 = arith.addf %61, %62 : vector<16x16xf32>
    %cst_16 = arith.constant dense<0xFF800000> : vector<16xf32>
    %64 = vector.multi_reduction <maximumf>, %63, %cst_16 [1] : vector<16x16xf32> to vector<16xf32>
    %65 = vector.shape_cast %64 : vector<16xf32> to vector<16x1xf32>
    %66 = vector.broadcast %65 : vector<16x1xf32> to vector<16x16xf32>
    %67 = arith.subf %63, %66 : vector<16x16xf32>
    %68 = math.exp %67 : vector<16x16xf32>
    %cst_17 = arith.constant dense<0.000000e+00> : vector<16xf32>
    %69 = vector.multi_reduction <add>, %68, %cst_17 [1] : vector<16x16xf32> to vector<16xf32>
    %70 = vector.shape_cast %69 : vector<16xf32> to vector<16x1xf32>
    %71 = tpu.reciprocal %70 {approx = true} : vector<16x1xf32> -> vector<16x1xf32>
    %72 = vector.broadcast %71 : vector<16x1xf32> to vector<16x16xf32>
    %73 = arith.mulf %68, %72 : vector<16x16xf32>
    %74 = arith.truncf %73 : vector<16x16xf32> to vector<16x16xbf16>
    %cst_18 = arith.constant dense<0.000000e+00> : vector<16x32xf32>
    %75 = tpu.matmul %74, %60, %cst_18 {dimension_numbers = #tpu.dot_dimension_numbers<[1], [0], [0], [1], [0, 0, 1, 1], [], []>} : vector<16x16xbf16>, vector<16x32xbf16>, vector<16x32xf32> -> vector<16x32xf32>
    %76 = vector.extract_strided_slice %12 {offsets = [0, 96], sizes = [16, 32], strides = [1, 1]} : vector<16x128xf32> to vector<16x32xf32>
    %77 = arith.truncf %76 : vector<16x32xf32> to vector<16x32xbf16>
    %78 = vector.extract_strided_slice %3 {offsets = [0, 96], sizes = [16, 32], strides = [1, 1]} : vector<16x128xf32> to vector<16x32xf32>
    %79 = arith.truncf %78 : vector<16x32xf32> to vector<16x32xbf16>
    %80 = vector.extract_strided_slice %4 {offsets = [0, 96], sizes = [16, 32], strides = [1, 1]} : vector<16x128xf32> to vector<16x32xf32>
    %81 = arith.truncf %80 : vector<16x32xf32> to vector<16x32xbf16>
    %cst_19 = arith.constant dense<0.000000e+00> : vector<16x16xf32>
    %82 = tpu.matmul %77, %79, %cst_19 {dimension_numbers = #tpu.dot_dimension_numbers<[1], [1], [0], [0], [0, 0, 1, 0], [], []>} : vector<16x32xbf16>, vector<16x32xbf16>, vector<16x16xf32> -> vector<16x16xf32>
    %83 = vector.broadcast %10 : vector<1x16xf32> to vector<16x16xf32>
    %84 = arith.addf %82, %83 : vector<16x16xf32>
    %cst_20 = arith.constant dense<0xFF800000> : vector<16xf32>
    %85 = vector.multi_reduction <maximumf>, %84, %cst_20 [1] : vector<16x16xf32> to vector<16xf32>
    %86 = vector.shape_cast %85 : vector<16xf32> to vector<16x1xf32>
    %87 = vector.broadcast %86 : vector<16x1xf32> to vector<16x16xf32>
    %88 = arith.subf %84, %87 : vector<16x16xf32>
    %89 = math.exp %88 : vector<16x16xf32>
    %cst_21 = arith.constant dense<0.000000e+00> : vector<16xf32>
    %90 = vector.multi_reduction <add>, %89, %cst_21 [1] : vector<16x16xf32> to vector<16xf32>
    %91 = vector.shape_cast %90 : vector<16xf32> to vector<16x1xf32>
    %92 = tpu.reciprocal %91 {approx = true} : vector<16x1xf32> -> vector<16x1xf32>
    %93 = vector.broadcast %92 : vector<16x1xf32> to vector<16x16xf32>
    %94 = arith.mulf %89, %93 : vector<16x16xf32>
    %95 = arith.truncf %94 : vector<16x16xf32> to vector<16x16xbf16>
    %cst_22 = arith.constant dense<0.000000e+00> : vector<16x32xf32>
    %96 = tpu.matmul %95, %81, %cst_22 {dimension_numbers = #tpu.dot_dimension_numbers<[1], [0], [0], [1], [0, 0, 1, 1], [], []>} : vector<16x16xbf16>, vector<16x32xbf16>, vector<16x32xf32> -> vector<16x32xf32>
    %97 = tpu.concatenate %33, %54, %75, %96 in 1 : vector<16x32xf32>, vector<16x32xf32>, vector<16x32xf32>, vector<16x32xf32> -> vector<16x128xf32>
    %c0_23 = arith.constant 0 : index
    %c0_24 = arith.constant 0 : index
    %c0_25 = arith.constant 0 : index
    %98 = vector.load %arg3[%c0_23, %c0_24, %c0_25] : memref<1x16x128xf32, #tpu.memory_space<vmem>>, vector<1x16x128xf32>
    %99 = vector.shape_cast %98 : vector<1x16x128xf32> to vector<16x128xf32>
    %100 = vector.shape_cast %97 : vector<16x128xf32> to vector<1x16x128xf32>
    tpu.vector_store %arg3[%c0_23, %c0_24, %c0_25], %100 {strides = array<i32>} : memref<1x16x128xf32, #tpu.memory_space<vmem>>, vector<1x16x128xf32>,
    return
  }
  func.func @transform_0(%arg0: i32) -> (i32, i32, i32) {
    %c0_i32 = arith.constant 0 : i32
    %c0_i32_0 = arith.constant 0 : i32
    %c0_i32_1 = arith.constant 0 : i32
    return %arg0, %c0_i32, %c0_i32_0 : i32, i32, i32
  }
  func.func @transform_1(%arg0: i32) -> (i32, i32, i32) {
    %c0_i32 = arith.constant 0 : i32
    %c0_i32_0 = arith.constant 0 : i32
    %c0_i32_1 = arith.constant 0 : i32
    return %arg0, %c0_i32, %c0_i32_0 : i32, i32, i32
  }
  func.func @transform_2(%arg0: i32) -> (i32, i32, i32) {
    %c0_i32 = arith.constant 0 : i32
    %c0_i32_0 = arith.constant 0 : i32
    %c0_i32_1 = arith.constant 0 : i32
    return %arg0, %c0_i32, %c0_i32_0 : i32, i32, i32
  }
}

module attributes {stable_mosaic.version = 11 : i64} {
  func.func @proj_add_ln_kernel(%arg0: i32, %arg1: memref<32x128xf32, #tpu.memory_space<vmem>>, %arg2: memref<128x128xf32, #tpu.memory_space<vmem>>, %arg3: memref<1x128xf32, #tpu.memory_space<vmem>>, %arg4: memref<32x128xf32, #tpu.memory_space<vmem>>, %arg5: memref<1x128xf32, #tpu.memory_space<vmem>>, %arg6: memref<1x128xf32, #tpu.memory_space<vmem>>, %arg7: memref<32x128xf32, #tpu.memory_space<vmem>>) attributes {dimension_semantics = [#tpu.dimension_semantics<parallel>], iteration_bounds = array<i64: 1>, scalar_prefetch = 0 : i64, scratch_operands = 0 : i64, tpu.core_type = #tpu.core_type<tc>, window_params = [{transform_indices = @transform_0, window_bounds = array<i64: 32, 128>}, {pipeline_mode = #tpu.pipeline_mode<synchronous>, transform_indices = @transform_1, window_bounds = array<i64: 128, 128>}, {pipeline_mode = #tpu.pipeline_mode<synchronous>, transform_indices = @transform_2, window_bounds = array<i64: 1, 128>}, {transform_indices = @transform_3, window_bounds = array<i64: 32, 128>}, {pipeline_mode = #tpu.pipeline_mode<synchronous>, transform_indices = @transform_4, window_bounds = array<i64: 1, 128>}, {pipeline_mode = #tpu.pipeline_mode<synchronous>, transform_indices = @transform_5, window_bounds = array<i64: 1, 128>}, {transform_indices = @transform_6, window_bounds = array<i64: 32, 128>}]} {
    %c0 = arith.constant 0 : index
    %c0_0 = arith.constant 0 : index
    %0 = vector.load %arg1[%c0, %c0_0] : memref<32x128xf32, #tpu.memory_space<vmem>>, vector<32x128xf32>
    %1 = arith.truncf %0 : vector<32x128xf32> to vector<32x128xbf16>
    %c0_1 = arith.constant 0 : index
    %c0_2 = arith.constant 0 : index
    %2 = vector.load %arg2[%c0_1, %c0_2] : memref<128x128xf32, #tpu.memory_space<vmem>>, vector<128x128xf32>
    %3 = arith.truncf %2 : vector<128x128xf32> to vector<128x128xbf16>
    %cst = arith.constant dense<0.000000e+00> : vector<32x128xf32>
    %4 = tpu.matmul %1, %3, %cst {dimension_numbers = #tpu.dot_dimension_numbers<[1], [0], [0], [1], [0, 0, 1, 1], [], []>} : vector<32x128xbf16>, vector<128x128xbf16>, vector<32x128xf32> -> vector<32x128xf32>
    %c0_3 = arith.constant 0 : index
    %c0_4 = arith.constant 0 : index
    %5 = vector.load %arg3[%c0_3, %c0_4] : memref<1x128xf32, #tpu.memory_space<vmem>>, vector<1x128xf32>
    %6 = vector.broadcast %5 : vector<1x128xf32> to vector<32x128xf32>
    %7 = arith.addf %4, %6 : vector<32x128xf32>
    %c0_5 = arith.constant 0 : index
    %c0_6 = arith.constant 0 : index
    %8 = vector.load %arg4[%c0_5, %c0_6] : memref<32x128xf32, #tpu.memory_space<vmem>>, vector<32x128xf32>
    %9 = arith.addf %7, %8 : vector<32x128xf32>
    %c0_7 = arith.constant 0 : index
    %c0_8 = arith.constant 0 : index
    %10 = vector.load %arg5[%c0_7, %c0_8] : memref<1x128xf32, #tpu.memory_space<vmem>>, vector<1x128xf32>
    %c0_9 = arith.constant 0 : index
    %c0_10 = arith.constant 0 : index
    %11 = vector.load %arg6[%c0_9, %c0_10] : memref<1x128xf32, #tpu.memory_space<vmem>>, vector<1x128xf32>
    %cst_11 = arith.constant dense<0.000000e+00> : vector<32xf32>
    %12 = vector.multi_reduction <add>, %9, %cst_11 [1] : vector<32x128xf32> to vector<32xf32>
    %13 = vector.shape_cast %12 : vector<32xf32> to vector<32x1xf32>
    %cst_12 = arith.constant 1.280000e+02 : f32
    %14 = vector.broadcast %cst_12 : f32 to vector<32x1xf32>
    %15 = arith.divf %13, %14 : vector<32x1xf32>
    %16 = vector.broadcast %15 : vector<32x1xf32> to vector<32x128xf32>
    %17 = arith.subf %9, %16 : vector<32x128xf32>
    %18 = arith.mulf %17, %17 : vector<32x128xf32>
    %cst_13 = arith.constant dense<0.000000e+00> : vector<32xf32>
    %19 = vector.multi_reduction <add>, %18, %cst_13 [1] : vector<32x128xf32> to vector<32xf32>
    %20 = vector.shape_cast %19 : vector<32xf32> to vector<32x1xf32>
    %cst_14 = arith.constant 1.280000e+02 : f32
    %21 = vector.broadcast %cst_14 : f32 to vector<32x1xf32>
    %22 = arith.divf %20, %21 : vector<32x1xf32>
    %23 = vector.broadcast %15 : vector<32x1xf32> to vector<32x128xf32>
    %24 = arith.subf %9, %23 : vector<32x128xf32>
    %cst_15 = arith.constant 9.99999974E-6 : f32
    %25 = vector.broadcast %cst_15 : f32 to vector<32x1xf32>
    %26 = arith.addf %22, %25 : vector<32x1xf32>
    %27 = math.rsqrt %26 : vector<32x1xf32>
    %28 = vector.broadcast %27 : vector<32x1xf32> to vector<32x128xf32>
    %29 = arith.mulf %24, %28 : vector<32x128xf32>
    %30 = vector.broadcast %10 : vector<1x128xf32> to vector<32x128xf32>
    %31 = arith.mulf %29, %30 : vector<32x128xf32>
    %32 = vector.broadcast %11 : vector<1x128xf32> to vector<32x128xf32>
    %33 = arith.addf %31, %32 : vector<32x128xf32>
    %c0_16 = arith.constant 0 : index
    %c0_17 = arith.constant 0 : index
    %34 = vector.load %arg7[%c0_16, %c0_17] : memref<32x128xf32, #tpu.memory_space<vmem>>, vector<32x128xf32>
    tpu.vector_store %arg7[%c0_16, %c0_17], %33 {strides = array<i32>} : memref<32x128xf32, #tpu.memory_space<vmem>>, vector<32x128xf32>,
    return
  }
  func.func @transform_0(%arg0: i32) -> (i32, i32) {
    %c0_i32 = arith.constant 0 : i32
    %c0_i32_0 = arith.constant 0 : i32
    return %arg0, %c0_i32 : i32, i32
  }
  func.func @transform_1(%arg0: i32) -> (i32, i32) {
    %c0_i32 = arith.constant 0 : i32
    %c0_i32_0 = arith.constant 0 : i32
    %c0_i32_1 = arith.constant 0 : i32
    return %c0_i32, %c0_i32_0 : i32, i32
  }
  func.func @transform_2(%arg0: i32) -> (i32, i32) {
    %c0_i32 = arith.constant 0 : i32
    %c0_i32_0 = arith.constant 0 : i32
    %c0_i32_1 = arith.constant 0 : i32
    return %c0_i32, %c0_i32_0 : i32, i32
  }
  func.func @transform_3(%arg0: i32) -> (i32, i32) {
    %c0_i32 = arith.constant 0 : i32
    %c0_i32_0 = arith.constant 0 : i32
    return %arg0, %c0_i32 : i32, i32
  }
  func.func @transform_4(%arg0: i32) -> (i32, i32) {
    %c0_i32 = arith.constant 0 : i32
    %c0_i32_0 = arith.constant 0 : i32
    %c0_i32_1 = arith.constant 0 : i32
    return %c0_i32, %c0_i32_0 : i32, i32
  }
  func.func @transform_5(%arg0: i32) -> (i32, i32) {
    %c0_i32 = arith.constant 0 : i32
    %c0_i32_0 = arith.constant 0 : i32
    %c0_i32_1 = arith.constant 0 : i32
    return %c0_i32, %c0_i32_0 : i32, i32
  }
  func.func @transform_6(%arg0: i32) -> (i32, i32) {
    %c0_i32 = arith.constant 0 : i32
    %c0_i32_0 = arith.constant 0 : i32
    return %arg0, %c0_i32 : i32, i32
  }
}

module attributes {stable_mosaic.version = 11 : i64} {
  func.func @ffn_add_ln_kernel(%arg0: i32, %arg1: memref<32x128xf32, #tpu.memory_space<vmem>>, %arg2: memref<128x128xf32, #tpu.memory_space<vmem>>, %arg3: memref<1x128xf32, #tpu.memory_space<vmem>>, %arg4: memref<128x128xf32, #tpu.memory_space<vmem>>, %arg5: memref<1x128xf32, #tpu.memory_space<vmem>>, %arg6: memref<1x128xf32, #tpu.memory_space<vmem>>, %arg7: memref<1x128xf32, #tpu.memory_space<vmem>>, %arg8: memref<32x128xf32, #tpu.memory_space<vmem>>) attributes {dimension_semantics = [#tpu.dimension_semantics<parallel>], iteration_bounds = array<i64: 1>, scalar_prefetch = 0 : i64, scratch_operands = 0 : i64, tpu.core_type = #tpu.core_type<tc>, window_params = [{transform_indices = @transform_0, window_bounds = array<i64: 32, 128>}, {pipeline_mode = #tpu.pipeline_mode<synchronous>, transform_indices = @transform_1, window_bounds = array<i64: 128, 128>}, {pipeline_mode = #tpu.pipeline_mode<synchronous>, transform_indices = @transform_2, window_bounds = array<i64: 1, 128>}, {pipeline_mode = #tpu.pipeline_mode<synchronous>, transform_indices = @transform_3, window_bounds = array<i64: 128, 128>}, {pipeline_mode = #tpu.pipeline_mode<synchronous>, transform_indices = @transform_4, window_bounds = array<i64: 1, 128>}, {pipeline_mode = #tpu.pipeline_mode<synchronous>, transform_indices = @transform_5, window_bounds = array<i64: 1, 128>}, {pipeline_mode = #tpu.pipeline_mode<synchronous>, transform_indices = @transform_6, window_bounds = array<i64: 1, 128>}, {transform_indices = @transform_7, window_bounds = array<i64: 32, 128>}]} {
    %c0 = arith.constant 0 : index
    %c0_0 = arith.constant 0 : index
    %0 = vector.load %arg1[%c0, %c0_0] : memref<32x128xf32, #tpu.memory_space<vmem>>, vector<32x128xf32>
    %1 = arith.truncf %0 : vector<32x128xf32> to vector<32x128xbf16>
    %c0_1 = arith.constant 0 : index
    %c0_2 = arith.constant 0 : index
    %2 = vector.load %arg2[%c0_1, %c0_2] : memref<128x128xf32, #tpu.memory_space<vmem>>, vector<128x128xf32>
    %3 = arith.truncf %2 : vector<128x128xf32> to vector<128x128xbf16>
    %cst = arith.constant dense<0.000000e+00> : vector<32x128xf32>
    %4 = tpu.matmul %1, %3, %cst {dimension_numbers = #tpu.dot_dimension_numbers<[1], [0], [0], [1], [0, 0, 1, 1], [], []>} : vector<32x128xbf16>, vector<128x128xbf16>, vector<32x128xf32> -> vector<32x128xf32>
    %c0_3 = arith.constant 0 : index
    %c0_4 = arith.constant 0 : index
    %5 = vector.load %arg3[%c0_3, %c0_4] : memref<1x128xf32, #tpu.memory_space<vmem>>, vector<1x128xf32>
    %6 = vector.broadcast %5 : vector<1x128xf32> to vector<32x128xf32>
    %7 = arith.addf %4, %6 : vector<32x128xf32>
    %8 = arith.mulf %7, %7 : vector<32x128xf32>
    %9 = arith.mulf %7, %8 : vector<32x128xf32>
    %cst_5 = arith.constant 4.471500e-02 : f32
    %10 = vector.broadcast %cst_5 : f32 to vector<32x128xf32>
    %11 = arith.mulf %10, %9 : vector<32x128xf32>
    %12 = arith.addf %7, %11 : vector<32x128xf32>
    %cst_6 = arith.constant 0.797884583 : f32
    %13 = vector.broadcast %cst_6 : f32 to vector<32x128xf32>
    %14 = arith.mulf %13, %12 : vector<32x128xf32>
    %15 = math.tanh %14 : vector<32x128xf32>
    %cst_7 = arith.constant 1.000000e+00 : f32
    %16 = vector.broadcast %cst_7 : f32 to vector<32x128xf32>
    %17 = arith.addf %16, %15 : vector<32x128xf32>
    %cst_8 = arith.constant 5.000000e-01 : f32
    %18 = vector.broadcast %cst_8 : f32 to vector<32x128xf32>
    %19 = arith.mulf %18, %17 : vector<32x128xf32>
    %20 = arith.mulf %7, %19 : vector<32x128xf32>
    %21 = arith.truncf %20 : vector<32x128xf32> to vector<32x128xbf16>
    %c0_9 = arith.constant 0 : index
    %c0_10 = arith.constant 0 : index
    %22 = vector.load %arg4[%c0_9, %c0_10] : memref<128x128xf32, #tpu.memory_space<vmem>>, vector<128x128xf32>
    %23 = arith.truncf %22 : vector<128x128xf32> to vector<128x128xbf16>
    %cst_11 = arith.constant dense<0.000000e+00> : vector<32x128xf32>
    %24 = tpu.matmul %21, %23, %cst_11 {dimension_numbers = #tpu.dot_dimension_numbers<[1], [0], [0], [1], [0, 0, 1, 1], [], []>} : vector<32x128xbf16>, vector<128x128xbf16>, vector<32x128xf32> -> vector<32x128xf32>
    %c0_12 = arith.constant 0 : index
    %c0_13 = arith.constant 0 : index
    %25 = vector.load %arg5[%c0_12, %c0_13] : memref<1x128xf32, #tpu.memory_space<vmem>>, vector<1x128xf32>
    %26 = vector.broadcast %25 : vector<1x128xf32> to vector<32x128xf32>
    %27 = arith.addf %24, %26 : vector<32x128xf32>
    %28 = arith.addf %27, %0 : vector<32x128xf32>
    %c0_14 = arith.constant 0 : index
    %c0_15 = arith.constant 0 : index
    %29 = vector.load %arg6[%c0_14, %c0_15] : memref<1x128xf32, #tpu.memory_space<vmem>>, vector<1x128xf32>
    %c0_16 = arith.constant 0 : index
    %c0_17 = arith.constant 0 : index
    %30 = vector.load %arg7[%c0_16, %c0_17] : memref<1x128xf32, #tpu.memory_space<vmem>>, vector<1x128xf32>
    %cst_18 = arith.constant dense<0.000000e+00> : vector<32xf32>
    %31 = vector.multi_reduction <add>, %28, %cst_18 [1] : vector<32x128xf32> to vector<32xf32>
    %32 = vector.shape_cast %31 : vector<32xf32> to vector<32x1xf32>
    %cst_19 = arith.constant 1.280000e+02 : f32
    %33 = vector.broadcast %cst_19 : f32 to vector<32x1xf32>
    %34 = arith.divf %32, %33 : vector<32x1xf32>
    %35 = vector.broadcast %34 : vector<32x1xf32> to vector<32x128xf32>
    %36 = arith.subf %28, %35 : vector<32x128xf32>
    %37 = arith.mulf %36, %36 : vector<32x128xf32>
    %cst_20 = arith.constant dense<0.000000e+00> : vector<32xf32>
    %38 = vector.multi_reduction <add>, %37, %cst_20 [1] : vector<32x128xf32> to vector<32xf32>
    %39 = vector.shape_cast %38 : vector<32xf32> to vector<32x1xf32>
    %cst_21 = arith.constant 1.280000e+02 : f32
    %40 = vector.broadcast %cst_21 : f32 to vector<32x1xf32>
    %41 = arith.divf %39, %40 : vector<32x1xf32>
    %42 = vector.broadcast %34 : vector<32x1xf32> to vector<32x128xf32>
    %43 = arith.subf %28, %42 : vector<32x128xf32>
    %cst_22 = arith.constant 9.99999974E-6 : f32
    %44 = vector.broadcast %cst_22 : f32 to vector<32x1xf32>
    %45 = arith.addf %41, %44 : vector<32x1xf32>
    %46 = math.rsqrt %45 : vector<32x1xf32>
    %47 = vector.broadcast %46 : vector<32x1xf32> to vector<32x128xf32>
    %48 = arith.mulf %43, %47 : vector<32x128xf32>
    %49 = vector.broadcast %29 : vector<1x128xf32> to vector<32x128xf32>
    %50 = arith.mulf %48, %49 : vector<32x128xf32>
    %51 = vector.broadcast %30 : vector<1x128xf32> to vector<32x128xf32>
    %52 = arith.addf %50, %51 : vector<32x128xf32>
    %c0_23 = arith.constant 0 : index
    %c0_24 = arith.constant 0 : index
    %53 = vector.load %arg8[%c0_23, %c0_24] : memref<32x128xf32, #tpu.memory_space<vmem>>, vector<32x128xf32>
    tpu.vector_store %arg8[%c0_23, %c0_24], %52 {strides = array<i32>} : memref<32x128xf32, #tpu.memory_space<vmem>>, vector<32x128xf32>,
    return
  }
  func.func @transform_0(%arg0: i32) -> (i32, i32) {
    %c0_i32 = arith.constant 0 : i32
    %c0_i32_0 = arith.constant 0 : i32
    return %arg0, %c0_i32 : i32, i32
  }
  func.func @transform_1(%arg0: i32) -> (i32, i32) {
    %c0_i32 = arith.constant 0 : i32
    %c0_i32_0 = arith.constant 0 : i32
    %c0_i32_1 = arith.constant 0 : i32
    return %c0_i32, %c0_i32_0 : i32, i32
  }
  func.func @transform_2(%arg0: i32) -> (i32, i32) {
    %c0_i32 = arith.constant 0 : i32
    %c0_i32_0 = arith.constant 0 : i32
    %c0_i32_1 = arith.constant 0 : i32
    return %c0_i32, %c0_i32_0 : i32, i32
  }
  func.func @transform_3(%arg0: i32) -> (i32, i32) {
    %c0_i32 = arith.constant 0 : i32
    %c0_i32_0 = arith.constant 0 : i32
    %c0_i32_1 = arith.constant 0 : i32
    return %c0_i32, %c0_i32_0 : i32, i32
  }
  func.func @transform_4(%arg0: i32) -> (i32, i32) {
    %c0_i32 = arith.constant 0 : i32
    %c0_i32_0 = arith.constant 0 : i32
    %c0_i32_1 = arith.constant 0 : i32
    return %c0_i32, %c0_i32_0 : i32, i32
  }
  func.func @transform_5(%arg0: i32) -> (i32, i32) {
    %c0_i32 = arith.constant 0 : i32
    %c0_i32_0 = arith.constant 0 : i32
    %c0_i32_1 = arith.constant 0 : i32
    return %c0_i32, %c0_i32_0 : i32, i32
  }
  func.func @transform_6(%arg0: i32) -> (i32, i32) {
    %c0_i32 = arith.constant 0 : i32
    %c0_i32_0 = arith.constant 0 : i32
    %c0_i32_1 = arith.constant 0 : i32
    return %c0_i32, %c0_i32_0 : i32, i32
  }
  func.func @transform_7(%arg0: i32) -> (i32, i32) {
    %c0_i32 = arith.constant 0 : i32
    %c0_i32_0 = arith.constant 0 : i32
    return %arg0, %c0_i32 : i32, i32
  }
}

module attributes {stable_mosaic.version = 11 : i64} {
  func.func @linear_kernel(%arg0: i32, %arg1: memref<32x128xf32, #tpu.memory_space<vmem>>, %arg2: memref<128x256xf32, #tpu.memory_space<vmem>>, %arg3: memref<1x256xf32, #tpu.memory_space<vmem>>, %arg4: memref<32x256xf32, #tpu.memory_space<vmem>>) attributes {dimension_semantics = [#tpu.dimension_semantics<parallel>], iteration_bounds = array<i64: 1>, scalar_prefetch = 0 : i64, scratch_operands = 0 : i64, tpu.core_type = #tpu.core_type<tc>, window_params = [{transform_indices = @transform_0, window_bounds = array<i64: 32, 128>}, {pipeline_mode = #tpu.pipeline_mode<synchronous>, transform_indices = @transform_1, window_bounds = array<i64: 128, 256>}, {pipeline_mode = #tpu.pipeline_mode<synchronous>, transform_indices = @transform_2, window_bounds = array<i64: 1, 256>}, {transform_indices = @transform_3, window_bounds = array<i64: 32, 256>}]} {
    %c0 = arith.constant 0 : index
    %c0_0 = arith.constant 0 : index
    %0 = vector.load %arg1[%c0, %c0_0] : memref<32x128xf32, #tpu.memory_space<vmem>>, vector<32x128xf32>
    %1 = arith.truncf %0 : vector<32x128xf32> to vector<32x128xbf16>
    %c0_1 = arith.constant 0 : index
    %c0_2 = arith.constant 0 : index
    %2 = vector.load %arg2[%c0_1, %c0_2] : memref<128x256xf32, #tpu.memory_space<vmem>>, vector<128x256xf32>
    %3 = arith.truncf %2 : vector<128x256xf32> to vector<128x256xbf16>
    %cst = arith.constant dense<0.000000e+00> : vector<32x256xf32>
    %4 = tpu.matmul %1, %3, %cst {dimension_numbers = #tpu.dot_dimension_numbers<[1], [0], [0], [1], [0, 0, 1, 1], [], []>} : vector<32x128xbf16>, vector<128x256xbf16>, vector<32x256xf32> -> vector<32x256xf32>
    %c0_3 = arith.constant 0 : index
    %c0_4 = arith.constant 0 : index
    %5 = vector.load %arg3[%c0_3, %c0_4] : memref<1x256xf32, #tpu.memory_space<vmem>>, vector<1x256xf32>
    %6 = vector.broadcast %5 : vector<1x256xf32> to vector<32x256xf32>
    %7 = arith.addf %4, %6 : vector<32x256xf32>
    %c0_5 = arith.constant 0 : index
    %c0_6 = arith.constant 0 : index
    %8 = vector.load %arg4[%c0_5, %c0_6] : memref<32x256xf32, #tpu.memory_space<vmem>>, vector<32x256xf32>
    tpu.vector_store %arg4[%c0_5, %c0_6], %7 {strides = array<i32>} : memref<32x256xf32, #tpu.memory_space<vmem>>, vector<32x256xf32>,
    return
  }
  func.func @transform_0(%arg0: i32) -> (i32, i32) {
    %c0_i32 = arith.constant 0 : i32
    %c0_i32_0 = arith.constant 0 : i32
    return %arg0, %c0_i32 : i32, i32
  }
  func.func @transform_1(%arg0: i32) -> (i32, i32) {
    %c0_i32 = arith.constant 0 : i32
    %c0_i32_0 = arith.constant 0 : i32
    %c0_i32_1 = arith.constant 0 : i32
    return %c0_i32, %c0_i32_0 : i32, i32
  }
  func.func @transform_2(%arg0: i32) -> (i32, i32) {
    %c0_i32 = arith.constant 0 : i32
    %c0_i32_0 = arith.constant 0 : i32
    %c0_i32_1 = arith.constant 0 : i32
    return %c0_i32, %c0_i32_0 : i32, i32
  }
  func.func @transform_3(%arg0: i32) -> (i32, i32) {
    %c0_i32 = arith.constant 0 : i32
    %c0_i32_0 = arith.constant 0 : i32
    return %arg0, %c0_i32 : i32, i32
  }
}

module attributes {stable_mosaic.version = 11 : i64} {
  func.func @linear_kernel(%arg0: i32, %arg1: memref<16x128xf32, #tpu.memory_space<vmem>>, %arg2: memref<128x384xf32, #tpu.memory_space<vmem>>, %arg3: memref<1x384xf32, #tpu.memory_space<vmem>>, %arg4: memref<16x384xf32, #tpu.memory_space<vmem>>) attributes {dimension_semantics = [#tpu.dimension_semantics<parallel>], iteration_bounds = array<i64: 1>, scalar_prefetch = 0 : i64, scratch_operands = 0 : i64, tpu.core_type = #tpu.core_type<tc>, window_params = [{transform_indices = @transform_0, window_bounds = array<i64: 16, 128>}, {pipeline_mode = #tpu.pipeline_mode<synchronous>, transform_indices = @transform_1, window_bounds = array<i64: 128, 384>}, {pipeline_mode = #tpu.pipeline_mode<synchronous>, transform_indices = @transform_2, window_bounds = array<i64: 1, 384>}, {transform_indices = @transform_3, window_bounds = array<i64: 16, 384>}]} {
    %c0 = arith.constant 0 : index
    %c0_0 = arith.constant 0 : index
    %0 = vector.load %arg1[%c0, %c0_0] : memref<16x128xf32, #tpu.memory_space<vmem>>, vector<16x128xf32>
    %1 = arith.truncf %0 : vector<16x128xf32> to vector<16x128xbf16>
    %c0_1 = arith.constant 0 : index
    %c0_2 = arith.constant 0 : index
    %2 = vector.load %arg2[%c0_1, %c0_2] : memref<128x384xf32, #tpu.memory_space<vmem>>, vector<128x384xf32>
    %3 = arith.truncf %2 : vector<128x384xf32> to vector<128x384xbf16>
    %cst = arith.constant dense<0.000000e+00> : vector<16x384xf32>
    %4 = tpu.matmul %1, %3, %cst {dimension_numbers = #tpu.dot_dimension_numbers<[1], [0], [0], [1], [0, 0, 1, 1], [], []>} : vector<16x128xbf16>, vector<128x384xbf16>, vector<16x384xf32> -> vector<16x384xf32>
    %c0_3 = arith.constant 0 : index
    %c0_4 = arith.constant 0 : index
    %5 = vector.load %arg3[%c0_3, %c0_4] : memref<1x384xf32, #tpu.memory_space<vmem>>, vector<1x384xf32>
    %6 = vector.broadcast %5 : vector<1x384xf32> to vector<16x384xf32>
    %7 = arith.addf %4, %6 : vector<16x384xf32>
    %c0_5 = arith.constant 0 : index
    %c0_6 = arith.constant 0 : index
    %8 = vector.load %arg4[%c0_5, %c0_6] : memref<16x384xf32, #tpu.memory_space<vmem>>, vector<16x384xf32>
    tpu.vector_store %arg4[%c0_5, %c0_6], %7 {strides = array<i32>} : memref<16x384xf32, #tpu.memory_space<vmem>>, vector<16x384xf32>,
    return
  }
  func.func @transform_0(%arg0: i32) -> (i32, i32) {
    %c0_i32 = arith.constant 0 : i32
    %c0_i32_0 = arith.constant 0 : i32
    return %arg0, %c0_i32 : i32, i32
  }
  func.func @transform_1(%arg0: i32) -> (i32, i32) {
    %c0_i32 = arith.constant 0 : i32
    %c0_i32_0 = arith.constant 0 : i32
    %c0_i32_1 = arith.constant 0 : i32
    return %c0_i32, %c0_i32_0 : i32, i32
  }
  func.func @transform_2(%arg0: i32) -> (i32, i32) {
    %c0_i32 = arith.constant 0 : i32
    %c0_i32_0 = arith.constant 0 : i32
    %c0_i32_1 = arith.constant 0 : i32
    return %c0_i32, %c0_i32_0 : i32, i32
  }
  func.func @transform_3(%arg0: i32) -> (i32, i32) {
    %c0_i32 = arith.constant 0 : i32
    %c0_i32_0 = arith.constant 0 : i32
    return %arg0, %c0_i32 : i32, i32
  }
}

module attributes {stable_mosaic.version = 11 : i64} {
  func.func @self_attn_kernel(%arg0: i32, %arg1: memref<1x8x384xf32, #tpu.memory_space<vmem>>, %arg2: memref<1x1x8xf32, #tpu.memory_space<vmem>>, %arg3: memref<1x8x128xf32, #tpu.memory_space<vmem>>) attributes {dimension_semantics = [#tpu.dimension_semantics<parallel>], iteration_bounds = array<i64: 2>, scalar_prefetch = 0 : i64, scratch_operands = 0 : i64, tpu.core_type = #tpu.core_type<tc>, window_params = [{transform_indices = @transform_0, window_bounds = array<i64: 1, 8, 384>}, {transform_indices = @transform_1, window_bounds = array<i64: 1, 1, 8>}, {transform_indices = @transform_2, window_bounds = array<i64: 1, 8, 128>}]} {
    %c0 = arith.constant 0 : index
    %c0_0 = arith.constant 0 : index
    %c0_1 = arith.constant 0 : index
    %0 = vector.load %arg1[%c0, %c0_0, %c0_1] : memref<1x8x384xf32, #tpu.memory_space<vmem>>, vector<1x8x384xf32>
    %1 = vector.shape_cast %0 : vector<1x8x384xf32> to vector<8x384xf32>
    %2 = vector.extract_strided_slice %1 {offsets = [0, 0], sizes = [8, 128], strides = [1, 1]} : vector<8x384xf32> to vector<8x128xf32>
    %3 = vector.extract_strided_slice %1 {offsets = [0, 128], sizes = [8, 128], strides = [1, 1]} : vector<8x384xf32> to vector<8x128xf32>
    %4 = vector.extract_strided_slice %1 {offsets = [0, 256], sizes = [8, 128], strides = [1, 1]} : vector<8x384xf32> to vector<8x128xf32>
    %c0_2 = arith.constant 0 : index
    %c0_3 = arith.constant 0 : index
    %c0_4 = arith.constant 0 : index
    %5 = vector.load %arg2[%c0_2, %c0_3, %c0_4] : memref<1x1x8xf32, #tpu.memory_space<vmem>>, vector<1x1x8xf32>
    %6 = vector.shape_cast %5 : vector<1x1x8xf32> to vector<1x8xf32>
    %cst = arith.constant 1.000000e+00 : f32
    %7 = vector.broadcast %cst : f32 to vector<1x8xf32>
    %8 = arith.subf %7, %6 : vector<1x8xf32>
    %cst_5 = arith.constant -1.000000e+09 : f32
    %9 = vector.broadcast %cst_5 : f32 to vector<1x8xf32>
    %10 = arith.mulf %8, %9 : vector<1x8xf32>
    %11 = tpu.iota {dimensions = array<i32: 0>} : vector<8x8xi32>
    %12 = tpu.iota {dimensions = array<i32: 1>} : vector<8x8xi32>
    %13 = arith.cmpi sgt, %12, %11 : vector<8x8xi32>
    %cst_6 = arith.constant -1.000000e+09 : f32
    %cst_7 = arith.constant 0.000000e+00 : f32
    %14 = vector.broadcast %cst_6 : f32 to vector<8x8xf32>
    %15 = vector.broadcast %cst_7 : f32 to vector<8x8xf32>
    %16 = arith.select %13, %14, %15 : vector<8x8xi1>, vector<8x8xf32>
    %17 = vector.broadcast %10 : vector<1x8xf32> to vector<8x8xf32>
    %18 = arith.addf %17, %16 : vector<8x8xf32>
    %cst_8 = arith.constant 0.176776692 : f32
    %19 = vector.broadcast %cst_8 : f32 to vector<8x128xf32>
    %20 = arith.mulf %2, %19 : vector<8x128xf32>
    %21 = vector.extract_strided_slice %20 {offsets = [0, 0], sizes = [8, 32], strides = [1, 1]} : vector<8x128xf32> to vector<8x32xf32>
    %22 = arith.truncf %21 : vector<8x32xf32> to vector<8x32xbf16>
    %23 = vector.extract_strided_slice %3 {offsets = [0, 0], sizes = [8, 32], strides = [1, 1]} : vector<8x128xf32> to vector<8x32xf32>
    %24 = arith.truncf %23 : vector<8x32xf32> to vector<8x32xbf16>
    %25 = vector.extract_strided_slice %4 {offsets = [0, 0], sizes = [8, 32], strides = [1, 1]} : vector<8x128xf32> to vector<8x32xf32>
    %26 = arith.truncf %25 : vector<8x32xf32> to vector<8x32xbf16>
    %cst_9 = arith.constant dense<0.000000e+00> : vector<8x8xf32>
    %27 = tpu.matmul %22, %24, %cst_9 {dimension_numbers = #tpu.dot_dimension_numbers<[1], [1], [0], [0], [0, 0, 1, 0], [], []>} : vector<8x32xbf16>, vector<8x32xbf16>, vector<8x8xf32> -> vector<8x8xf32>
    %28 = arith.addf %27, %18 : vector<8x8xf32>
    %cst_10 = arith.constant dense<0xFF800000> : vector<8xf32>
    %29 = vector.multi_reduction <maximumf>, %28, %cst_10 [1] : vector<8x8xf32> to vector<8xf32>
    %30 = vector.shape_cast %29 : vector<8xf32> to vector<8x1xf32>
    %31 = vector.broadcast %30 : vector<8x1xf32> to vector<8x8xf32>
    %32 = arith.subf %28, %31 : vector<8x8xf32>
    %33 = math.exp %32 : vector<8x8xf32>
    %cst_11 = arith.constant dense<0.000000e+00> : vector<8xf32>
    %34 = vector.multi_reduction <add>, %33, %cst_11 [1] : vector<8x8xf32> to vector<8xf32>
    %35 = vector.shape_cast %34 : vector<8xf32> to vector<8x1xf32>
    %36 = tpu.reciprocal %35 {approx = true} : vector<8x1xf32> -> vector<8x1xf32>
    %37 = vector.broadcast %36 : vector<8x1xf32> to vector<8x8xf32>
    %38 = arith.mulf %33, %37 : vector<8x8xf32>
    %39 = arith.truncf %38 : vector<8x8xf32> to vector<8x8xbf16>
    %cst_12 = arith.constant dense<0.000000e+00> : vector<8x32xf32>
    %40 = tpu.matmul %39, %26, %cst_12 {dimension_numbers = #tpu.dot_dimension_numbers<[1], [0], [0], [1], [0, 0, 1, 1], [], []>} : vector<8x8xbf16>, vector<8x32xbf16>, vector<8x32xf32> -> vector<8x32xf32>
    %41 = vector.extract_strided_slice %20 {offsets = [0, 32], sizes = [8, 32], strides = [1, 1]} : vector<8x128xf32> to vector<8x32xf32>
    %42 = arith.truncf %41 : vector<8x32xf32> to vector<8x32xbf16>
    %43 = vector.extract_strided_slice %3 {offsets = [0, 32], sizes = [8, 32], strides = [1, 1]} : vector<8x128xf32> to vector<8x32xf32>
    %44 = arith.truncf %43 : vector<8x32xf32> to vector<8x32xbf16>
    %45 = vector.extract_strided_slice %4 {offsets = [0, 32], sizes = [8, 32], strides = [1, 1]} : vector<8x128xf32> to vector<8x32xf32>
    %46 = arith.truncf %45 : vector<8x32xf32> to vector<8x32xbf16>
    %cst_13 = arith.constant dense<0.000000e+00> : vector<8x8xf32>
    %47 = tpu.matmul %42, %44, %cst_13 {dimension_numbers = #tpu.dot_dimension_numbers<[1], [1], [0], [0], [0, 0, 1, 0], [], []>} : vector<8x32xbf16>, vector<8x32xbf16>, vector<8x8xf32> -> vector<8x8xf32>
    %48 = arith.addf %47, %18 : vector<8x8xf32>
    %cst_14 = arith.constant dense<0xFF800000> : vector<8xf32>
    %49 = vector.multi_reduction <maximumf>, %48, %cst_14 [1] : vector<8x8xf32> to vector<8xf32>
    %50 = vector.shape_cast %49 : vector<8xf32> to vector<8x1xf32>
    %51 = vector.broadcast %50 : vector<8x1xf32> to vector<8x8xf32>
    %52 = arith.subf %48, %51 : vector<8x8xf32>
    %53 = math.exp %52 : vector<8x8xf32>
    %cst_15 = arith.constant dense<0.000000e+00> : vector<8xf32>
    %54 = vector.multi_reduction <add>, %53, %cst_15 [1] : vector<8x8xf32> to vector<8xf32>
    %55 = vector.shape_cast %54 : vector<8xf32> to vector<8x1xf32>
    %56 = tpu.reciprocal %55 {approx = true} : vector<8x1xf32> -> vector<8x1xf32>
    %57 = vector.broadcast %56 : vector<8x1xf32> to vector<8x8xf32>
    %58 = arith.mulf %53, %57 : vector<8x8xf32>
    %59 = arith.truncf %58 : vector<8x8xf32> to vector<8x8xbf16>
    %cst_16 = arith.constant dense<0.000000e+00> : vector<8x32xf32>
    %60 = tpu.matmul %59, %46, %cst_16 {dimension_numbers = #tpu.dot_dimension_numbers<[1], [0], [0], [1], [0, 0, 1, 1], [], []>} : vector<8x8xbf16>, vector<8x32xbf16>, vector<8x32xf32> -> vector<8x32xf32>
    %61 = vector.extract_strided_slice %20 {offsets = [0, 64], sizes = [8, 32], strides = [1, 1]} : vector<8x128xf32> to vector<8x32xf32>
    %62 = arith.truncf %61 : vector<8x32xf32> to vector<8x32xbf16>
    %63 = vector.extract_strided_slice %3 {offsets = [0, 64], sizes = [8, 32], strides = [1, 1]} : vector<8x128xf32> to vector<8x32xf32>
    %64 = arith.truncf %63 : vector<8x32xf32> to vector<8x32xbf16>
    %65 = vector.extract_strided_slice %4 {offsets = [0, 64], sizes = [8, 32], strides = [1, 1]} : vector<8x128xf32> to vector<8x32xf32>
    %66 = arith.truncf %65 : vector<8x32xf32> to vector<8x32xbf16>
    %cst_17 = arith.constant dense<0.000000e+00> : vector<8x8xf32>
    %67 = tpu.matmul %62, %64, %cst_17 {dimension_numbers = #tpu.dot_dimension_numbers<[1], [1], [0], [0], [0, 0, 1, 0], [], []>} : vector<8x32xbf16>, vector<8x32xbf16>, vector<8x8xf32> -> vector<8x8xf32>
    %68 = arith.addf %67, %18 : vector<8x8xf32>
    %cst_18 = arith.constant dense<0xFF800000> : vector<8xf32>
    %69 = vector.multi_reduction <maximumf>, %68, %cst_18 [1] : vector<8x8xf32> to vector<8xf32>
    %70 = vector.shape_cast %69 : vector<8xf32> to vector<8x1xf32>
    %71 = vector.broadcast %70 : vector<8x1xf32> to vector<8x8xf32>
    %72 = arith.subf %68, %71 : vector<8x8xf32>
    %73 = math.exp %72 : vector<8x8xf32>
    %cst_19 = arith.constant dense<0.000000e+00> : vector<8xf32>
    %74 = vector.multi_reduction <add>, %73, %cst_19 [1] : vector<8x8xf32> to vector<8xf32>
    %75 = vector.shape_cast %74 : vector<8xf32> to vector<8x1xf32>
    %76 = tpu.reciprocal %75 {approx = true} : vector<8x1xf32> -> vector<8x1xf32>
    %77 = vector.broadcast %76 : vector<8x1xf32> to vector<8x8xf32>
    %78 = arith.mulf %73, %77 : vector<8x8xf32>
    %79 = arith.truncf %78 : vector<8x8xf32> to vector<8x8xbf16>
    %cst_20 = arith.constant dense<0.000000e+00> : vector<8x32xf32>
    %80 = tpu.matmul %79, %66, %cst_20 {dimension_numbers = #tpu.dot_dimension_numbers<[1], [0], [0], [1], [0, 0, 1, 1], [], []>} : vector<8x8xbf16>, vector<8x32xbf16>, vector<8x32xf32> -> vector<8x32xf32>
    %81 = vector.extract_strided_slice %20 {offsets = [0, 96], sizes = [8, 32], strides = [1, 1]} : vector<8x128xf32> to vector<8x32xf32>
    %82 = arith.truncf %81 : vector<8x32xf32> to vector<8x32xbf16>
    %83 = vector.extract_strided_slice %3 {offsets = [0, 96], sizes = [8, 32], strides = [1, 1]} : vector<8x128xf32> to vector<8x32xf32>
    %84 = arith.truncf %83 : vector<8x32xf32> to vector<8x32xbf16>
    %85 = vector.extract_strided_slice %4 {offsets = [0, 96], sizes = [8, 32], strides = [1, 1]} : vector<8x128xf32> to vector<8x32xf32>
    %86 = arith.truncf %85 : vector<8x32xf32> to vector<8x32xbf16>
    %cst_21 = arith.constant dense<0.000000e+00> : vector<8x8xf32>
    %87 = tpu.matmul %82, %84, %cst_21 {dimension_numbers = #tpu.dot_dimension_numbers<[1], [1], [0], [0], [0, 0, 1, 0], [], []>} : vector<8x32xbf16>, vector<8x32xbf16>, vector<8x8xf32> -> vector<8x8xf32>
    %88 = arith.addf %87, %18 : vector<8x8xf32>
    %cst_22 = arith.constant dense<0xFF800000> : vector<8xf32>
    %89 = vector.multi_reduction <maximumf>, %88, %cst_22 [1] : vector<8x8xf32> to vector<8xf32>
    %90 = vector.shape_cast %89 : vector<8xf32> to vector<8x1xf32>
    %91 = vector.broadcast %90 : vector<8x1xf32> to vector<8x8xf32>
    %92 = arith.subf %88, %91 : vector<8x8xf32>
    %93 = math.exp %92 : vector<8x8xf32>
    %cst_23 = arith.constant dense<0.000000e+00> : vector<8xf32>
    %94 = vector.multi_reduction <add>, %93, %cst_23 [1] : vector<8x8xf32> to vector<8xf32>
    %95 = vector.shape_cast %94 : vector<8xf32> to vector<8x1xf32>
    %96 = tpu.reciprocal %95 {approx = true} : vector<8x1xf32> -> vector<8x1xf32>
    %97 = vector.broadcast %96 : vector<8x1xf32> to vector<8x8xf32>
    %98 = arith.mulf %93, %97 : vector<8x8xf32>
    %99 = arith.truncf %98 : vector<8x8xf32> to vector<8x8xbf16>
    %cst_24 = arith.constant dense<0.000000e+00> : vector<8x32xf32>
    %100 = tpu.matmul %99, %86, %cst_24 {dimension_numbers = #tpu.dot_dimension_numbers<[1], [0], [0], [1], [0, 0, 1, 1], [], []>} : vector<8x8xbf16>, vector<8x32xbf16>, vector<8x32xf32> -> vector<8x32xf32>
    %101 = tpu.concatenate %40, %60, %80, %100 in 1 : vector<8x32xf32>, vector<8x32xf32>, vector<8x32xf32>, vector<8x32xf32> -> vector<8x128xf32>
    %c0_25 = arith.constant 0 : index
    %c0_26 = arith.constant 0 : index
    %c0_27 = arith.constant 0 : index
    %102 = vector.load %arg3[%c0_25, %c0_26, %c0_27] : memref<1x8x128xf32, #tpu.memory_space<vmem>>, vector<1x8x128xf32>
    %103 = vector.shape_cast %102 : vector<1x8x128xf32> to vector<8x128xf32>
    %104 = vector.shape_cast %101 : vector<8x128xf32> to vector<1x8x128xf32>
    tpu.vector_store %arg3[%c0_25, %c0_26, %c0_27], %104 {strides = array<i32>} : memref<1x8x128xf32, #tpu.memory_space<vmem>>, vector<1x8x128xf32>,
    return
  }
  func.func @transform_0(%arg0: i32) -> (i32, i32, i32) {
    %c0_i32 = arith.constant 0 : i32
    %c0_i32_0 = arith.constant 0 : i32
    %c0_i32_1 = arith.constant 0 : i32
    return %arg0, %c0_i32, %c0_i32_0 : i32, i32, i32
  }
  func.func @transform_1(%arg0: i32) -> (i32, i32, i32) {
    %c0_i32 = arith.constant 0 : i32
    %c0_i32_0 = arith.constant 0 : i32
    %c0_i32_1 = arith.constant 0 : i32
    return %arg0, %c0_i32, %c0_i32_0 : i32, i32, i32
  }
  func.func @transform_2(%arg0: i32) -> (i32, i32, i32) {
    %c0_i32 = arith.constant 0 : i32
    %c0_i32_0 = arith.constant 0 : i32
    %c0_i32_1 = arith.constant 0 : i32
    return %arg0, %c0_i32, %c0_i32_0 : i32, i32, i32
  }
}

module attributes {stable_mosaic.version = 11 : i64} {
  func.func @proj_add_ln_kernel(%arg0: i32, %arg1: memref<16x128xf32, #tpu.memory_space<vmem>>, %arg2: memref<128x128xf32, #tpu.memory_space<vmem>>, %arg3: memref<1x128xf32, #tpu.memory_space<vmem>>, %arg4: memref<16x128xf32, #tpu.memory_space<vmem>>, %arg5: memref<1x128xf32, #tpu.memory_space<vmem>>, %arg6: memref<1x128xf32, #tpu.memory_space<vmem>>, %arg7: memref<16x128xf32, #tpu.memory_space<vmem>>) attributes {dimension_semantics = [#tpu.dimension_semantics<parallel>], iteration_bounds = array<i64: 1>, scalar_prefetch = 0 : i64, scratch_operands = 0 : i64, tpu.core_type = #tpu.core_type<tc>, window_params = [{transform_indices = @transform_0, window_bounds = array<i64: 16, 128>}, {pipeline_mode = #tpu.pipeline_mode<synchronous>, transform_indices = @transform_1, window_bounds = array<i64: 128, 128>}, {pipeline_mode = #tpu.pipeline_mode<synchronous>, transform_indices = @transform_2, window_bounds = array<i64: 1, 128>}, {transform_indices = @transform_3, window_bounds = array<i64: 16, 128>}, {pipeline_mode = #tpu.pipeline_mode<synchronous>, transform_indices = @transform_4, window_bounds = array<i64: 1, 128>}, {pipeline_mode = #tpu.pipeline_mode<synchronous>, transform_indices = @transform_5, window_bounds = array<i64: 1, 128>}, {transform_indices = @transform_6, window_bounds = array<i64: 16, 128>}]} {
    %c0 = arith.constant 0 : index
    %c0_0 = arith.constant 0 : index
    %0 = vector.load %arg1[%c0, %c0_0] : memref<16x128xf32, #tpu.memory_space<vmem>>, vector<16x128xf32>
    %1 = arith.truncf %0 : vector<16x128xf32> to vector<16x128xbf16>
    %c0_1 = arith.constant 0 : index
    %c0_2 = arith.constant 0 : index
    %2 = vector.load %arg2[%c0_1, %c0_2] : memref<128x128xf32, #tpu.memory_space<vmem>>, vector<128x128xf32>
    %3 = arith.truncf %2 : vector<128x128xf32> to vector<128x128xbf16>
    %cst = arith.constant dense<0.000000e+00> : vector<16x128xf32>
    %4 = tpu.matmul %1, %3, %cst {dimension_numbers = #tpu.dot_dimension_numbers<[1], [0], [0], [1], [0, 0, 1, 1], [], []>} : vector<16x128xbf16>, vector<128x128xbf16>, vector<16x128xf32> -> vector<16x128xf32>
    %c0_3 = arith.constant 0 : index
    %c0_4 = arith.constant 0 : index
    %5 = vector.load %arg3[%c0_3, %c0_4] : memref<1x128xf32, #tpu.memory_space<vmem>>, vector<1x128xf32>
    %6 = vector.broadcast %5 : vector<1x128xf32> to vector<16x128xf32>
    %7 = arith.addf %4, %6 : vector<16x128xf32>
    %c0_5 = arith.constant 0 : index
    %c0_6 = arith.constant 0 : index
    %8 = vector.load %arg4[%c0_5, %c0_6] : memref<16x128xf32, #tpu.memory_space<vmem>>, vector<16x128xf32>
    %9 = arith.addf %7, %8 : vector<16x128xf32>
    %c0_7 = arith.constant 0 : index
    %c0_8 = arith.constant 0 : index
    %10 = vector.load %arg5[%c0_7, %c0_8] : memref<1x128xf32, #tpu.memory_space<vmem>>, vector<1x128xf32>
    %c0_9 = arith.constant 0 : index
    %c0_10 = arith.constant 0 : index
    %11 = vector.load %arg6[%c0_9, %c0_10] : memref<1x128xf32, #tpu.memory_space<vmem>>, vector<1x128xf32>
    %cst_11 = arith.constant dense<0.000000e+00> : vector<16xf32>
    %12 = vector.multi_reduction <add>, %9, %cst_11 [1] : vector<16x128xf32> to vector<16xf32>
    %13 = vector.shape_cast %12 : vector<16xf32> to vector<16x1xf32>
    %cst_12 = arith.constant 1.280000e+02 : f32
    %14 = vector.broadcast %cst_12 : f32 to vector<16x1xf32>
    %15 = arith.divf %13, %14 : vector<16x1xf32>
    %16 = vector.broadcast %15 : vector<16x1xf32> to vector<16x128xf32>
    %17 = arith.subf %9, %16 : vector<16x128xf32>
    %18 = arith.mulf %17, %17 : vector<16x128xf32>
    %cst_13 = arith.constant dense<0.000000e+00> : vector<16xf32>
    %19 = vector.multi_reduction <add>, %18, %cst_13 [1] : vector<16x128xf32> to vector<16xf32>
    %20 = vector.shape_cast %19 : vector<16xf32> to vector<16x1xf32>
    %cst_14 = arith.constant 1.280000e+02 : f32
    %21 = vector.broadcast %cst_14 : f32 to vector<16x1xf32>
    %22 = arith.divf %20, %21 : vector<16x1xf32>
    %23 = vector.broadcast %15 : vector<16x1xf32> to vector<16x128xf32>
    %24 = arith.subf %9, %23 : vector<16x128xf32>
    %cst_15 = arith.constant 9.99999974E-6 : f32
    %25 = vector.broadcast %cst_15 : f32 to vector<16x1xf32>
    %26 = arith.addf %22, %25 : vector<16x1xf32>
    %27 = math.rsqrt %26 : vector<16x1xf32>
    %28 = vector.broadcast %27 : vector<16x1xf32> to vector<16x128xf32>
    %29 = arith.mulf %24, %28 : vector<16x128xf32>
    %30 = vector.broadcast %10 : vector<1x128xf32> to vector<16x128xf32>
    %31 = arith.mulf %29, %30 : vector<16x128xf32>
    %32 = vector.broadcast %11 : vector<1x128xf32> to vector<16x128xf32>
    %33 = arith.addf %31, %32 : vector<16x128xf32>
    %c0_16 = arith.constant 0 : index
    %c0_17 = arith.constant 0 : index
    %34 = vector.load %arg7[%c0_16, %c0_17] : memref<16x128xf32, #tpu.memory_space<vmem>>, vector<16x128xf32>
    tpu.vector_store %arg7[%c0_16, %c0_17], %33 {strides = array<i32>} : memref<16x128xf32, #tpu.memory_space<vmem>>, vector<16x128xf32>,
    return
  }
  func.func @transform_0(%arg0: i32) -> (i32, i32) {
    %c0_i32 = arith.constant 0 : i32
    %c0_i32_0 = arith.constant 0 : i32
    return %arg0, %c0_i32 : i32, i32
  }
  func.func @transform_1(%arg0: i32) -> (i32, i32) {
    %c0_i32 = arith.constant 0 : i32
    %c0_i32_0 = arith.constant 0 : i32
    %c0_i32_1 = arith.constant 0 : i32
    return %c0_i32, %c0_i32_0 : i32, i32
  }
  func.func @transform_2(%arg0: i32) -> (i32, i32) {
    %c0_i32 = arith.constant 0 : i32
    %c0_i32_0 = arith.constant 0 : i32
    %c0_i32_1 = arith.constant 0 : i32
    return %c0_i32, %c0_i32_0 : i32, i32
  }
  func.func @transform_3(%arg0: i32) -> (i32, i32) {
    %c0_i32 = arith.constant 0 : i32
    %c0_i32_0 = arith.constant 0 : i32
    return %arg0, %c0_i32 : i32, i32
  }
  func.func @transform_4(%arg0: i32) -> (i32, i32) {
    %c0_i32 = arith.constant 0 : i32
    %c0_i32_0 = arith.constant 0 : i32
    %c0_i32_1 = arith.constant 0 : i32
    return %c0_i32, %c0_i32_0 : i32, i32
  }
  func.func @transform_5(%arg0: i32) -> (i32, i32) {
    %c0_i32 = arith.constant 0 : i32
    %c0_i32_0 = arith.constant 0 : i32
    %c0_i32_1 = arith.constant 0 : i32
    return %c0_i32, %c0_i32_0 : i32, i32
  }
  func.func @transform_6(%arg0: i32) -> (i32, i32) {
    %c0_i32 = arith.constant 0 : i32
    %c0_i32_0 = arith.constant 0 : i32
    return %arg0, %c0_i32 : i32, i32
  }
}

module attributes {stable_mosaic.version = 11 : i64} {
  func.func @linear_kernel(%arg0: i32, %arg1: memref<16x128xf32, #tpu.memory_space<vmem>>, %arg2: memref<128x128xf32, #tpu.memory_space<vmem>>, %arg3: memref<1x128xf32, #tpu.memory_space<vmem>>, %arg4: memref<16x128xf32, #tpu.memory_space<vmem>>) attributes {dimension_semantics = [#tpu.dimension_semantics<parallel>], iteration_bounds = array<i64: 1>, scalar_prefetch = 0 : i64, scratch_operands = 0 : i64, tpu.core_type = #tpu.core_type<tc>, window_params = [{transform_indices = @transform_0, window_bounds = array<i64: 16, 128>}, {pipeline_mode = #tpu.pipeline_mode<synchronous>, transform_indices = @transform_1, window_bounds = array<i64: 128, 128>}, {pipeline_mode = #tpu.pipeline_mode<synchronous>, transform_indices = @transform_2, window_bounds = array<i64: 1, 128>}, {transform_indices = @transform_3, window_bounds = array<i64: 16, 128>}]} {
    %c0 = arith.constant 0 : index
    %c0_0 = arith.constant 0 : index
    %0 = vector.load %arg1[%c0, %c0_0] : memref<16x128xf32, #tpu.memory_space<vmem>>, vector<16x128xf32>
    %1 = arith.truncf %0 : vector<16x128xf32> to vector<16x128xbf16>
    %c0_1 = arith.constant 0 : index
    %c0_2 = arith.constant 0 : index
    %2 = vector.load %arg2[%c0_1, %c0_2] : memref<128x128xf32, #tpu.memory_space<vmem>>, vector<128x128xf32>
    %3 = arith.truncf %2 : vector<128x128xf32> to vector<128x128xbf16>
    %cst = arith.constant dense<0.000000e+00> : vector<16x128xf32>
    %4 = tpu.matmul %1, %3, %cst {dimension_numbers = #tpu.dot_dimension_numbers<[1], [0], [0], [1], [0, 0, 1, 1], [], []>} : vector<16x128xbf16>, vector<128x128xbf16>, vector<16x128xf32> -> vector<16x128xf32>
    %c0_3 = arith.constant 0 : index
    %c0_4 = arith.constant 0 : index
    %5 = vector.load %arg3[%c0_3, %c0_4] : memref<1x128xf32, #tpu.memory_space<vmem>>, vector<1x128xf32>
    %6 = vector.broadcast %5 : vector<1x128xf32> to vector<16x128xf32>
    %7 = arith.addf %4, %6 : vector<16x128xf32>
    %c0_5 = arith.constant 0 : index
    %c0_6 = arith.constant 0 : index
    %8 = vector.load %arg4[%c0_5, %c0_6] : memref<16x128xf32, #tpu.memory_space<vmem>>, vector<16x128xf32>
    tpu.vector_store %arg4[%c0_5, %c0_6], %7 {strides = array<i32>} : memref<16x128xf32, #tpu.memory_space<vmem>>, vector<16x128xf32>,
    return
  }
  func.func @transform_0(%arg0: i32) -> (i32, i32) {
    %c0_i32 = arith.constant 0 : i32
    %c0_i32_0 = arith.constant 0 : i32
    return %arg0, %c0_i32 : i32, i32
  }
  func.func @transform_1(%arg0: i32) -> (i32, i32) {
    %c0_i32 = arith.constant 0 : i32
    %c0_i32_0 = arith.constant 0 : i32
    %c0_i32_1 = arith.constant 0 : i32
    return %c0_i32, %c0_i32_0 : i32, i32
  }
  func.func @transform_2(%arg0: i32) -> (i32, i32) {
    %c0_i32 = arith.constant 0 : i32
    %c0_i32_0 = arith.constant 0 : i32
    %c0_i32_1 = arith.constant 0 : i32
    return %c0_i32, %c0_i32_0 : i32, i32
  }
  func.func @transform_3(%arg0: i32) -> (i32, i32) {
    %c0_i32 = arith.constant 0 : i32
    %c0_i32_0 = arith.constant 0 : i32
    return %arg0, %c0_i32 : i32, i32
  }
}

module attributes {stable_mosaic.version = 11 : i64} {
  func.func @ffn_add_ln_kernel(%arg0: i32, %arg1: memref<16x128xf32, #tpu.memory_space<vmem>>, %arg2: memref<128x128xf32, #tpu.memory_space<vmem>>, %arg3: memref<1x128xf32, #tpu.memory_space<vmem>>, %arg4: memref<128x128xf32, #tpu.memory_space<vmem>>, %arg5: memref<1x128xf32, #tpu.memory_space<vmem>>, %arg6: memref<1x128xf32, #tpu.memory_space<vmem>>, %arg7: memref<1x128xf32, #tpu.memory_space<vmem>>, %arg8: memref<16x128xf32, #tpu.memory_space<vmem>>) attributes {dimension_semantics = [#tpu.dimension_semantics<parallel>], iteration_bounds = array<i64: 1>, scalar_prefetch = 0 : i64, scratch_operands = 0 : i64, tpu.core_type = #tpu.core_type<tc>, window_params = [{transform_indices = @transform_0, window_bounds = array<i64: 16, 128>}, {pipeline_mode = #tpu.pipeline_mode<synchronous>, transform_indices = @transform_1, window_bounds = array<i64: 128, 128>}, {pipeline_mode = #tpu.pipeline_mode<synchronous>, transform_indices = @transform_2, window_bounds = array<i64: 1, 128>}, {pipeline_mode = #tpu.pipeline_mode<synchronous>, transform_indices = @transform_3, window_bounds = array<i64: 128, 128>}, {pipeline_mode = #tpu.pipeline_mode<synchronous>, transform_indices = @transform_4, window_bounds = array<i64: 1, 128>}, {pipeline_mode = #tpu.pipeline_mode<synchronous>, transform_indices = @transform_5, window_bounds = array<i64: 1, 128>}, {pipeline_mode = #tpu.pipeline_mode<synchronous>, transform_indices = @transform_6, window_bounds = array<i64: 1, 128>}, {transform_indices = @transform_7, window_bounds = array<i64: 16, 128>}]} {
    %c0 = arith.constant 0 : index
    %c0_0 = arith.constant 0 : index
    %0 = vector.load %arg1[%c0, %c0_0] : memref<16x128xf32, #tpu.memory_space<vmem>>, vector<16x128xf32>
    %1 = arith.truncf %0 : vector<16x128xf32> to vector<16x128xbf16>
    %c0_1 = arith.constant 0 : index
    %c0_2 = arith.constant 0 : index
    %2 = vector.load %arg2[%c0_1, %c0_2] : memref<128x128xf32, #tpu.memory_space<vmem>>, vector<128x128xf32>
    %3 = arith.truncf %2 : vector<128x128xf32> to vector<128x128xbf16>
    %cst = arith.constant dense<0.000000e+00> : vector<16x128xf32>
    %4 = tpu.matmul %1, %3, %cst {dimension_numbers = #tpu.dot_dimension_numbers<[1], [0], [0], [1], [0, 0, 1, 1], [], []>} : vector<16x128xbf16>, vector<128x128xbf16>, vector<16x128xf32> -> vector<16x128xf32>
    %c0_3 = arith.constant 0 : index
    %c0_4 = arith.constant 0 : index
    %5 = vector.load %arg3[%c0_3, %c0_4] : memref<1x128xf32, #tpu.memory_space<vmem>>, vector<1x128xf32>
    %6 = vector.broadcast %5 : vector<1x128xf32> to vector<16x128xf32>
    %7 = arith.addf %4, %6 : vector<16x128xf32>
    %8 = arith.mulf %7, %7 : vector<16x128xf32>
    %9 = arith.mulf %7, %8 : vector<16x128xf32>
    %cst_5 = arith.constant 4.471500e-02 : f32
    %10 = vector.broadcast %cst_5 : f32 to vector<16x128xf32>
    %11 = arith.mulf %10, %9 : vector<16x128xf32>
    %12 = arith.addf %7, %11 : vector<16x128xf32>
    %cst_6 = arith.constant 0.797884583 : f32
    %13 = vector.broadcast %cst_6 : f32 to vector<16x128xf32>
    %14 = arith.mulf %13, %12 : vector<16x128xf32>
    %15 = math.tanh %14 : vector<16x128xf32>
    %cst_7 = arith.constant 1.000000e+00 : f32
    %16 = vector.broadcast %cst_7 : f32 to vector<16x128xf32>
    %17 = arith.addf %16, %15 : vector<16x128xf32>
    %cst_8 = arith.constant 5.000000e-01 : f32
    %18 = vector.broadcast %cst_8 : f32 to vector<16x128xf32>
    %19 = arith.mulf %18, %17 : vector<16x128xf32>
    %20 = arith.mulf %7, %19 : vector<16x128xf32>
    %21 = arith.truncf %20 : vector<16x128xf32> to vector<16x128xbf16>
    %c0_9 = arith.constant 0 : index
    %c0_10 = arith.constant 0 : index
    %22 = vector.load %arg4[%c0_9, %c0_10] : memref<128x128xf32, #tpu.memory_space<vmem>>, vector<128x128xf32>
    %23 = arith.truncf %22 : vector<128x128xf32> to vector<128x128xbf16>
    %cst_11 = arith.constant dense<0.000000e+00> : vector<16x128xf32>
    %24 = tpu.matmul %21, %23, %cst_11 {dimension_numbers = #tpu.dot_dimension_numbers<[1], [0], [0], [1], [0, 0, 1, 1], [], []>} : vector<16x128xbf16>, vector<128x128xbf16>, vector<16x128xf32> -> vector<16x128xf32>
    %c0_12 = arith.constant 0 : index
    %c0_13 = arith.constant 0 : index
    %25 = vector.load %arg5[%c0_12, %c0_13] : memref<1x128xf32, #tpu.memory_space<vmem>>, vector<1x128xf32>
    %26 = vector.broadcast %25 : vector<1x128xf32> to vector<16x128xf32>
    %27 = arith.addf %24, %26 : vector<16x128xf32>
    %28 = arith.addf %27, %0 : vector<16x128xf32>
    %c0_14 = arith.constant 0 : index
    %c0_15 = arith.constant 0 : index
    %29 = vector.load %arg6[%c0_14, %c0_15] : memref<1x128xf32, #tpu.memory_space<vmem>>, vector<1x128xf32>
    %c0_16 = arith.constant 0 : index
    %c0_17 = arith.constant 0 : index
    %30 = vector.load %arg7[%c0_16, %c0_17] : memref<1x128xf32, #tpu.memory_space<vmem>>, vector<1x128xf32>
    %cst_18 = arith.constant dense<0.000000e+00> : vector<16xf32>
    %31 = vector.multi_reduction <add>, %28, %cst_18 [1] : vector<16x128xf32> to vector<16xf32>
    %32 = vector.shape_cast %31 : vector<16xf32> to vector<16x1xf32>
    %cst_19 = arith.constant 1.280000e+02 : f32
    %33 = vector.broadcast %cst_19 : f32 to vector<16x1xf32>
    %34 = arith.divf %32, %33 : vector<16x1xf32>
    %35 = vector.broadcast %34 : vector<16x1xf32> to vector<16x128xf32>
    %36 = arith.subf %28, %35 : vector<16x128xf32>
    %37 = arith.mulf %36, %36 : vector<16x128xf32>
    %cst_20 = arith.constant dense<0.000000e+00> : vector<16xf32>
    %38 = vector.multi_reduction <add>, %37, %cst_20 [1] : vector<16x128xf32> to vector<16xf32>
    %39 = vector.shape_cast %38 : vector<16xf32> to vector<16x1xf32>
    %cst_21 = arith.constant 1.280000e+02 : f32
    %40 = vector.broadcast %cst_21 : f32 to vector<16x1xf32>
    %41 = arith.divf %39, %40 : vector<16x1xf32>
    %42 = vector.broadcast %34 : vector<16x1xf32> to vector<16x128xf32>
    %43 = arith.subf %28, %42 : vector<16x128xf32>
    %cst_22 = arith.constant 9.99999974E-6 : f32
    %44 = vector.broadcast %cst_22 : f32 to vector<16x1xf32>
    %45 = arith.addf %41, %44 : vector<16x1xf32>
    %46 = math.rsqrt %45 : vector<16x1xf32>
    %47 = vector.broadcast %46 : vector<16x1xf32> to vector<16x128xf32>
    %48 = arith.mulf %43, %47 : vector<16x128xf32>
    %49 = vector.broadcast %29 : vector<1x128xf32> to vector<16x128xf32>
    %50 = arith.mulf %48, %49 : vector<16x128xf32>
    %51 = vector.broadcast %30 : vector<1x128xf32> to vector<16x128xf32>
    %52 = arith.addf %50, %51 : vector<16x128xf32>
    %c0_23 = arith.constant 0 : index
    %c0_24 = arith.constant 0 : index
    %53 = vector.load %arg8[%c0_23, %c0_24] : memref<16x128xf32, #tpu.memory_space<vmem>>, vector<16x128xf32>
    tpu.vector_store %arg8[%c0_23, %c0_24], %52 {strides = array<i32>} : memref<16x128xf32, #tpu.memory_space<vmem>>, vector<16x128xf32>,
    return
  }
  func.func @transform_0(%arg0: i32) -> (i32, i32) {
    %c0_i32 = arith.constant 0 : i32
    %c0_i32_0 = arith.constant 0 : i32
    return %arg0, %c0_i32 : i32, i32
  }
  func.func @transform_1(%arg0: i32) -> (i32, i32) {
    %c0_i32 = arith.constant 0 : i32
    %c0_i32_0 = arith.constant 0 : i32
    %c0_i32_1 = arith.constant 0 : i32
    return %c0_i32, %c0_i32_0 : i32, i32
  }
  func.func @transform_2(%arg0: i32) -> (i32, i32) {
    %c0_i32 = arith.constant 0 : i32
    %c0_i32_0 = arith.constant 0 : i32
    %c0_i32_1 = arith.constant 0 : i32
    return %c0_i32, %c0_i32_0 : i32, i32
  }
  func.func @transform_3(%arg0: i32) -> (i32, i32) {
    %c0_i32 = arith.constant 0 : i32
    %c0_i32_0 = arith.constant 0 : i32
    %c0_i32_1 = arith.constant 0 : i32
    return %c0_i32, %c0_i32_0 : i32, i32
  }
  func.func @transform_4(%arg0: i32) -> (i32, i32) {
    %c0_i32 = arith.constant 0 : i32
    %c0_i32_0 = arith.constant 0 : i32
    %c0_i32_1 = arith.constant 0 : i32
    return %c0_i32, %c0_i32_0 : i32, i32
  }
  func.func @transform_5(%arg0: i32) -> (i32, i32) {
    %c0_i32 = arith.constant 0 : i32
    %c0_i32_0 = arith.constant 0 : i32
    %c0_i32_1 = arith.constant 0 : i32
    return %c0_i32, %c0_i32_0 : i32, i32
  }
  func.func @transform_6(%arg0: i32) -> (i32, i32) {
    %c0_i32 = arith.constant 0 : i32
    %c0_i32_0 = arith.constant 0 : i32
    %c0_i32_1 = arith.constant 0 : i32
    return %c0_i32, %c0_i32_0 : i32, i32
  }
  func.func @transform_7(%arg0: i32) -> (i32, i32) {
    %c0_i32 = arith.constant 0 : i32
    %c0_i32_0 = arith.constant 0 : i32
    return %arg0, %c0_i32 : i32, i32
  }
}

module attributes {stable_mosaic.version = 11 : i64} {
  func.func @cross_attn_kernel(%arg0: i32, %arg1: memref<1x8x128xf32, #tpu.memory_space<vmem>>, %arg2: memref<1x16x256xf32, #tpu.memory_space<vmem>>, %arg3: memref<1x1x16xf32, #tpu.memory_space<vmem>>, %arg4: memref<1x8x128xf32, #tpu.memory_space<vmem>>) attributes {dimension_semantics = [#tpu.dimension_semantics<parallel>], iteration_bounds = array<i64: 2>, scalar_prefetch = 0 : i64, scratch_operands = 0 : i64, tpu.core_type = #tpu.core_type<tc>, window_params = [{transform_indices = @transform_0, window_bounds = array<i64: 1, 8, 128>}, {transform_indices = @transform_1, window_bounds = array<i64: 1, 16, 256>}, {transform_indices = @transform_2, window_bounds = array<i64: 1, 1, 16>}, {transform_indices = @transform_3, window_bounds = array<i64: 1, 8, 128>}]} {
    %c0 = arith.constant 0 : index
    %c0_0 = arith.constant 0 : index
    %c0_1 = arith.constant 0 : index
    %0 = vector.load %arg1[%c0, %c0_0, %c0_1] : memref<1x8x128xf32, #tpu.memory_space<vmem>>, vector<1x8x128xf32>
    %1 = vector.shape_cast %0 : vector<1x8x128xf32> to vector<8x128xf32>
    %c0_2 = arith.constant 0 : index
    %c0_3 = arith.constant 0 : index
    %c0_4 = arith.constant 0 : index
    %2 = vector.load %arg2[%c0_2, %c0_3, %c0_4] : memref<1x16x256xf32, #tpu.memory_space<vmem>>, vector<1x16x256xf32>
    %3 = vector.shape_cast %2 : vector<1x16x256xf32> to vector<16x256xf32>
    %4 = vector.extract_strided_slice %3 {offsets = [0, 0], sizes = [16, 128], strides = [1, 1]} : vector<16x256xf32> to vector<16x128xf32>
    %5 = vector.extract_strided_slice %3 {offsets = [0, 128], sizes = [16, 128], strides = [1, 1]} : vector<16x256xf32> to vector<16x128xf32>
    %c0_5 = arith.constant 0 : index
    %c0_6 = arith.constant 0 : index
    %c0_7 = arith.constant 0 : index
    %6 = vector.load %arg3[%c0_5, %c0_6, %c0_7] : memref<1x1x16xf32, #tpu.memory_space<vmem>>, vector<1x1x16xf32>
    %7 = vector.shape_cast %6 : vector<1x1x16xf32> to vector<1x16xf32>
    %cst = arith.constant 1.000000e+00 : f32
    %8 = vector.broadcast %cst : f32 to vector<1x16xf32>
    %9 = arith.subf %8, %7 : vector<1x16xf32>
    %cst_8 = arith.constant -1.000000e+09 : f32
    %10 = vector.broadcast %cst_8 : f32 to vector<1x16xf32>
    %11 = arith.mulf %9, %10 : vector<1x16xf32>
    %cst_9 = arith.constant 0.176776692 : f32
    %12 = vector.broadcast %cst_9 : f32 to vector<8x128xf32>
    %13 = arith.mulf %1, %12 : vector<8x128xf32>
    %14 = vector.extract_strided_slice %13 {offsets = [0, 0], sizes = [8, 32], strides = [1, 1]} : vector<8x128xf32> to vector<8x32xf32>
    %15 = arith.truncf %14 : vector<8x32xf32> to vector<8x32xbf16>
    %16 = vector.extract_strided_slice %4 {offsets = [0, 0], sizes = [16, 32], strides = [1, 1]} : vector<16x128xf32> to vector<16x32xf32>
    %17 = arith.truncf %16 : vector<16x32xf32> to vector<16x32xbf16>
    %18 = vector.extract_strided_slice %5 {offsets = [0, 0], sizes = [16, 32], strides = [1, 1]} : vector<16x128xf32> to vector<16x32xf32>
    %19 = arith.truncf %18 : vector<16x32xf32> to vector<16x32xbf16>
    %cst_10 = arith.constant dense<0.000000e+00> : vector<8x16xf32>
    %20 = tpu.matmul %15, %17, %cst_10 {dimension_numbers = #tpu.dot_dimension_numbers<[1], [1], [0], [0], [0, 0, 1, 0], [], []>} : vector<8x32xbf16>, vector<16x32xbf16>, vector<8x16xf32> -> vector<8x16xf32>
    %21 = vector.broadcast %11 : vector<1x16xf32> to vector<8x16xf32>
    %22 = arith.addf %20, %21 : vector<8x16xf32>
    %cst_11 = arith.constant dense<0xFF800000> : vector<8xf32>
    %23 = vector.multi_reduction <maximumf>, %22, %cst_11 [1] : vector<8x16xf32> to vector<8xf32>
    %24 = vector.shape_cast %23 : vector<8xf32> to vector<8x1xf32>
    %25 = vector.broadcast %24 : vector<8x1xf32> to vector<8x16xf32>
    %26 = arith.subf %22, %25 : vector<8x16xf32>
    %27 = math.exp %26 : vector<8x16xf32>
    %cst_12 = arith.constant dense<0.000000e+00> : vector<8xf32>
    %28 = vector.multi_reduction <add>, %27, %cst_12 [1] : vector<8x16xf32> to vector<8xf32>
    %29 = vector.shape_cast %28 : vector<8xf32> to vector<8x1xf32>
    %30 = tpu.reciprocal %29 {approx = true} : vector<8x1xf32> -> vector<8x1xf32>
    %31 = vector.broadcast %30 : vector<8x1xf32> to vector<8x16xf32>
    %32 = arith.mulf %27, %31 : vector<8x16xf32>
    %33 = arith.truncf %32 : vector<8x16xf32> to vector<8x16xbf16>
    %cst_13 = arith.constant dense<0.000000e+00> : vector<8x32xf32>
    %34 = tpu.matmul %33, %19, %cst_13 {dimension_numbers = #tpu.dot_dimension_numbers<[1], [0], [0], [1], [0, 0, 1, 1], [], []>} : vector<8x16xbf16>, vector<16x32xbf16>, vector<8x32xf32> -> vector<8x32xf32>
    %35 = vector.extract_strided_slice %13 {offsets = [0, 32], sizes = [8, 32], strides = [1, 1]} : vector<8x128xf32> to vector<8x32xf32>
    %36 = arith.truncf %35 : vector<8x32xf32> to vector<8x32xbf16>
    %37 = vector.extract_strided_slice %4 {offsets = [0, 32], sizes = [16, 32], strides = [1, 1]} : vector<16x128xf32> to vector<16x32xf32>
    %38 = arith.truncf %37 : vector<16x32xf32> to vector<16x32xbf16>
    %39 = vector.extract_strided_slice %5 {offsets = [0, 32], sizes = [16, 32], strides = [1, 1]} : vector<16x128xf32> to vector<16x32xf32>
    %40 = arith.truncf %39 : vector<16x32xf32> to vector<16x32xbf16>
    %cst_14 = arith.constant dense<0.000000e+00> : vector<8x16xf32>
    %41 = tpu.matmul %36, %38, %cst_14 {dimension_numbers = #tpu.dot_dimension_numbers<[1], [1], [0], [0], [0, 0, 1, 0], [], []>} : vector<8x32xbf16>, vector<16x32xbf16>, vector<8x16xf32> -> vector<8x16xf32>
    %42 = vector.broadcast %11 : vector<1x16xf32> to vector<8x16xf32>
    %43 = arith.addf %41, %42 : vector<8x16xf32>
    %cst_15 = arith.constant dense<0xFF800000> : vector<8xf32>
    %44 = vector.multi_reduction <maximumf>, %43, %cst_15 [1] : vector<8x16xf32> to vector<8xf32>
    %45 = vector.shape_cast %44 : vector<8xf32> to vector<8x1xf32>
    %46 = vector.broadcast %45 : vector<8x1xf32> to vector<8x16xf32>
    %47 = arith.subf %43, %46 : vector<8x16xf32>
    %48 = math.exp %47 : vector<8x16xf32>
    %cst_16 = arith.constant dense<0.000000e+00> : vector<8xf32>
    %49 = vector.multi_reduction <add>, %48, %cst_16 [1] : vector<8x16xf32> to vector<8xf32>
    %50 = vector.shape_cast %49 : vector<8xf32> to vector<8x1xf32>
    %51 = tpu.reciprocal %50 {approx = true} : vector<8x1xf32> -> vector<8x1xf32>
    %52 = vector.broadcast %51 : vector<8x1xf32> to vector<8x16xf32>
    %53 = arith.mulf %48, %52 : vector<8x16xf32>
    %54 = arith.truncf %53 : vector<8x16xf32> to vector<8x16xbf16>
    %cst_17 = arith.constant dense<0.000000e+00> : vector<8x32xf32>
    %55 = tpu.matmul %54, %40, %cst_17 {dimension_numbers = #tpu.dot_dimension_numbers<[1], [0], [0], [1], [0, 0, 1, 1], [], []>} : vector<8x16xbf16>, vector<16x32xbf16>, vector<8x32xf32> -> vector<8x32xf32>
    %56 = vector.extract_strided_slice %13 {offsets = [0, 64], sizes = [8, 32], strides = [1, 1]} : vector<8x128xf32> to vector<8x32xf32>
    %57 = arith.truncf %56 : vector<8x32xf32> to vector<8x32xbf16>
    %58 = vector.extract_strided_slice %4 {offsets = [0, 64], sizes = [16, 32], strides = [1, 1]} : vector<16x128xf32> to vector<16x32xf32>
    %59 = arith.truncf %58 : vector<16x32xf32> to vector<16x32xbf16>
    %60 = vector.extract_strided_slice %5 {offsets = [0, 64], sizes = [16, 32], strides = [1, 1]} : vector<16x128xf32> to vector<16x32xf32>
    %61 = arith.truncf %60 : vector<16x32xf32> to vector<16x32xbf16>
    %cst_18 = arith.constant dense<0.000000e+00> : vector<8x16xf32>
    %62 = tpu.matmul %57, %59, %cst_18 {dimension_numbers = #tpu.dot_dimension_numbers<[1], [1], [0], [0], [0, 0, 1, 0], [], []>} : vector<8x32xbf16>, vector<16x32xbf16>, vector<8x16xf32> -> vector<8x16xf32>
    %63 = vector.broadcast %11 : vector<1x16xf32> to vector<8x16xf32>
    %64 = arith.addf %62, %63 : vector<8x16xf32>
    %cst_19 = arith.constant dense<0xFF800000> : vector<8xf32>
    %65 = vector.multi_reduction <maximumf>, %64, %cst_19 [1] : vector<8x16xf32> to vector<8xf32>
    %66 = vector.shape_cast %65 : vector<8xf32> to vector<8x1xf32>
    %67 = vector.broadcast %66 : vector<8x1xf32> to vector<8x16xf32>
    %68 = arith.subf %64, %67 : vector<8x16xf32>
    %69 = math.exp %68 : vector<8x16xf32>
    %cst_20 = arith.constant dense<0.000000e+00> : vector<8xf32>
    %70 = vector.multi_reduction <add>, %69, %cst_20 [1] : vector<8x16xf32> to vector<8xf32>
    %71 = vector.shape_cast %70 : vector<8xf32> to vector<8x1xf32>
    %72 = tpu.reciprocal %71 {approx = true} : vector<8x1xf32> -> vector<8x1xf32>
    %73 = vector.broadcast %72 : vector<8x1xf32> to vector<8x16xf32>
    %74 = arith.mulf %69, %73 : vector<8x16xf32>
    %75 = arith.truncf %74 : vector<8x16xf32> to vector<8x16xbf16>
    %cst_21 = arith.constant dense<0.000000e+00> : vector<8x32xf32>
    %76 = tpu.matmul %75, %61, %cst_21 {dimension_numbers = #tpu.dot_dimension_numbers<[1], [0], [0], [1], [0, 0, 1, 1], [], []>} : vector<8x16xbf16>, vector<16x32xbf16>, vector<8x32xf32> -> vector<8x32xf32>
    %77 = vector.extract_strided_slice %13 {offsets = [0, 96], sizes = [8, 32], strides = [1, 1]} : vector<8x128xf32> to vector<8x32xf32>
    %78 = arith.truncf %77 : vector<8x32xf32> to vector<8x32xbf16>
    %79 = vector.extract_strided_slice %4 {offsets = [0, 96], sizes = [16, 32], strides = [1, 1]} : vector<16x128xf32> to vector<16x32xf32>
    %80 = arith.truncf %79 : vector<16x32xf32> to vector<16x32xbf16>
    %81 = vector.extract_strided_slice %5 {offsets = [0, 96], sizes = [16, 32], strides = [1, 1]} : vector<16x128xf32> to vector<16x32xf32>
    %82 = arith.truncf %81 : vector<16x32xf32> to vector<16x32xbf16>
    %cst_22 = arith.constant dense<0.000000e+00> : vector<8x16xf32>
    %83 = tpu.matmul %78, %80, %cst_22 {dimension_numbers = #tpu.dot_dimension_numbers<[1], [1], [0], [0], [0, 0, 1, 0], [], []>} : vector<8x32xbf16>, vector<16x32xbf16>, vector<8x16xf32> -> vector<8x16xf32>
    %84 = vector.broadcast %11 : vector<1x16xf32> to vector<8x16xf32>
    %85 = arith.addf %83, %84 : vector<8x16xf32>
    %cst_23 = arith.constant dense<0xFF800000> : vector<8xf32>
    %86 = vector.multi_reduction <maximumf>, %85, %cst_23 [1] : vector<8x16xf32> to vector<8xf32>
    %87 = vector.shape_cast %86 : vector<8xf32> to vector<8x1xf32>
    %88 = vector.broadcast %87 : vector<8x1xf32> to vector<8x16xf32>
    %89 = arith.subf %85, %88 : vector<8x16xf32>
    %90 = math.exp %89 : vector<8x16xf32>
    %cst_24 = arith.constant dense<0.000000e+00> : vector<8xf32>
    %91 = vector.multi_reduction <add>, %90, %cst_24 [1] : vector<8x16xf32> to vector<8xf32>
    %92 = vector.shape_cast %91 : vector<8xf32> to vector<8x1xf32>
    %93 = tpu.reciprocal %92 {approx = true} : vector<8x1xf32> -> vector<8x1xf32>
    %94 = vector.broadcast %93 : vector<8x1xf32> to vector<8x16xf32>
    %95 = arith.mulf %90, %94 : vector<8x16xf32>
    %96 = arith.truncf %95 : vector<8x16xf32> to vector<8x16xbf16>
    %cst_25 = arith.constant dense<0.000000e+00> : vector<8x32xf32>
    %97 = tpu.matmul %96, %82, %cst_25 {dimension_numbers = #tpu.dot_dimension_numbers<[1], [0], [0], [1], [0, 0, 1, 1], [], []>} : vector<8x16xbf16>, vector<16x32xbf16>, vector<8x32xf32> -> vector<8x32xf32>
    %98 = tpu.concatenate %34, %55, %76, %97 in 1 : vector<8x32xf32>, vector<8x32xf32>, vector<8x32xf32>, vector<8x32xf32> -> vector<8x128xf32>
    %c0_26 = arith.constant 0 : index
    %c0_27 = arith.constant 0 : index
    %c0_28 = arith.constant 0 : index
    %99 = vector.load %arg4[%c0_26, %c0_27, %c0_28] : memref<1x8x128xf32, #tpu.memory_space<vmem>>, vector<1x8x128xf32>
    %100 = vector.shape_cast %99 : vector<1x8x128xf32> to vector<8x128xf32>
    %101 = vector.shape_cast %98 : vector<8x128xf32> to vector<1x8x128xf32>
    tpu.vector_store %arg4[%c0_26, %c0_27, %c0_28], %101 {strides = array<i32>} : memref<1x8x128xf32, #tpu.memory_space<vmem>>, vector<1x8x128xf32>,
    return
  }
  func.func @transform_0(%arg0: i32) -> (i32, i32, i32) {
    %c0_i32 = arith.constant 0 : i32
    %c0_i32_0 = arith.constant 0 : i32
    %c0_i32_1 = arith.constant 0 : i32
    return %arg0, %c0_i32, %c0_i32_0 : i32, i32, i32
  }
  func.func @transform_1(%arg0: i32) -> (i32, i32, i32) {
    %c0_i32 = arith.constant 0 : i32
    %c0_i32_0 = arith.constant 0 : i32
    %c0_i32_1 = arith.constant 0 : i32
    return %arg0, %c0_i32, %c0_i32_0 : i32, i32, i32
  }
  func.func @transform_2(%arg0: i32) -> (i32, i32, i32) {
    %c0_i32 = arith.constant 0 : i32
    %c0_i32_0 = arith.constant 0 : i32
    %c0_i32_1 = arith.constant 0 : i32
    return %arg0, %c0_i32, %c0_i32_0 : i32, i32, i32
  }
  func.func @transform_3(%arg0: i32) -> (i32, i32, i32) {
    %c0_i32 = arith.constant 0 : i32
    %c0_i32_0 = arith.constant 0 : i32
    %c0_i32_1 = arith.constant 0 : i32
    return %arg0, %c0_i32, %c0_i32_0 : i32, i32, i32
  }
}

module attributes {stable_mosaic.version = 11 : i64} {
  func.func @linear_kernel(%arg0: i32, %arg1: memref<16x128xf32, #tpu.memory_space<vmem>>, %arg2: memref<128x128xf32, #tpu.memory_space<vmem>>, %arg3: memref<1x128xf32, #tpu.memory_space<vmem>>, %arg4: memref<16x128xf32, #tpu.memory_space<vmem>>) attributes {dimension_semantics = [#tpu.dimension_semantics<parallel>], iteration_bounds = array<i64: 1>, scalar_prefetch = 0 : i64, scratch_operands = 0 : i64, tpu.core_type = #tpu.core_type<tc>, window_params = [{transform_indices = @transform_0, window_bounds = array<i64: 16, 128>}, {pipeline_mode = #tpu.pipeline_mode<synchronous>, transform_indices = @transform_1, window_bounds = array<i64: 128, 128>}, {pipeline_mode = #tpu.pipeline_mode<synchronous>, transform_indices = @transform_2, window_bounds = array<i64: 1, 128>}, {transform_indices = @transform_3, window_bounds = array<i64: 16, 128>}]} {
    %c0 = arith.constant 0 : index
    %c0_0 = arith.constant 0 : index
    %0 = vector.load %arg1[%c0, %c0_0] : memref<16x128xf32, #tpu.memory_space<vmem>>, vector<16x128xf32>
    %1 = arith.truncf %0 : vector<16x128xf32> to vector<16x128xbf16>
    %c0_1 = arith.constant 0 : index
    %c0_2 = arith.constant 0 : index
    %2 = vector.load %arg2[%c0_1, %c0_2] : memref<128x128xf32, #tpu.memory_space<vmem>>, vector<128x128xf32>
    %3 = arith.truncf %2 : vector<128x128xf32> to vector<128x128xbf16>
    %cst = arith.constant dense<0.000000e+00> : vector<16x128xf32>
    %4 = tpu.matmul %1, %3, %cst {dimension_numbers = #tpu.dot_dimension_numbers<[1], [0], [0], [1], [0, 0, 1, 1], [], []>} : vector<16x128xbf16>, vector<128x128xbf16>, vector<16x128xf32> -> vector<16x128xf32>
    %c0_3 = arith.constant 0 : index
    %c0_4 = arith.constant 0 : index
    %5 = vector.load %arg3[%c0_3, %c0_4] : memref<1x128xf32, #tpu.memory_space<vmem>>, vector<1x128xf32>
    %6 = vector.broadcast %5 : vector<1x128xf32> to vector<16x128xf32>
    %7 = arith.addf %4, %6 : vector<16x128xf32>
    %c0_5 = arith.constant 0 : index
    %c0_6 = arith.constant 0 : index
    %8 = vector.load %arg4[%c0_5, %c0_6] : memref<16x128xf32, #tpu.memory_space<vmem>>, vector<16x128xf32>
    tpu.vector_store %arg4[%c0_5, %c0_6], %7 {strides = array<i32>} : memref<16x128xf32, #tpu.memory_space<vmem>>, vector<16x128xf32>,
    return
  }
  func.func @transform_0(%arg0: i32) -> (i32, i32) {
    %c0_i32 = arith.constant 0 : i32
    %c0_i32_0 = arith.constant 0 : i32
    return %arg0, %c0_i32 : i32, i32
  }
  func.func @transform_1(%arg0: i32) -> (i32, i32) {
    %c0_i32 = arith.constant 0 : i32
    %c0_i32_0 = arith.constant 0 : i32
    %c0_i32_1 = arith.constant 0 : i32
    return %c0_i32, %c0_i32_0 : i32, i32
  }
  func.func @transform_2(%arg0: i32) -> (i32, i32) {
    %c0_i32 = arith.constant 0 : i32
    %c0_i32_0 = arith.constant 0 : i32
    %c0_i32_1 = arith.constant 0 : i32
    return %c0_i32, %c0_i32_0 : i32, i32
  }
  func.func @transform_3(%arg0: i32) -> (i32, i32) {
    %c0_i32 = arith.constant 0 : i32
    %c0_i32_0 = arith.constant 0 : i32
    return %arg0, %c0_i32 : i32, i32
  }
}

</mosaic_0001>

<bundles_post_ra>
// kernel: stack_forward.25
= control target key start
LH: loop header
LB: loop body
LE: loop exit
PB: predicated region body
PF: predicated region fallthrough
CT: control target
= control target key end

     0   :  { %v259_v3 = vmov 0   ;;  %s477_s1 = inlined_call_operand.vmem [shape: f32[128,384], index: 1, kind: input, shape index: {}]   ;;  %s478_s0 = inlined_call_operand.vmem [shape: f32[32,128], index: 0, kind: input, shape index: {}]   ;;  %s479_s2 = inlined_call_operand.vmem [shape: f32[1,384], index: 2, kind: input, shape index: {}]   ;;  %s480_s3 = inlined_call_operand.vmem [shape: f32[32,384], index: 3, kind: output, shape index: {}]  }
   0x1   :  { %v22_v0 = vld [vmem:[%s477_s1 + $0x8] sm:$0xff]  ;;  %v25_v1 = vld [vmem:[%s477_s1 + $0x20] sm:$0xff]  ;;  %142 = vmatprep.mubr.bf16.mxu0 %v259_v3  ;;  %v24_v5 = vld [vmem:[%s477_s1 + $0x18] sm:$0xff] }
   0x2   :  { %v21_v2 = vld [vmem:[%s477_s1] sm:$0xff]  ;;  %v70_v4 = vpack.c.bf16 %v25_v1, %v22_v0  ;;  %v28_v6 = vld [vmem:[%s477_s1 + $0x38] sm:$0xff]  ;;  %v31_v7 = vld [vmem:[%s477_s1 + $0x50] sm:$0xff] }
   0x3   :  { %v69_v8 = vpack.c.bf16 %v24_v5, %v21_v2  ;;  %v73_v9 = vpack.c.bf16 %v31_v7, %v28_v6  ;;  %v27_v10 = vld [vmem:[%s477_s1 + $0x30] sm:$0xff]  ;;  %v30_v11 = vld [vmem:[%s477_s1 + $0x48] sm:$0xff]  ;;  %v37_v15 = vld [vmem:[%s477_s1 + $0x80] sm:$0xff] }
   0x4   :  { %v23_v12 = vld [vmem:[%s477_s1 + $0x10] sm:$0xff]  ;;  %110 = vmatprep.subr.bf16.mxu0 %v70_v4  ;;  %v26_v13 = vld [vmem:[%s477_s1 + $0x28] sm:$0xff]  ;;  %v72_v16 = vpack.c.bf16 %v30_v11, %v27_v10  ;;  %v29_v18 = vld [vmem:[%s477_s1 + $0x40] sm:$0xff] }
   0x5   :  { %v34_v14 = vld [vmem:[%s477_s1 + $0x68] sm:$0xff]  ;;  %111 = vmatpush1.bf16.msra.mxu0 %v69_v8  ;;  %v71_v17 = vpack.c.bf16 %v26_v13, %v23_v12  ;;  %v33_v20 = vld [vmem:[%s477_s1 + $0x60] sm:$0xff]  ;;  %v36_v21 = vld [vmem:[%s477_s1 + $0x78] sm:$0xff] }
   0x6   :  { %112 = vmatprep.subr.bf16.mxu0 %v73_v9  ;;  %v76_v19 = vpack.c.bf16 %v37_v15, %v34_v14  ;;  %v32_v22 = vld [vmem:[%s477_s1 + $0x58] sm:$0xff]  ;;  %v43_v25 = vld [vmem:[%s477_s1 + $0xb0] sm:$0xff]  ;;  %v38_v27 = vld [vmem:[%s477_s1 + $0x88] sm:$0xff]  ;;  %v75_v28 = vpack.c.bf16 %v36_v21, %v33_v20 }
   0x7   :  { %238 = vmatprep.subr.bf16.mxu1 %v71_v17  ;;  %v74_v23 = vpack.c.bf16 %v32_v22, %v29_v18  ;;  %v40_v24 = vld [vmem:[%s477_s1 + $0x98] sm:$0xff]  ;;  %v35_v26 = vld [vmem:[%s477_s1 + $0x70] sm:$0xff]  ;;  %v42_v32 = vld [vmem:[%s477_s1 + $0xa8] sm:$0xff] }
   0x8   :  { %239 = vmatpush3.bf16.msra.mxu1 %v71_v17  ;;  %v39_v29 = vld [vmem:[%s477_s1 + $0x90] sm:$0xff]  ;;  %v77_v30 = vpack.c.bf16 %v38_v27, %v35_v26  ;;  %v79_v31 = vpack.c.bf16 %v43_v25, %v40_v24  ;;  %v41_v33 = vld [vmem:[%s477_s1 + $0xa0] sm:$0xff]  ;;  %v44_v34 = vld [vmem:[%s477_s1 + $0xb8] sm:$0xff] }
   0x9   :  { %113 = vmatpush1.bf16.msra.mxu0 %v72_v16  ;;  %240 = vmatprep.subr.bf16.mxu1 %v74_v23  ;;  %v46_v35 = vld [vmem:[%s477_s1 + $0xc8] sm:$0xff]  ;;  %v49_v36 = vld [vmem:[%s477_s1 + $0xe0] sm:$0xff]  ;;  %v78_v37 = vpack.c.bf16 %v42_v32, %v39_v29  ;;  %v80_v39 = vpack.c.bf16 %v44_v34, %v41_v33  ;;  %v48_v41 = vld [vmem:[%s477_s1 + $0xd8] sm:$0xff]  ;;  %v95_v16 = vlaneseq }
   0xa   :  { %114 = vmatprep.subr.bf16.mxu0 %v76_v19  ;;  %v45_v38 = vld [vmem:[%s477_s1 + $0xc0] sm:$0xff]  ;;  %v82_v40 = vpack.c.bf16 %v49_v36, %v46_v35  ;;  %v47_v42 = vld [vmem:[%s477_s1 + $0xd0] sm:$0xff]  ;;  %v50_v43 = vld [vmem:[%s477_s1 + $0xe8] sm:$0xff] }
   0xb   :  { %v52_v44 = vld [vmem:[%s477_s1 + $0xf8] sm:$0xff]  ;;  %v55_v45 = vld [vmem:[%s477_s1 + $0x110] sm:$0xff]  ;;  %v15_v46 = vld [vmem:[%s478_s0] sm:$0xff]  ;;  %v81_v48 = vpack.c.bf16 %v48_v41, %v45_v38  ;;  %v83_v50 = vpack.c.bf16 %v50_v43, %v47_v42  ;;  %v96_v17 = vshrl.u32 %v95_v16, 7 }
   0xc   :  { %241 = vmatpush3.bf16.msra.mxu1 %v74_v23  ;;  %v16_v47 = vld [vmem:[%s478_s0 + $0x8] sm:$0xff]  ;;  %v51_v49 = vld [vmem:[%s477_s1 + $0xf0] sm:$0xff]  ;;  %v85_v52 = vpack.c.bf16 %v55_v45, %v52_v44  ;;  %v53_v54 = vld [vmem:[%s477_s1 + $0x100] sm:$0xff] }
   0xd   :  { %115 = vmatpush1.bf16.msra.mxu0 %v75_v28  ;;  %242 = vmatprep.subr.bf16.mxu1 %v77_v30  ;;  %v19_v51 = vpack.c.bf16 %v16_v47, %v15_v46  ;;  %v54_v53 = vld [vmem:[%s477_s1 + $0x108] sm:$0xff]  ;;  %v56_v55 = vld [vmem:[%s477_s1 + $0x118] sm:$0xff]  ;;  %v61_v57 = vld [vmem:[%s477_s1 + $0x140] sm:$0xff]  ;;  %v97_v18 = vsub.s32 0, %v96_v17  ;;  %v101_v20 = vsub.s32 1, %v96_v17  ;;  %v105_v21 = vsub.s32 2, %v96_v17 }
   0xe   :  { %116 = vmatprep.subr.bf16.mxu0 %v79_v31  ;;  %v58_v56 = vld [vmem:[%s477_s1 + $0x128] sm:$0xff]  ;;  %v84_v58 = vpack.c.bf16 %v54_v53, %v51_v49  ;;  %v57_v59 = vld [vmem:[%s477_s1 + $0x120] sm:$0xff]  ;;  %v86_v60 = vpack.c.bf16 %v56_v55, %v53_v54  ;;  %v60_v62 = vld [vmem:[%s477_s1 + $0x138] sm:$0xff] }
   0xf   :  { %254 = vmatprep.mubr.bf16.mxu1 %v19_v51  ;;  %v88_v61 = vpack.c.bf16 %v61_v57, %v58_v56  ;;  %v59_v63 = vld [vmem:[%s477_s1 + $0x130] sm:$0xff]  ;;  %v62_v0 = vld [vmem:[%s477_s1 + $0x148] sm:$0xff]  ;;  %v64_v1 = vld [vmem:[%s477_s1 + $0x158] sm:$0xff]  ;;  %v87_v4 = vpack.c.bf16 %v60_v62, %v57_v59 }
  0x10   :  { %243 = vmatpush3.bf16.msra.mxu1 %v77_v30  ;;  %v67_v2 = vld [vmem:[%s477_s1 + $0x170] sm:$0xff]  ;;  %v89_v6 = vpack.c.bf16 %v62_v0, %v59_v63  ;;  %v66_v8 = vld [vmem:[%s477_s1 + $0x168] sm:$0xff]  ;;  %v65_v9 = vld [vmem:[%s477_s1 + $0x160] sm:$0xff] }
  0x11   :  { %117 = vmatpush1.bf16.msra.mxu0 %v78_v37  ;;  %244 = vmatprep.subr.bf16.mxu1 %v80_v39  ;;  %v63_v5 = vld [vmem:[%s477_s1 + $0x150] sm:$0xff]  ;;  %v91_v7 = vpack.c.bf16 %v67_v2, %v64_v1  ;;  %v68_v10 = vld [vmem:[%s477_s1 + $0x178] sm:$0xff]  ;;  %v93_v19 = vld [vmem:[%s479_s2] sm:$0x7] }
  0x12   :  { %118 = vmatprep.subr.bf16.mxu0 %v82_v40  ;;  %v90_v11 = vpack.c.bf16 %v66_v8, %v63_v5  ;;  %v92_v12 = vpack.c.bf16 %v68_v10, %v65_v9  ;;  %v17_v13 = vld [vmem:[%s478_s0 + $0x10] sm:$0xff]  ;;  %v18_v14 = vld [vmem:[%s478_s0 + $0x18] sm:$0xff]  ;;  %v98_v22 = vrot.slane %v93_v19, %v97_v18  ;;  %v102_v23 = vrot.slane %v93_v19, %v101_v20 }
  0x13   :  { %v20_v15 = vpack.c.bf16 %v18_v14, %v17_v13  ;;  %v106_v25 = vrot.slane %v93_v19, %v105_v21 }
  0x14   :  { %245 = vmatpush3.bf16.msra.mxu1 %v80_v39 }
  0x15   :  { %119 = vmatpush1.bf16.msra.mxu0 %v81_v48  ;;  %246 = vmatprep.subr.bf16.mxu1 %v83_v50 }
  0x16   :  { %120 = vmatprep.subr.bf16.mxu0 %v85_v52 }
  0x18   :  { %247 = vmatpush3.bf16.msra.mxu1 %v83_v50 }
  0x19   :  { %121 = vmatpush1.bf16.msra.mxu0 %v84_v58  ;;  %248 = vmatprep.subr.bf16.mxu1 %v86_v60 }
  0x1a   :  { %122 = vmatprep.subr.bf16.mxu0 %v88_v61 }
  0x1c   :  { %249 = vmatpush3.bf16.msra.mxu1 %v86_v60 }
  0x1d   :  { %123 = vmatpush1.bf16.msra.mxu0 %v87_v4  ;;  %250 = vmatprep.subr.bf16.mxu1 %v89_v6 }
  0x1e   :  { %124 = vmatprep.subr.bf16.mxu0 %v91_v7 }
  0x20   :  { %251 = vmatpush3.bf16.msra.mxu1 %v89_v6 }
  0x21   :  { %125 = vmatpush1.bf16.msra.mxu0 %v90_v11  ;;  %252 = vmatprep.subr.bf16.mxu1 %v92_v12 }
  0x24   :  { %143 = vmatmul.mubr.bf16.vlgmr.msra.gmra.mrb[0].mxu0 %v19_v51  ;;  %253 = vmatpush3.bf16.msra.mxu1 %v92_v12 }
  0x25   :  { %152 = vmatprep.mubr.bf16.mxu0 %v259_v3 }
  0x27   :  { %255 = vmatmul.mubr.bf16.vlgmr.msra.gmra.mrb[0].mxu1 %v20_v15 }
  0x2c   :  { %153 = vmatmul.mubr.bf16.gmra.mrb[4].mxu0 %v20_v15 }
  0xf7   :  { %v144_v24 = vpop.f32.mrb[0].mxu0 }
  0xf8   :  { %v145_v26 = vadd.f32 %v144_v24, %v98_v22  ;;  %v146_v27 = vpop.f32.mrb[1].mxu0 }
  0xf9   :  { %v147_v28 = vadd.f32 %v146_v27, %v102_v23  ;;  %v148_v29 = vpop.f32.mrb[2].mxu0 }
  0xfa   :  { %212 = vst [vmem:[%s480_s3] sm:$0xff] %v145_v26  ;;  %v149_v3 = vadd.f32 %v148_v29, %v98_v22  ;;  %v150_v30 = vpop.f32.mrb[3].mxu0  ;;  %v256_v31 = vpop.f32.mrb[0].mxu1 }
  0xfb   :  { %213 = vst [vmem:[%s480_s3 + $0x8] sm:$0xff] %v147_v28  ;;  %v151_v32 = vadd.f32 %v150_v30, %v102_v23  ;;  %v206_v33 = vadd.f32 %v256_v31, %v106_v25  ;;  %v197_v34 = vpop.f32.mrb[1].mxu1 }
  0xfc   :  { %215 = vst [vmem:[%s480_s3 + $0x18] sm:$0xff] %v149_v3  ;;  %v198_v35 = vadd.f32 %v197_v34, %v106_v25  ;;  %v257_v36 = vpop.f32.mrb[2].mxu1 }
  0xfd   :  { %216 = vst [vmem:[%s480_s3 + $0x20] sm:$0xff] %v151_v32  ;;  %220 = vst [vmem:[%s480_s3 + $0x40] sm:$0xff] %v206_v33  ;;  %v209_v37 = vadd.f32 %v257_v36, %v106_v25  ;;  %v200_v38 = vpop.f32.mrb[3].mxu1 }
  0xfe   :  { %214 = vst [vmem:[%s480_s3 + $0x10] sm:$0xff] %v198_v35  ;;  %v201_v39 = vadd.f32 %v200_v38, %v106_v25 }
  0xff   :  { %223 = vst [vmem:[%s480_s3 + $0x58] sm:$0xff] %v209_v37  ;;  %v154_v40 = vpop.f32.mrb[4].mxu0 }
 0x100   :  { %v155_v41 = vadd.f32 %v154_v40, %v98_v22  ;;  %217 = vst [vmem:[%s480_s3 + $0x28] sm:$0xff] %v201_v39  ;;  %v156_v42 = vpop.f32.mrb[5].mxu0 }
 0x101   :  { %v157_v43 = vadd.f32 %v156_v42, %v102_v23  ;;  %v158_v44 = vpop.f32.mrb[6].mxu0 }
 0x102   :  { %218 = vst [vmem:[%s480_s3 + $0x30] sm:$0xff] %v155_v41  ;;  %v159_v45 = vadd.f32 %v158_v44, %v98_v22  ;;  %v160_v46 = vpop.f32.mrb[7].mxu0 }
 0x103   :  { %219 = vst [vmem:[%s480_s3 + $0x38] sm:$0xff] %v157_v43  ;;  %v161_v47 = vadd.f32 %v160_v46, %v102_v23 }
 0x104   :  { %221 = vst [vmem:[%s480_s3 + $0x48] sm:$0xff] %v159_v45 }
 0x105   :  { %222 = vst [vmem:[%s480_s3 + $0x50] sm:$0xff] %v161_v47 }

// kernel: stack_forward.27
= control target key start
LH: loop header
LB: loop body
LE: loop exit
PB: predicated region body
PF: predicated region fallthrough
CT: control target
= control target key end

     0   :  { %s362_s1 = inlined_call_operand.vmem [shape: f32[128,128], index: 1, kind: input, shape index: {}]   ;;  %s363_s0 = inlined_call_operand.vmem [shape: f32[32,128], index: 0, kind: input, shape index: {}]   ;;  %s364_s2 = inlined_call_operand.vmem [shape: f32[1,128], index: 2, kind: input, shape index: {}, may-alias: {2,5}]   ;;  %s365_s3 = inlined_call_operand.vmem [shape: f32[32,128], index: 3, kind: input, shape index: {}]   ;;  %s366_s4 = inlined_call_operand.vmem [shape: f32[1,128], index: 4, kind: input, shape index: {}]   ;;  %s367_s5 = inlined_call_operand.vmem [shape: f32[1,128], index: 5, kind: input, shape index: {}, may-alias: {2,5}]   ;;  %s368_s6 = inlined_call_operand.vmem [shape: f32[32,128], index: 6, kind: output, shape index: {}]  }
   0x1   :  { %v30_v0 = vld [vmem:[%s362_s1] sm:$0xff]  ;;  %v31_v1 = vld [vmem:[%s362_s1 + $0x8] sm:$0xff]  ;;  %v32_v2 = vld [vmem:[%s362_s1 + $0x10] sm:$0xff] }
   0x2   :  { %v46_v3 = vpack.c.bf16 %v31_v1, %v30_v0  ;;  %v33_v4 = vld [vmem:[%s362_s1 + $0x18] sm:$0xff]  ;;  %v34_v6 = vld [vmem:[%s362_s1 + $0x20] sm:$0xff]  ;;  %v35_v7 = vld [vmem:[%s362_s1 + $0x28] sm:$0xff] }
   0x3   :  { %v47_v5 = vpack.c.bf16 %v33_v4, %v32_v2  ;;  %v48_v8 = vpack.c.bf16 %v35_v7, %v34_v6  ;;  %v24_v9 = vld [vmem:[%s363_s0] sm:$0xff]  ;;  %v25_v10 = vld [vmem:[%s363_s0 + $0x8] sm:$0xff]  ;;  %v36_v11 = vld [vmem:[%s362_s1 + $0x30] sm:$0xff] }
   0x4   :  { %206 = vmatprep.subr.bf16.mxu0 %v46_v3  ;;  %v37_v12 = vld [vmem:[%s362_s1 + $0x38] sm:$0xff]  ;;  %v28_v13 = vpack.c.bf16 %v25_v10, %v24_v9  ;;  %v38_v15 = vld [vmem:[%s362_s1 + $0x40] sm:$0xff]  ;;  %v39_v16 = vld [vmem:[%s362_s1 + $0x48] sm:$0xff] }
   0x5   :  { %207 = vmatpush3.bf16.msra.mxu0 %v46_v3  ;;  %v49_v14 = vpack.c.bf16 %v37_v12, %v36_v11  ;;  %v50_v17 = vpack.c.bf16 %v39_v16, %v38_v15  ;;  %v40_v18 = vld [vmem:[%s362_s1 + $0x50] sm:$0xff]  ;;  %v41_v19 = vld [vmem:[%s362_s1 + $0x58] sm:$0xff]  ;;  %v42_v21 = vld [vmem:[%s362_s1 + $0x60] sm:$0xff] }
   0x6   :  { %208 = vmatprep.subr.bf16.mxu0 %v47_v5  ;;  %222 = vmatprep.mubr.bf16.mxu0 %v28_v13  ;;  %v51_v20 = vpack.c.bf16 %v41_v19, %v40_v18  ;;  %v43_v22 = vld [vmem:[%s362_s1 + $0x68] sm:$0xff]  ;;  %v44_v24 = vld [vmem:[%s362_s1 + $0x70] sm:$0xff]  ;;  %v45_v25 = vld [vmem:[%s362_s1 + $0x78] sm:$0xff] }
   0x7   :  { %v52_v23 = vpack.c.bf16 %v43_v22, %v42_v21  ;;  %v53_v26 = vpack.c.bf16 %v45_v25, %v44_v24  ;;  %v26_v27 = vld [vmem:[%s363_s0 + $0x10] sm:$0xff]  ;;  %v27_v28 = vld [vmem:[%s363_s0 + $0x18] sm:$0xff]  ;;  %v193_v30 = vld [vmem:[%s364_s2] ss:$0 sm:$0xff] }
   0x8   :  { %v29_v29 = vpack.c.bf16 %v27_v28, %v26_v27  ;;  %v112_v32 = vld [vmem:[%s365_s3 + $0x10] sm:$0xff]  ;;  %v110_v35 = vld [vmem:[%s365_s3] sm:$0xff]  ;;  %v113_v43 = vld [vmem:[%s365_s3 + $0x18] sm:$0xff] }
   0x9   :  { %209 = vmatpush3.bf16.msra.mxu0 %v47_v5  ;;  %v111_v44 = vld [vmem:[%s365_s3 + $0x8] sm:$0xff]  ;;  %v194_v12 = vld [vmem:[%s366_s4] ss:$0 sm:$0xff] }
   0xa   :  { %210 = vmatprep.subr.bf16.mxu0 %v48_v8 }
   0xd   :  { %211 = vmatpush3.bf16.msra.mxu0 %v48_v8 }
   0xe   :  { %212 = vmatprep.subr.bf16.mxu0 %v49_v14 }
  0x11   :  { %213 = vmatpush3.bf16.msra.mxu0 %v49_v14  ;;  %v195_v14 = vld [vmem:[%s367_s5] ss:$0 sm:$0xff] }
  0x12   :  { %214 = vmatprep.subr.bf16.mxu0 %v50_v17 }
  0x15   :  { %215 = vmatpush3.bf16.msra.mxu0 %v50_v17 }
  0x16   :  { %216 = vmatprep.subr.bf16.mxu0 %v51_v20 }
  0x19   :  { %217 = vmatpush3.bf16.msra.mxu0 %v51_v20 }
  0x1a   :  { %218 = vmatprep.subr.bf16.mxu0 %v52_v23 }
  0x1d   :  { %219 = vmatpush3.bf16.msra.mxu0 %v52_v23 }
  0x1e   :  { %220 = vmatprep.subr.bf16.mxu0 %v53_v26 }
  0x21   :  { %221 = vmatpush3.bf16.msra.mxu0 %v53_v26 }
  0x24   :  { %223 = vmatmul.mubr.bf16.vlgmr.msra.gmra.mrb[0].mxu0 %v29_v29 }
  0xf7   :  { %v224_v31 = vpop.f32.mrb[0].mxu0 }
  0xf8   :  { %v104_v33 = vadd.f32 %v224_v31, %v193_v30  ;;  %v95_v34 = vpop.f32.mrb[1].mxu0 }
  0xf9   :  { %v96_v36 = vadd.f32 %v193_v30, %v95_v34  ;;  %v225_v37 = vpop.f32.mrb[2].mxu0 }
  0xfa   :  { %v107_v38 = vadd.f32 %v225_v37, %v193_v30  ;;  %v98_v39 = vpop.f32.mrb[3].mxu0  ;;  %v116_v40 = vadd.f32 %v112_v32, %v104_v33 }
  0xfb   :  { %v99_v41 = vadd.f32 %v193_v30, %v98_v39  ;;  %v114_v42 = vadd.f32 %v110_v35, %v96_v36 }
  0xfc   :  { %124 = vadd.xlane.f32.xlu1 %v116_v40  ;;  %v117_v45 = vadd.f32 %v113_v43, %v107_v38 }
  0xfd   :  { %120 = vadd.xlane.f32.xlu0 %v114_v42  ;;  %v115_v46 = vadd.f32 %v111_v44, %v99_v41 }
 0x100   :  { %126 = vadd.xlane.f32.xlu1 %v117_v45 }
 0x101   :  { %122 = vadd.xlane.f32.xlu0 %v115_v46 }
 0x189   :  { %v125_v47 = vpop.xlane.xlu1 %124 }
 0x18a   :  { %v121_v48 = vpop.xlane.xlu0 %120  ;;  %v131_v49 = vmul.f32 0.0078125, %v125_v47 }
 0x18b   :  { %v129_v50 = vmul.f32 0.0078125, %v121_v48 }
 0x18c   :  { %v135_v54 = vsub.f32 %v116_v40, %v131_v49 }
 0x18d   :  { %v133_v51 = vsub.f32 %v114_v42, %v129_v50  ;;  %v127_v52 = vpop.xlane.xlu1 %126 }
 0x18e   :  { %v123_v53 = vpop.xlane.xlu0 %122  ;;  %v132_v55 = vmul.f32 0.0078125, %v127_v52  ;;  %v139_v60 = vmul.f32 %v135_v54, %v135_v54 }
 0x18f   :  { %v130_v56 = vmul.f32 0.0078125, %v123_v53  ;;  %v137_v57 = vmul.f32 %v133_v51, %v133_v51 }
 0x190   :  { %v136_v59 = vsub.f32 %v117_v45, %v132_v55 }
 0x191   :  { %v134_v58 = vsub.f32 %v115_v46, %v130_v56  ;;  %141 = vadd.xlane.f32.xlu0 %v137_v57 }
 0x192   :  { %v140_v62 = vmul.f32 %v136_v59, %v136_v59 }
 0x193   :  { %v138_v61 = vmul.f32 %v134_v58, %v134_v58 }
 0x195   :  { %145 = vadd.xlane.f32.xlu0 %v139_v60  ;;  %143 = vadd.xlane.f32.xlu1 %v138_v61 }
 0x199   :  { %147 = vadd.xlane.f32.xlu1 %v140_v62 }
 0x21e   :  { %v142_v63 = vpop.xlane.xlu0 %141 }
 0x21f   :  { %v149_v0 = vmul.f32 0.0078125, %v142_v63 }
 0x221   :  { %v153_v1 = vadd.f32 1e-05, %v149_v0 }
 0x222   :  { %v144_v2 = vpop.xlane.xlu1 %143  ;;  %v146_v3 = vpop.xlane.xlu0 %145 }
 0x223   :  { %226 = vrsqrt.f32 %v153_v1  ;;  %v150_v4 = vmul.f32 0.0078125, %v144_v2  ;;  %v151_v5 = vmul.f32 0.0078125, %v146_v3 }
 0x225   :  { %v154_v6 = vadd.f32 1e-05, %v150_v4  ;;  %v155_v7 = vadd.f32 1e-05, %v151_v5 }
 0x226   :  { %v148_v8 = vpop.xlane.xlu1 %147 }
 0x227   :  { %228 = vrsqrt.f32 %v154_v6  ;;  %v152_v9 = vmul.f32 0.0078125, %v148_v8 }
 0x228   :  { %230 = vrsqrt.f32 %v155_v7 }
 0x229   :  { %v156_v10 = vadd.f32 1e-05, %v152_v9 }
 0x22b   :  { %232 = vrsqrt.f32 %v156_v10 }
 0x22d   :  { %v227_v11 = vpop.eup %226 }
 0x22e   :  { %v161_v13 = vmul.f32 %v227_v11, %v133_v51 }
 0x230   :  { %v171_v15 = vmul.f32 %v194_v12, %v161_v13 }
 0x231   :  { %v229_v16 = vpop.eup %228 }
 0x232   :  { %v231_v17 = vpop.eup %230  ;;  %v181_v18 = vadd.f32 %v195_v14, %v171_v15  ;;  %v162_v19 = vmul.f32 %v229_v16, %v134_v58 }
 0x233   :  { %v163_v20 = vmul.f32 %v231_v17, %v135_v54 }
 0x234   :  { %185 = vst [vmem:[%s368_s6] sm:$0xff] %v181_v18  ;;  %v172_v21 = vmul.f32 %v194_v12, %v162_v19 }
 0x235   :  { %v233_v22 = vpop.eup %232  ;;  %v173_v23 = vmul.f32 %v194_v12, %v163_v20 }
 0x236   :  { %v182_v24 = vadd.f32 %v195_v14, %v172_v21  ;;  %v164_v25 = vmul.f32 %v233_v22, %v136_v59 }
 0x237   :  { %v183_v26 = vadd.f32 %v195_v14, %v173_v23 }
 0x238   :  { %186 = vst [vmem:[%s368_s6 + $0x8] sm:$0xff] %v182_v24  ;;  %v174_v27 = vmul.f32 %v194_v12, %v164_v25 }
 0x239   :  { %187 = vst [vmem:[%s368_s6 + $0x10] sm:$0xff] %v183_v26 }
 0x23a   :  { %v184_v28 = vadd.f32 %v195_v14, %v174_v27 }
 0x23c   :  { %188 = vst [vmem:[%s368_s6 + $0x18] sm:$0xff] %v184_v28 }

// kernel: stack_forward.28
= control target key start
LH: loop header
LB: loop body
LE: loop exit
PB: predicated region body
PF: predicated region fallthrough
CT: control target
= control target key end

     0   :  { %s578_s1 = inlined_call_operand.vmem [shape: f32[128,128], index: 1, kind: input, shape index: {}]   ;;  %s579_s0 = inlined_call_operand.vmem [shape: f32[32,128], index: 0, kind: input, shape index: {}]   ;;  %s580_s3 = inlined_call_operand.vmem [shape: f32[128,128], index: 3, kind: input, shape index: {}]   ;;  %s581_s2 = inlined_call_operand.vmem [shape: f32[1,128], index: 2, kind: input, shape index: {}, may-alias: {2,4,6}]   ;;  %s582_s4 = inlined_call_operand.vmem [shape: f32[1,128], index: 4, kind: input, shape index: {}, may-alias: {2,4,6}]   ;;  %s583_s5 = inlined_call_operand.vmem [shape: f32[1,128], index: 5, kind: input, shape index: {}]   ;;  %s584_s6 = inlined_call_operand.vmem [shape: f32[1,128], index: 6, kind: input, shape index: {}, may-alias: {2,4,6}]   ;;  %s585_s7 = inlined_call_operand.vmem [shape: f32[32,128], index: 7, kind: output, shape index: {}]  }
   0x1   :  { %v33_v0 = vld [vmem:[%s578_s1] sm:$0xff]  ;;  %v34_v1 = vld [vmem:[%s578_s1 + $0x8] sm:$0xff]  ;;  %v35_v2 = vld [vmem:[%s578_s1 + $0x10] sm:$0xff] }
   0x2   :  { %v49_v3 = vpack.c.bf16 %v34_v1, %v33_v0  ;;  %v36_v4 = vld [vmem:[%s578_s1 + $0x18] sm:$0xff]  ;;  %v37_v6 = vld [vmem:[%s578_s1 + $0x20] sm:$0xff]  ;;  %v38_v7 = vld [vmem:[%s578_s1 + $0x28] sm:$0xff] }
   0x3   :  { %v50_v5 = vpack.c.bf16 %v36_v4, %v35_v2  ;;  %v51_v8 = vpack.c.bf16 %v38_v7, %v37_v6  ;;  %v451_v9 = vld [vmem:[%s579_s0] sm:$0xff]  ;;  %v456_v10 = vld [vmem:[%s579_s0 + $0x8] sm:$0xff]  ;;  %v39_v11 = vld [vmem:[%s578_s1 + $0x30] sm:$0xff] }
   0x4   :  { %334 = vmatprep.subr.bf16.mxu0 %v49_v3  ;;  %v40_v12 = vld [vmem:[%s578_s1 + $0x38] sm:$0xff]  ;;  %v31_v13 = vpack.c.bf16 %v456_v10, %v451_v9  ;;  %v41_v15 = vld [vmem:[%s578_s1 + $0x40] sm:$0xff]  ;;  %v42_v16 = vld [vmem:[%s578_s1 + $0x48] sm:$0xff] }
   0x5   :  { %335 = vmatpush3.bf16.msra.mxu0 %v49_v3  ;;  %v52_v14 = vpack.c.bf16 %v40_v12, %v39_v11  ;;  %v53_v17 = vpack.c.bf16 %v42_v16, %v41_v15  ;;  %v43_v18 = vld [vmem:[%s578_s1 + $0x50] sm:$0xff]  ;;  %v44_v19 = vld [vmem:[%s578_s1 + $0x58] sm:$0xff]  ;;  %v45_v21 = vld [vmem:[%s578_s1 + $0x60] sm:$0xff] }
   0x6   :  { %336 = vmatprep.subr.bf16.mxu0 %v50_v5  ;;  %350 = vmatprep.mubr.bf16.mxu0 %v31_v13  ;;  %v54_v20 = vpack.c.bf16 %v44_v19, %v43_v18  ;;  %v46_v22 = vld [vmem:[%s578_s1 + $0x68] sm:$0xff]  ;;  %v47_v24 = vld [vmem:[%s578_s1 + $0x70] sm:$0xff]  ;;  %v48_v25 = vld [vmem:[%s578_s1 + $0x78] sm:$0xff] }
   0x7   :  { %v55_v23 = vpack.c.bf16 %v46_v22, %v45_v21  ;;  %v56_v26 = vpack.c.bf16 %v48_v25, %v47_v24  ;;  %v493_v27 = vld [vmem:[%s579_s0 + $0x10] sm:$0xff]  ;;  %v498_v28 = vld [vmem:[%s579_s0 + $0x18] sm:$0xff]  ;;  %v151_v30 = vld [vmem:[%s580_s3] sm:$0xff] }
   0x8   :  { %v32_v29 = vpack.c.bf16 %v498_v28, %v493_v27  ;;  %v152_v31 = vld [vmem:[%s580_s3 + $0x8] sm:$0xff]  ;;  %v153_v33 = vld [vmem:[%s580_s3 + $0x10] sm:$0xff]  ;;  %v154_v34 = vld [vmem:[%s580_s3 + $0x18] sm:$0xff] }
   0x9   :  { %337 = vmatpush3.bf16.msra.mxu0 %v50_v5  ;;  %v167_v32 = vpack.c.bf16 %v152_v31, %v151_v30  ;;  %v168_v35 = vpack.c.bf16 %v154_v34, %v153_v33  ;;  %v155_v36 = vld [vmem:[%s580_s3 + $0x20] sm:$0xff]  ;;  %v156_v37 = vld [vmem:[%s580_s3 + $0x28] sm:$0xff]  ;;  %v157_v39 = vld [vmem:[%s580_s3 + $0x30] sm:$0xff] }
   0xa   :  { %338 = vmatprep.subr.bf16.mxu0 %v51_v8  ;;  %v169_v38 = vpack.c.bf16 %v156_v37, %v155_v36  ;;  %v158_v40 = vld [vmem:[%s580_s3 + $0x38] sm:$0xff]  ;;  %v159_v42 = vld [vmem:[%s580_s3 + $0x40] sm:$0xff]  ;;  %v160_v43 = vld [vmem:[%s580_s3 + $0x48] sm:$0xff] }
   0xb   :  { %354 = vmatprep.subr.bf16.mxu1 %v167_v32  ;;  %v170_v41 = vpack.c.bf16 %v158_v40, %v157_v39  ;;  %v161_v44 = vld [vmem:[%s580_s3 + $0x50] sm:$0xff]  ;;  %v171_v45 = vpack.c.bf16 %v160_v43, %v159_v42  ;;  %v162_v46 = vld [vmem:[%s580_s3 + $0x58] sm:$0xff]  ;;  %v163_v48 = vld [vmem:[%s580_s3 + $0x60] sm:$0xff] }
   0xc   :  { %355 = vmatpush3.bf16.msra.mxu1 %v167_v32  ;;  %v172_v47 = vpack.c.bf16 %v162_v46, %v161_v44  ;;  %v164_v49 = vld [vmem:[%s580_s3 + $0x68] sm:$0xff]  ;;  %v165_v51 = vld [vmem:[%s580_s3 + $0x70] sm:$0xff]  ;;  %v166_v52 = vld [vmem:[%s580_s3 + $0x78] sm:$0xff] }
   0xd   :  { %339 = vmatpush3.bf16.msra.mxu0 %v51_v8  ;;  %356 = vmatprep.subr.bf16.mxu1 %v168_v35  ;;  %v173_v50 = vpack.c.bf16 %v164_v49, %v163_v48  ;;  %v174_v53 = vpack.c.bf16 %v166_v52, %v165_v51  ;;  %v310_v54 = vld [vmem:[%s581_s2] ss:$0 sm:$0xff] }
   0xe   :  { %340 = vmatprep.subr.bf16.mxu0 %v52_v14 }
  0x10   :  { %357 = vmatpush3.bf16.msra.mxu1 %v168_v35 }
  0x11   :  { %341 = vmatpush3.bf16.msra.mxu0 %v52_v14  ;;  %358 = vmatprep.subr.bf16.mxu1 %v169_v38 }
  0x12   :  { %342 = vmatprep.subr.bf16.mxu0 %v53_v17 }
  0x14   :  { %359 = vmatpush3.bf16.msra.mxu1 %v169_v38 }
  0x15   :  { %343 = vmatpush3.bf16.msra.mxu0 %v53_v17  ;;  %360 = vmatprep.subr.bf16.mxu1 %v170_v41 }
  0x16   :  { %344 = vmatprep.subr.bf16.mxu0 %v54_v20 }
  0x18   :  { %361 = vmatpush3.bf16.msra.mxu1 %v170_v41  ;;  %v311_v41 = vld [vmem:[%s582_s4] ss:$0 sm:$0xff] }
  0x19   :  { %345 = vmatpush3.bf16.msra.mxu0 %v54_v20  ;;  %362 = vmatprep.subr.bf16.mxu1 %v171_v45 }
  0x1a   :  { %346 = vmatprep.subr.bf16.mxu0 %v55_v23 }
  0x1c   :  { %363 = vmatpush3.bf16.msra.mxu1 %v171_v45 }
  0x1d   :  { %347 = vmatpush3.bf16.msra.mxu0 %v55_v23  ;;  %364 = vmatprep.subr.bf16.mxu1 %v172_v47 }
  0x1e   :  { %348 = vmatprep.subr.bf16.mxu0 %v56_v26 }
  0x20   :  { %365 = vmatpush3.bf16.msra.mxu1 %v172_v47 }
  0x21   :  { %349 = vmatpush3.bf16.msra.mxu0 %v56_v26  ;;  %366 = vmatprep.subr.bf16.mxu1 %v173_v50 }
  0x24   :  { %351 = vmatmul.mubr.bf16.vlgmr.msra.gmra.mrb[0].mxu0 %v32_v29  ;;  %367 = vmatpush3.bf16.msra.mxu1 %v173_v50 }
  0x25   :  { %368 = vmatprep.subr.bf16.mxu1 %v174_v53 }
  0x28   :  { %369 = vmatpush3.bf16.msra.mxu1 %v174_v53 }
  0xf7   :  { %v352_v55 = vpop.f32.mrb[0].mxu0 }
  0xf8   :  { %v107_v56 = vadd.f32 %v352_v55, %v310_v54  ;;  %v98_v57 = vpop.f32.mrb[1].mxu0 }
  0xf9   :  { %v99_v58 = vadd.f32 %v310_v54, %v98_v57  ;;  %v353_v59 = vpop.f32.mrb[2].mxu0 }
  0xfa   :  { %v115_v60 = vmul.f32 %v107_v56, %v107_v56  ;;  %v110_v61 = vadd.f32 %v353_v59, %v310_v54  ;;  %v101_v62 = vpop.f32.mrb[3].mxu0 }
  0xfb   :  { %v113_v63 = vmul.f32 %v99_v58, %v99_v58  ;;  %v102_v0 = vadd.f32 %v310_v54, %v101_v62 }
  0xfc   :  { %v119_v1 = vmul.f32 %v115_v60, %v107_v56  ;;  %v116_v2 = vmul.f32 %v110_v61, %v110_v61 }
  0xfd   :  { %v117_v3 = vmul.f32 %v113_v63, %v99_v58  ;;  %v114_v4 = vmul.f32 %v102_v0, %v102_v0 }
  0xfe   :  { %v123_v5 = vmul.f32 0.044715, %v119_v1  ;;  %v120_v6 = vmul.f32 %v116_v2, %v110_v61 }
  0xff   :  { %v121_v7 = vmul.f32 0.044715, %v117_v3  ;;  %v118_v8 = vmul.f32 %v114_v4, %v102_v0 }
 0x100   :  { %v127_v11 = vadd.f32 %v123_v5, %v107_v56  ;;  %v124_v12 = vmul.f32 0.044715, %v120_v6 }
 0x101   :  { %v122_v13 = vmul.f32 0.044715, %v118_v8  ;;  %v125_v14 = vadd.f32 %v121_v7, %v99_v58 }
 0x102   :  { %v131_v15 = vmul.f32 0.7978846, %v127_v11  ;;  %v128_v16 = vadd.f32 %v124_v12, %v110_v61 }
 0x103   :  { %v126_v17 = vadd.f32 %v122_v13, %v102_v0  ;;  %v129_v18 = vmul.f32 0.7978846, %v125_v14 }
 0x104   :  { %374 = vtanh.f32 %v131_v15  ;;  %v132_v19 = vmul.f32 0.7978846, %v128_v16 }
 0x105   :  { %v130_v20 = vmul.f32 0.7978846, %v126_v17  ;;  %376 = vtanh.f32 %v129_v18  ;;  %v312_v17 = vld [vmem:[%s583_s5] ss:$0 sm:$0xff] }
 0x106   :  { %378 = vtanh.f32 %v132_v19  ;;  %v313_v19 = vld [vmem:[%s584_s6] ss:$0 sm:$0xff] }
 0x107   :  { %380 = vtanh.f32 %v130_v20 }
 0x10e   :  { %v375_v21 = vpop.eup %374 }
 0x10f   :  { %v377_v22 = vpop.eup %376  ;;  %v139_v23 = vadd.f32 1.0, %v375_v21 }
 0x110   :  { %v379_v24 = vpop.eup %378  ;;  %v137_v25 = vadd.f32 1.0, %v377_v22 }
 0x111   :  { %v381_v26 = vpop.eup %380  ;;  %v140_v29 = vadd.f32 1.0, %v379_v24  ;;  %v143_v30 = vmul.f32 0.5, %v139_v23 }
 0x112   :  { %v138_v31 = vadd.f32 1.0, %v381_v26  ;;  %v141_v32 = vmul.f32 0.5, %v137_v25 }
 0x113   :  { %v144_v33 = vmul.f32 0.5, %v140_v29  ;;  %v147_v35 = vmul.f32 %v143_v30, %v107_v56 }
 0x114   :  { %v142_v34 = vmul.f32 0.5, %v138_v31  ;;  %v145_v37 = vmul.f32 %v141_v32, %v99_v58 }
 0x115   :  { %v148_v36 = vmul.f32 %v144_v33, %v110_v61 }
 0x116   :  { %v146_v38 = vmul.f32 %v142_v34, %v102_v0 }
 0x117   :  { %v150_v39 = vpack.c.bf16 %v148_v36, %v147_v35 }
 0x118   :  { %v149_v40 = vpack.c.bf16 %v146_v38, %v145_v37 }
 0x11a   :  { %370 = vmatprep.mubr.bf16.mxu1 %v149_v40 }
 0x11b   :  { %371 = vmatmul.mubr.bf16.vlgmr.msra.gmra.mrb[0].mxu1 %v150_v39 }
 0x1ee   :  { %v372_v42 = vpop.f32.mrb[0].mxu1 }
 0x1ef   :  { %v225_v43 = vadd.f32 %v372_v42, %v311_v41  ;;  %v216_v44 = vpop.f32.mrb[1].mxu1 }
 0x1f0   :  { %v217_v45 = vadd.f32 %v311_v41, %v216_v44  ;;  %v373_v46 = vpop.f32.mrb[2].mxu1 }
 0x1f1   :  { %v228_v47 = vadd.f32 %v373_v46, %v311_v41  ;;  %v219_v48 = vpop.f32.mrb[3].mxu1  ;;  %v233_v49 = vadd.f32 %v225_v43, %v493_v27 }
 0x1f2   :  { %v220_v50 = vadd.f32 %v311_v41, %v219_v48  ;;  %v231_v51 = vadd.f32 %v217_v45, %v451_v9 }
 0x1f3   :  { %241 = vadd.xlane.f32.xlu1 %v233_v49  ;;  %v234_v52 = vadd.f32 %v228_v47, %v498_v28 }
 0x1f4   :  { %237 = vadd.xlane.f32.xlu0 %v231_v51  ;;  %v232_v53 = vadd.f32 %v220_v50, %v456_v10 }
 0x1f7   :  { %243 = vadd.xlane.f32.xlu1 %v234_v52 }
 0x1f8   :  { %239 = vadd.xlane.f32.xlu0 %v232_v53 }
 0x280   :  { %v242_v54 = vpop.xlane.xlu1 %241 }
 0x281   :  { %v238_v55 = vpop.xlane.xlu0 %237  ;;  %v248_v56 = vmul.f32 0.0078125, %v242_v54 }
 0x282   :  { %v246_v57 = vmul.f32 0.0078125, %v238_v55 }
 0x283   :  { %v252_v61 = vsub.f32 %v233_v49, %v248_v56 }
 0x284   :  { %v250_v58 = vsub.f32 %v231_v51, %v246_v57  ;;  %v244_v59 = vpop.xlane.xlu1 %243 }
 0x285   :  { %v240_v60 = vpop.xlane.xlu0 %239  ;;  %v249_v27 = vmul.f32 0.0078125, %v244_v59  ;;  %v256_v1 = vmul.f32 %v252_v61, %v252_v61 }
 0x286   :  { %v247_v62 = vmul.f32 0.0078125, %v240_v60  ;;  %v254_v63 = vmul.f32 %v250_v58, %v250_v58 }
 0x287   :  { %v253_v0 = vsub.f32 %v234_v52, %v249_v27 }
 0x288   :  { %v251_v9 = vsub.f32 %v232_v53, %v247_v62  ;;  %258 = vadd.xlane.f32.xlu0 %v254_v63 }
 0x289   :  { %v257_v10 = vmul.f32 %v253_v0, %v253_v0 }
 0x28a   :  { %v255_v28 = vmul.f32 %v251_v9, %v251_v9 }
 0x28c   :  { %262 = vadd.xlane.f32.xlu0 %v256_v1  ;;  %260 = vadd.xlane.f32.xlu1 %v255_v28 }
 0x290   :  { %264 = vadd.xlane.f32.xlu1 %v257_v10 }
 0x315   :  { %v259_v2 = vpop.xlane.xlu0 %258 }
 0x316   :  { %v266_v3 = vmul.f32 0.0078125, %v259_v2 }
 0x318   :  { %v270_v4 = vadd.f32 1e-05, %v266_v3 }
 0x319   :  { %v261_v5 = vpop.xlane.xlu1 %260  ;;  %v263_v6 = vpop.xlane.xlu0 %262 }
 0x31a   :  { %382 = vrsqrt.f32 %v270_v4  ;;  %v267_v7 = vmul.f32 0.0078125, %v261_v5  ;;  %v268_v8 = vmul.f32 0.0078125, %v263_v6 }
 0x31c   :  { %v271_v11 = vadd.f32 1e-05, %v267_v7  ;;  %v272_v12 = vadd.f32 1e-05, %v268_v8 }
 0x31d   :  { %v265_v13 = vpop.xlane.xlu1 %264 }
 0x31e   :  { %384 = vrsqrt.f32 %v271_v11  ;;  %v269_v14 = vmul.f32 0.0078125, %v265_v13 }
 0x31f   :  { %386 = vrsqrt.f32 %v272_v12 }
 0x320   :  { %v273_v15 = vadd.f32 1e-05, %v269_v14 }
 0x322   :  { %388 = vrsqrt.f32 %v273_v15 }
 0x324   :  { %v383_v16 = vpop.eup %382 }
 0x325   :  { %v278_v18 = vmul.f32 %v383_v16, %v250_v58 }
 0x327   :  { %v288_v20 = vmul.f32 %v312_v17, %v278_v18 }
 0x328   :  { %v385_v21 = vpop.eup %384 }
 0x329   :  { %v387_v22 = vpop.eup %386  ;;  %v298_v23 = vadd.f32 %v313_v19, %v288_v20  ;;  %v279_v24 = vmul.f32 %v385_v21, %v251_v9 }
 0x32a   :  { %v280_v25 = vmul.f32 %v387_v22, %v252_v61 }
 0x32b   :  { %302 = vst [vmem:[%s585_s7] sm:$0xff] %v298_v23  ;;  %v289_v26 = vmul.f32 %v312_v17, %v279_v24 }
 0x32c   :  { %v389_v29 = vpop.eup %388  ;;  %v290_v30 = vmul.f32 %v312_v17, %v280_v25 }
 0x32d   :  { %v299_v31 = vadd.f32 %v313_v19, %v289_v26  ;;  %v281_v32 = vmul.f32 %v389_v29, %v253_v0 }
 0x32e   :  { %v300_v33 = vadd.f32 %v313_v19, %v290_v30 }
 0x32f   :  { %303 = vst [vmem:[%s585_s7 + $0x8] sm:$0xff] %v299_v31  ;;  %v291_v34 = vmul.f32 %v312_v17, %v281_v32 }
 0x330   :  { %304 = vst [vmem:[%s585_s7 + $0x10] sm:$0xff] %v300_v33 }
 0x331   :  { %v301_v35 = vadd.f32 %v313_v19, %v291_v34 }
 0x333   :  { %305 = vst [vmem:[%s585_s7 + $0x18] sm:$0xff] %v301_v35 }

// kernel: stack_forward.26
= control target key start
LH: loop header
LB: loop body
LE: loop exit
PB: predicated region body
PF: predicated region fallthrough
CT: control target
= control target key end

     0   :  { %s916_s9 = smov 0   ;;  %s1040_s0 = inlined_call_operand.vmem [shape: f32[2,16,384], index: 0, kind: input, shape index: {}]   ;;  %s1041_s1 = inlined_call_operand.vmem [shape: f32[2,1,16], index: 1, kind: input, shape index: {}]   ;;  %s1042_s2 = inlined_call_operand.vmem [shape: f32[2,16,128], index: 2, kind: output, shape index: {}]  }
   0x1 LB: > { %s759_s10 = sadd.s32 4294967295, %s894_s9   ;;  %p763_p0 = scmp.ge.s32.totalorder %s894_s9, 1  ;;  %s894_s9 = sphi %s916_s9, %s12_s9  }
   0x2   : > { %p120_p1 = scmp.lt.s32.totalorder %s894_s9, 3 }
   0x4   : > { %p121_p2 = pnand %p763_p0, %p120_p1 }
   0x5   : > { %p145_p3 = scmp.lt.s32.totalorder (!%p121_p2), %s759_s10, 1  ;;  %v896_v0 = vmov (!%p121_p2), 0.0   ;;  %vm897_vm0 = vmmov (!%p121_p2), 0   ;;  %vm179_vm1 = vcmask (!%p121_p2), 261120   ;;  %v174_v10 = vlaneseq (!%p121_p2)  ;;  %s898_s18 = smov (!%p121_p2), 96  }
   0x6   : > { %124 = sbr.rel (%p121_p2) target bundleno = 1496 (0x5d8), region = 28  ;;  %794 = vmatprep.subr.bf16.mxu0 (!%p121_p2), %v896_v0  ;;  %796 = vmatprep.mubr.msk.bf16.mxu0 (!%p121_p2), %vm897_vm0, %v896_v0  ;;  %vm227_vm2 = vcmask (!%p121_p2), 130048   ;;  %s899_s19 = smov (!%p121_p2), 32   ;;  %vm687_vm3 = vcmask (!%p121_p2), 523264   ;;  %vm690_vm4 = vcmask (!%p121_p2), 785408  }
   0x7   : > { %800 = vmatprep.subr.bf16.mxu1 (!%p121_p2), %v896_v0  ;;  %802 = vmatprep.mubr.msk.bf16.mxu1 (!%p121_p2), %vm897_vm0, %v896_v0  ;;  %v175_v13 = vshrl.u32 (!%p121_p2), %v174_v10, 7  ;;  %s900_s20 = smov (!%p121_p2), 64  }
   0x9   : > { %v176_v15 = vsub.s32 (!%p121_p2), 0, %v175_v13 }
   0xd   : > { %s1044_s10 = smov (!%p145_p3, %s759_s10), 1 }
   0xe   : > { %s842_s11 = smul.u32 48, %s1044_s10  ;;  %s152_s17 = scalar_lea.vmem %s1041_s1, %s1044_s10 }
   0xf   : > { %v165_v11 = vld [vmem:[%s152_s17] sm:$0x1]  ;;  %s777_s21 = sshll.u32 %s1044_s10, 4 }
  0x10   : > { %s936_s14 = scalar_lea.vmem %s1040_s0, %s842_s11  ;;  %v166_v12 = vsub.f32 1.0, %v165_v11  ;;  %s157_s24 = scalar_lea.vmem %s1042_s2, %s777_s21 }
  0x11   : > { %v160_v1 = vld [vmem:[%s936_s14 + $0x8] sm:$0xff]  ;;  %v163_v2 = vld [vmem:[%s936_s14 + $0x20] sm:$0xff]  ;;  %v162_v5 = vld [vmem:[%s936_s14 + $0x18] sm:$0xff] }
  0x12   : > { %v159_v3 = vld [vmem:[%s936_s14] sm:$0xff]  ;;  %v171_v4 = vpack.c.bf16 %v163_v2, %v160_v1  ;;  %v169_v8 = vmul.f32 0.17677669, %v162_v5  ;;  %v167_v14 = vmul.f32 -1e+09, %v166_v12  ;;  %v161_v35 = vld [vmem:[%s936_s14 + $0x10] sm:$0xff] }
  0x13   : > { %v168_v7 = vmul.f32 0.17677669, %v159_v3  ;;  %v164_v36 = vld [vmem:[%s936_s14 + $0x28] sm:$0xff] }
  0x14   : > { %v184_v6 = vsel %vm179_vm1, %v171_v4, 0  ;;  %v951_v16 = vrot.slane %v167_v14, %v176_v15  ;;  %v963_v37 = vpack.c.bf16 %v164_v36, %v161_v35 }
  0x15   : > { %795 = vmatpush3.bf16.xpose.msra.mxu0 %v184_v6  ;;  %v170_v9 = vpack.c.bf16 %v169_v8, %v168_v7 }
  0x16   : > { %812 = vmatprep.subr.bf16.mxu0 %v896_v0  ;;  %801 = vmatpush3.bf16.msra.mxu1 %v963_v37 }
  0x17   : > { %806 = vmatprep.subr.bf16.mxu1 %v896_v0 }
  0x1c   : > { %797 = vmatmul.mubr.msk.bf16.vlgmr.msra.gmra.mrb[0].mxu0 %vm179_vm1, %v170_v9 }
  0x1d   : > { %814 = vmatprep.mubr.msk.bf16.mxu0 %vm897_vm0, %v896_v0 }
  0xef   : > { %v220_v17 = vpop.f32.mrb[0].mxu0 }
  0xf0   : > { %v221_v18 = vadd.f32 %v220_v17, %v951_v16  ;;  %v798_v19 = vpop.f32.mrb[1].mxu0 }
  0xf1   : > { %v223_v20 = vpop.f32.mrb[2].mxu0 }
  0xf2   : > { %v224_v21 = vadd.f32 %v223_v20, %v951_v16  ;;  %v799_v22 = vpop.f32.mrb[3].mxu0  ;;  %v228_v23 = vsel %vm227_vm2, %v221_v18, -inf }
  0xf3   : > { %229 = vmax.xlane.f32.xlu0 %v228_v23 }
  0xf4   : > { %v231_v24 = vsel %vm227_vm2, %v224_v21, -inf }
  0xf7   : > { %232 = vmax.xlane.f32.xlu0 %v231_v24 }
 0x10d   : > { %299 = vrot.lane.b32.xlu0 %v171_v4, %s898_s18 }
 0x111   : > { %542 = vrot.lane.b32.xlu0 %v171_v4, %s899_s19 }
 0x180   : > { %v230_v25 = vpop.xlane.xlu0 %229 }
 0x181   : > { %v234_v26 = vsub.f32 %v221_v18, %v230_v25 }
 0x183   : > { %v236_v27 = vmul.f32 1.442695, %v234_v26 }
 0x184   : > { %v233_v28 = vpop.xlane.xlu0 %232 }
 0x185   : > { %856 = vpow2.f32 %v236_v27  ;;  %v235_v29 = vsub.f32 %v224_v21, %v233_v28 }
 0x187   : > { %v238_v30 = vmul.f32 1.442695, %v235_v29 }
 0x188   : > { %v300_v42 = vpop.permute.xlu0 %299 }
 0x189   : > { %858 = vpow2.f32 %v238_v30  ;;  %v305_v46 = vsel %vm179_vm1, %v300_v42, 0 }
 0x18c   : > { %v543_v50 = vpop.permute.xlu0 %542 }
 0x18d   : > { %v548_v52 = vsel %vm179_vm1, %v543_v50, 0 }
 0x18f   : > { %v857_v31 = vpop.eup %856 }
 0x190   : > { %v240_v32 = vsel %vm227_vm2, %v857_v31, 0.0 }
 0x191   : > { %241 = vadd.xlane.f32.xlu1 %v240_v32 }
 0x193   : > { %v859_v33 = vpop.eup %858 }
 0x194   : > { %v243_v34 = vsel %vm227_vm2, %v859_v33, 0.0 }
 0x195   : > { %244 = vadd.xlane.f32.xlu1 %v243_v34 }
 0x1a6   : > { %296 = vrot.lane.b32.xlu1 %v170_v9, %s898_s18 }
 0x1aa   : > { %421 = vrot.lane.b32.xlu1 %v171_v4, %s900_s20 }
 0x1ae   : > { %419 = vrot.lane.b32.xlu1 %v170_v9, %s900_s20 }
 0x1b2   : > { %540 = vrot.lane.b32.xlu1 %v170_v9, %s899_s19 }
 0x21e   : > { %v242_v38 = vpop.xlane.xlu1 %241 }
 0x21f   : > { %860 = vrcp.f32 %v242_v38 }
 0x222   : > { %v245_v39 = vpop.xlane.xlu1 %244 }
 0x223   : > { %862 = vrcp.f32 %v245_v39 }
 0x226   : > { %v297_v45 = vpop.permute.xlu1 %296 }
 0x229   : > { %v861_v40 = vpop.eup %860 }
 0x22a   : > { %v248_v43 = vmul.f32 %v861_v40, %v857_v31  ;;  %v422_v48 = vpop.permute.xlu1 %421 }
 0x22b   : > { %v427_v49 = vsel %vm179_vm1, %v422_v48, 0 }
 0x22d   : > { %v863_v41 = vpop.eup %862 }
 0x22e   : > { %v249_v44 = vmul.f32 %v863_v41, %v859_v33  ;;  %v420_v51 = vpop.permute.xlu1 %419 }
 0x230   : > { %v250_v47 = vpack.c.bf16 %v249_v44, %v248_v43 }
 0x232   : > { %803 = vmatmul.mubr.msk.bf16.vlgmr.msra.gmra.mrb[0].mxu1 %vm227_vm2, %v250_v47  ;;  %v541_v53 = vpop.permute.xlu1 %540 }
 0x233   : > { %807 = vmatpush3.bf16.xpose.msra.mxu1 %v305_v46  ;;  %808 = vmatprep.mubr.msk.bf16.mxu1 %vm897_vm0, %v896_v0 }
 0x234   : > { %818 = vmatprep.subr.bf16.mxu1 %v896_v0 }
 0x23a   : > { %809 = vmatmul.mubr.msk.bf16.vlgmr.msra.gmra.mrb[4].mxu1 %vm179_vm1, %v297_v45 }
 0x23b   : > { %819 = vmatpush3.bf16.xpose.msra.mxu1 %v427_v49  ;;  %820 = vmatprep.mubr.msk.bf16.mxu1 %vm897_vm0, %v896_v0 }
 0x23c   : > { %830 = vmatprep.subr.bf16.mxu1 %v896_v0 }
 0x242   : > { %821 = vmatmul.mubr.msk.bf16.vlgmr.msra.gmra.mrb[8].mxu1 %vm179_vm1, %v420_v51 }
 0x243   : > { %831 = vmatpush3.bf16.xpose.msra.mxu1 %v548_v52  ;;  %832 = vmatprep.mubr.msk.bf16.mxu1 %vm897_vm0, %v896_v0 }
 0x24a   : > { %833 = vmatmul.mubr.msk.bf16.vlgmr.msra.gmra.mrb[12].mxu1 %vm179_vm1, %v541_v53 }
 0x305   : > { %v986_v54 = vpop.f32.mrb[0].mxu1 }
 0x306   : > { %v804_v55 = vpop.f32.mrb[1].mxu1 }
 0x307   : > { %v988_v56 = vpop.f32.mrb[2].mxu1 }
 0x308   : > { %v805_v57 = vpop.f32.mrb[3].mxu1 }
 0x30d   : > { %v341_v58 = vpop.f32.mrb[4].mxu1 }
 0x30e   : > { %v342_v59 = vadd.f32 %v341_v58, %v951_v16  ;;  %v810_v60 = vpop.f32.mrb[5].mxu1 }
 0x30f   : > { %v344_v61 = vpop.f32.mrb[6].mxu1 }
 0x310   : > { %v345_v62 = vadd.f32 %v344_v61, %v951_v16  ;;  %v811_v63 = vpop.f32.mrb[7].mxu1  ;;  %v348_v1 = vsel %vm227_vm2, %v342_v59, -inf }
 0x311   : > { %349 = vmax.xlane.f32.xlu0 %v348_v1 }
 0x312   : > { %v351_v2 = vsel %vm227_vm2, %v345_v62, -inf }
 0x313   : > { %352 = vmax.xlane.f32.xlu1 %v351_v2 }
 0x315   : > { %v463_v3 = vpop.f32.mrb[8].mxu1 }
 0x316   : > { %v464_v4 = vadd.f32 %v463_v3, %v951_v16  ;;  %v822_v5 = vpop.f32.mrb[9].mxu1 }
 0x317   : > { %v466_v6 = vpop.f32.mrb[10].mxu1 }
 0x318   : > { %v467_v7 = vadd.f32 %v466_v6, %v951_v16  ;;  %v823_v8 = vpop.f32.mrb[11].mxu1  ;;  %v470_v9 = vsel %vm227_vm2, %v464_v4, -inf }
 0x319   : > { %471 = vmax.xlane.f32.xlu0 %v470_v9 }
 0x31a   : > { %v473_v10 = vsel %vm227_vm2, %v467_v7, -inf }
 0x31d   : > { %474 = vmax.xlane.f32.xlu0 %v473_v10  ;;  %v584_v11 = vpop.f32.mrb[12].mxu1 }
 0x31e   : > { %v585_v12 = vadd.f32 %v584_v11, %v951_v16  ;;  %v834_v13 = vpop.f32.mrb[13].mxu1 }
 0x31f   : > { %v587_v14 = vpop.f32.mrb[14].mxu1 }
 0x320   : > { %v588_v15 = vadd.f32 %v587_v14, %v951_v16  ;;  %v591_v17 = vsel %vm227_vm2, %v585_v12, -inf  ;;  %v835_v18 = vpop.f32.mrb[15].mxu1 }
 0x321   : > { %592 = vmax.xlane.f32.xlu0 %v591_v17 }
 0x322   : > { %v594_v19 = vsel %vm227_vm2, %v588_v15, -inf }
 0x323   : > { %595 = vmax.xlane.f32.xlu1 %v594_v19 }
 0x39e   : > { %v350_v20 = vpop.xlane.xlu0 %349 }
 0x39f   : > { %v354_v21 = vsub.f32 %v342_v59, %v350_v20 }
 0x3a0   : > { %v353_v22 = vpop.xlane.xlu1 %352 }
 0x3a1   : > { %v356_v23 = vmul.f32 1.442695, %v354_v21  ;;  %v355_v24 = vsub.f32 %v345_v62, %v353_v22 }
 0x3a3   : > { %864 = vpow2.f32 %v356_v23  ;;  %v358_v25 = vmul.f32 1.442695, %v355_v24 }
 0x3a5   : > { %866 = vpow2.f32 %v358_v25 }
 0x3a6   : > { %v472_v26 = vpop.xlane.xlu0 %471 }
 0x3a7   : > { %v476_v27 = vsub.f32 %v464_v4, %v472_v26 }
 0x3a9   : > { %v478_v28 = vmul.f32 1.442695, %v476_v27 }
 0x3aa   : > { %v475_v29 = vpop.xlane.xlu0 %474 }
 0x3ab   : > { %868 = vpow2.f32 %v478_v28  ;;  %v477_v16 = vsub.f32 %v467_v7, %v475_v29 }
 0x3ad   : > { %v865_v30 = vpop.eup %864  ;;  %v480_v31 = vmul.f32 1.442695, %v477_v16 }
 0x3ae   : > { %v593_v32 = vpop.xlane.xlu0 %592  ;;  %v360_v33 = vsel %vm227_vm2, %v865_v30, 0.0 }
 0x3af   : > { %v867_v34 = vpop.eup %866  ;;  %870 = vpow2.f32 %v480_v31  ;;  %v597_v35 = vsub.f32 %v585_v12, %v593_v32  ;;  %361 = vadd.xlane.f32.xlu0 %v360_v33 }
 0x3b0   : > { %v363_v36 = vsel %vm227_vm2, %v867_v34, 0.0  ;;  %v596_v45 = vpop.xlane.xlu1 %595 }
 0x3b1   : > { %v599_v38 = vmul.f32 1.442695, %v597_v35  ;;  %364 = vadd.xlane.f32.xlu1 %v363_v36  ;;  %v598_v46 = vsub.f32 %v588_v15, %v596_v45 }
 0x3b3   : > { %872 = vpow2.f32 %v599_v38  ;;  %v601_v47 = vmul.f32 1.442695, %v598_v46 }
 0x3b5   : > { %v869_v39 = vpop.eup %868  ;;  %874 = vpow2.f32 %v601_v47 }
 0x3b6   : > { %v482_v40 = vsel %vm227_vm2, %v869_v39, 0.0 }
 0x3b7   : > { %483 = vadd.xlane.f32.xlu0 %v482_v40 }
 0x3b9   : > { %v871_v41 = vpop.eup %870 }
 0x3ba   : > { %v485_v42 = vsel %vm227_vm2, %v871_v41, 0.0 }
 0x3bb   : > { %486 = vadd.xlane.f32.xlu1 %v485_v42 }
 0x3bd   : > { %v873_v43 = vpop.eup %872 }
 0x3be   : > { %v603_v44 = vsel %vm227_vm2, %v873_v43, 0.0 }
 0x3bf   : > { %604 = vadd.xlane.f32.xlu0 %v603_v44  ;;  %v875_v48 = vpop.eup %874 }
 0x3c0   : > { %v606_v49 = vsel %vm227_vm2, %v875_v48, 0.0 }
 0x3cc   : > { %493 = vrot.lane.b32.xlu1 %v963_v37, %s900_s20 }
 0x3d5   : > { %372 = vrot.lane.b32.xlu0 %v963_v37, %s898_s18 }
 0x3f0   : > { %607 = vadd.xlane.f32.xlu1 %v606_v49 }
 0x401   : > { %614 = vrot.lane.b32.xlu1 %v963_v37, %s899_s19 }
 0x43c   : > { %v362_v51 = vpop.xlane.xlu0 %361 }
 0x43e   : > { %v365_v50 = vpop.xlane.xlu1 %364 }
 0x43f   : > { %876 = vrcp.f32 %v365_v50 }
 0x440   : > { %878 = vrcp.f32 %v362_v51 }
 0x444   : > { %v484_v52 = vpop.xlane.xlu0 %483 }
 0x448   : > { %v487_v53 = vpop.xlane.xlu1 %486 }
 0x449   : > { %880 = vrcp.f32 %v487_v53  ;;  %v877_v55 = vpop.eup %876 }
 0x44a   : > { %882 = vrcp.f32 %v484_v52  ;;  %v879_v58 = vpop.eup %878  ;;  %v369_v59 = vmul.f32 %v877_v55, %v867_v34 }
 0x44b   : > { %v368_v60 = vmul.f32 %v879_v58, %v865_v30 }
 0x44c   : > { %v605_v57 = vpop.xlane.xlu0 %604  ;;  %v494_v37 = vpop.permute.xlu1 %493 }
 0x44d   : > { %v370_v62 = vpack.c.bf16 %v369_v59, %v368_v60  ;;  %884 = vrcp.f32 %v605_v57 }
 0x450   : > { %v373_v61 = vpop.permute.xlu0 %372 }
 0x451   : > { %813 = vmatpush3.bf16.msra.mxu0 %v373_v61 }
 0x452   : > { %824 = vmatprep.subr.bf16.mxu0 %v896_v0 }
 0x453   : > { %v881_v63 = vpop.eup %880 }
 0x454   : > { %815 = vmatmul.mubr.msk.bf16.vlgmr.msra.gmra.mrb[4].mxu0 %vm227_vm2, %v370_v62  ;;  %v883_v1 = vpop.eup %882  ;;  %v491_v2 = vmul.f32 %v881_v63, %v871_v41 }
 0x455   : > { %825 = vmatpush3.bf16.msra.mxu0 %v494_v37  ;;  %826 = vmatprep.mubr.msk.bf16.mxu0 %vm897_vm0, %v896_v0  ;;  %v490_v3 = vmul.f32 %v883_v1, %v869_v39 }
 0x456   : > { %836 = vmatprep.subr.bf16.mxu0 %v896_v0 }
 0x457   : > { %v492_v4 = vpack.c.bf16 %v491_v2, %v490_v3  ;;  %v885_v7 = vpop.eup %884 }
 0x458   : > { %v611_v9 = vmul.f32 %v885_v7, %v873_v43 }
 0x45c   : > { %827 = vmatmul.mubr.msk.bf16.vlgmr.msra.gmra.mrb[8].mxu0 %vm227_vm2, %v492_v4 }
 0x45d   : > { %838 = vmatprep.mubr.msk.bf16.mxu0 %vm897_vm0, %v896_v0 }
 0x47d   : > { %v608_v5 = vpop.xlane.xlu1 %607 }
 0x47e   : > { %886 = vrcp.f32 %v608_v5 }
 0x481   : > { %v615_v6 = vpop.permute.xlu1 %614 }
 0x482   : > { %837 = vmatpush3.bf16.msra.mxu0 %v615_v6 }
 0x488   : > { %v887_v8 = vpop.eup %886 }
 0x489   : > { %v612_v10 = vmul.f32 %v887_v8, %v875_v48 }
 0x48b   : > { %v613_v11 = vpack.c.bf16 %v612_v10, %v611_v9 }
 0x48d   : > { %839 = vmatmul.mubr.msk.bf16.vlgmr.msra.gmra.mrb[12].mxu0 %vm227_vm2, %v613_v11 }
 0x527   : > { %v412_v12 = vpop.f32.mrb[4].mxu0 }
 0x528   : > { %663 = vrot.lane.b32.xlu1 %v412_v12, %s899_s19  ;;  %v816_v13 = vpop.f32.mrb[5].mxu0 }
 0x529   : > { %v415_v14 = vpop.f32.mrb[6].mxu0 }
 0x52a   : > { %665 = vrot.lane.b32.xlu0 %v415_v14, %s899_s19  ;;  %v817_v0 = vpop.f32.mrb[7].mxu0 }
 0x52f   : > { %v533_v15 = vpop.f32.mrb[8].mxu0 }
 0x530   : > { %671 = vrot.lane.b32.xlu1 %v533_v15, %s900_s20  ;;  %v828_v17 = vpop.f32.mrb[9].mxu0 }
 0x531   : > { %v536_v18 = vpop.f32.mrb[10].mxu0 }
 0x532   : > { %673 = vrot.lane.b32.xlu0 %v536_v18, %s900_s20  ;;  %v829_v19 = vpop.f32.mrb[11].mxu0 }
 0x560   : > { %v654_v20 = vpop.f32.mrb[12].mxu0 }
 0x561   : > { %679 = vrot.lane.b32.xlu1 %v654_v20, %s898_s18  ;;  %v840_v21 = vpop.f32.mrb[13].mxu0 }
 0x562   : > { %v657_v22 = vpop.f32.mrb[14].mxu0 }
 0x563   : > { %681 = vrot.lane.b32.xlu0 %v657_v22, %s898_s18  ;;  %v841_v23 = vpop.f32.mrb[15].mxu0 }
 0x59a   : > { %v664_v24 = vpop.permute.xlu1 %663 }
 0x59b   : > { %v685_v28 = vsel %vm179_vm1, %v986_v54, %v664_v24 }
 0x59c   : > { %v666_v25 = vpop.permute.xlu0 %665 }
 0x59d   : > { %v686_v30 = vsel %vm179_vm1, %v988_v56, %v666_v25 }
 0x5a2   : > { %v672_v26 = vpop.permute.xlu1 %671 }
 0x5a3   : > { %v688_v29 = vsel %vm687_vm3, %v685_v28, %v672_v26 }
 0x5a4   : > { %v674_v27 = vpop.permute.xlu0 %673 }
 0x5a5   : > { %v689_v32 = vsel %vm687_vm3, %v686_v30, %v674_v27 }
 0x5d3   : > { %v680_v16 = vpop.permute.xlu1 %679 }
 0x5d4   : > { %v691_v31 = vsel %vm690_vm4, %v688_v29, %v680_v16 }
 0x5d5   : > { %693 = vst [vmem:[%s157_s24] sm:$0xff] %v691_v31  ;;  %v682_v33 = vpop.permute.xlu0 %681 }
 0x5d6   : > { %v692_v34 = vsel %vm690_vm4, %v689_v32, %v682_v33 }
 0x5d7   : > { %694 = vst [vmem:[%s157_s24 + $0x8] sm:$0xff] %v692_v34 }
 0x5d8 PF: > { %s12_s9 = sadd.s32 1, %s894_s9  }
 0x5d9   : > { %p9_p4 = scmp.ge.s32.totalorder %s12_s9, 4  }
 0x5db   :  { %11 = sbr.rel (!%p9_p4) target bundleno = 1 (0x1), region = 61 }

// kernel: stack_forward.37
= control target key start
LH: loop header
LB: loop body
LE: loop exit
PB: predicated region body
PF: predicated region fallthrough
CT: control target
= control target key end

     0   :  { %v163_v3 = vmov 0   ;;  %v71_v55 = vlaneseq  ;;  %s319_s1 = inlined_call_operand.vmem [shape: f32[128,256], index: 1, kind: input, shape index: {}]   ;;  %s320_s0 = inlined_call_operand.vmem [shape: f32[32,128], index: 0, kind: input, shape index: {}]   ;;  %s321_s2 = inlined_call_operand.vmem [shape: f32[1,256], index: 2, kind: input, shape index: {}]   ;;  %s322_s3 = inlined_call_operand.vmem [shape: f32[32,256], index: 3, kind: output, shape index: {}]  }
   0x1   :  { %v22_v0 = vld [vmem:[%s319_s1 + $0x8] sm:$0xff]  ;;  %v24_v1 = vld [vmem:[%s319_s1 + $0x18] sm:$0xff]  ;;  %v21_v2 = vld [vmem:[%s319_s1] sm:$0xff]  ;;  %113 = vmatprep.mubr.bf16.mxu0 %v163_v3  ;;  %123 = vmatprep.mubr.bf16.mxu1 %v163_v3 }
   0x2   :  { %v54_v4 = vpack.c.bf16 %v24_v1, %v22_v0  ;;  %v23_v5 = vld [vmem:[%s319_s1 + $0x10] sm:$0xff]  ;;  %v26_v6 = vld [vmem:[%s319_s1 + $0x28] sm:$0xff]  ;;  %v28_v7 = vld [vmem:[%s319_s1 + $0x38] sm:$0xff]  ;;  %v72_v56 = vshrl.u32 %v71_v55, 7 }
   0x3   :  { %v53_v8 = vpack.c.bf16 %v23_v5, %v21_v2  ;;  %v56_v9 = vpack.c.bf16 %v28_v7, %v26_v6  ;;  %v25_v10 = vld [vmem:[%s319_s1 + $0x20] sm:$0xff]  ;;  %v27_v11 = vld [vmem:[%s319_s1 + $0x30] sm:$0xff]  ;;  %v30_v12 = vld [vmem:[%s319_s1 + $0x48] sm:$0xff] }
   0x4   :  { %81 = vmatprep.subr.bf16.mxu0 %v54_v4  ;;  %146 = vmatprep.subr.bf16.mxu1 %v54_v4  ;;  %v32_v13 = vld [vmem:[%s319_s1 + $0x58] sm:$0xff]  ;;  %v55_v14 = vpack.c.bf16 %v27_v11, %v25_v10  ;;  %v29_v16 = vld [vmem:[%s319_s1 + $0x40] sm:$0xff]  ;;  %v31_v17 = vld [vmem:[%s319_s1 + $0x50] sm:$0xff]  ;;  %v73_v57 = vsub.s32 0, %v72_v56  ;;  %v77_v59 = vsub.s32 1, %v72_v56 }
   0x5   :  { %82 = vmatpush1.bf16.msra.mxu0 %v53_v8  ;;  %154 = vmatpush1.bf16.msra.mxu1 %v53_v8  ;;  %v58_v15 = vpack.c.bf16 %v32_v13, %v30_v12  ;;  %v34_v18 = vld [vmem:[%s319_s1 + $0x68] sm:$0xff]  ;;  %v36_v19 = vld [vmem:[%s319_s1 + $0x78] sm:$0xff]  ;;  %v57_v20 = vpack.c.bf16 %v31_v17, %v29_v16  ;;  %v33_v22 = vld [vmem:[%s319_s1 + $0x60] sm:$0xff] }
   0x6   :  { %83 = vmatprep.subr.bf16.mxu0 %v56_v9  ;;  %147 = vmatprep.subr.bf16.mxu1 %v56_v9  ;;  %v60_v21 = vpack.c.bf16 %v36_v19, %v34_v18  ;;  %v35_v23 = vld [vmem:[%s319_s1 + $0x70] sm:$0xff]  ;;  %v38_v24 = vld [vmem:[%s319_s1 + $0x88] sm:$0xff]  ;;  %v40_v25 = vld [vmem:[%s319_s1 + $0x98] sm:$0xff] }
   0x7   :  { %v59_v26 = vpack.c.bf16 %v35_v23, %v33_v22  ;;  %v62_v27 = vpack.c.bf16 %v40_v25, %v38_v24  ;;  %v37_v28 = vld [vmem:[%s319_s1 + $0x80] sm:$0xff]  ;;  %v39_v29 = vld [vmem:[%s319_s1 + $0x90] sm:$0xff]  ;;  %v42_v30 = vld [vmem:[%s319_s1 + $0xa8] sm:$0xff] }
   0x8   :  { %v44_v31 = vld [vmem:[%s319_s1 + $0xb8] sm:$0xff]  ;;  %v61_v32 = vpack.c.bf16 %v39_v29, %v37_v28  ;;  %v41_v34 = vld [vmem:[%s319_s1 + $0xa0] sm:$0xff]  ;;  %v43_v35 = vld [vmem:[%s319_s1 + $0xb0] sm:$0xff] }
   0x9   :  { %84 = vmatpush1.bf16.msra.mxu0 %v55_v14  ;;  %155 = vmatpush1.bf16.msra.mxu1 %v55_v14  ;;  %v64_v33 = vpack.c.bf16 %v44_v31, %v42_v30  ;;  %v46_v36 = vld [vmem:[%s319_s1 + $0xc8] sm:$0xff]  ;;  %v48_v37 = vld [vmem:[%s319_s1 + $0xd8] sm:$0xff]  ;;  %v63_v38 = vpack.c.bf16 %v43_v35, %v41_v34  ;;  %v45_v40 = vld [vmem:[%s319_s1 + $0xc0] sm:$0xff] }
   0xa   :  { %85 = vmatprep.subr.bf16.mxu0 %v58_v15  ;;  %148 = vmatprep.subr.bf16.mxu1 %v58_v15  ;;  %v66_v39 = vpack.c.bf16 %v48_v37, %v46_v36  ;;  %v47_v41 = vld [vmem:[%s319_s1 + $0xd0] sm:$0xff]  ;;  %v50_v42 = vld [vmem:[%s319_s1 + $0xe8] sm:$0xff]  ;;  %v52_v43 = vld [vmem:[%s319_s1 + $0xf8] sm:$0xff] }
   0xb   :  { %v65_v44 = vpack.c.bf16 %v47_v41, %v45_v40  ;;  %v68_v45 = vpack.c.bf16 %v52_v43, %v50_v42  ;;  %v49_v46 = vld [vmem:[%s319_s1 + $0xe0] sm:$0xff]  ;;  %v51_v47 = vld [vmem:[%s319_s1 + $0xf0] sm:$0xff]  ;;  %v16_v50 = vld [vmem:[%s320_s0 + $0x8] sm:$0xff] }
   0xc   :  { %v15_v48 = vld [vmem:[%s320_s0] sm:$0xff]  ;;  %v67_v49 = vpack.c.bf16 %v51_v47, %v49_v46  ;;  %v17_v51 = vld [vmem:[%s320_s0 + $0x10] sm:$0xff]  ;;  %v18_v52 = vld [vmem:[%s320_s0 + $0x18] sm:$0xff] }
   0xd   :  { %86 = vmatpush1.bf16.msra.mxu0 %v57_v20  ;;  %156 = vmatpush1.bf16.msra.mxu1 %v57_v20  ;;  %v19_v53 = vpack.c.bf16 %v16_v50, %v15_v48  ;;  %v20_v54 = vpack.c.bf16 %v18_v52, %v17_v51  ;;  %v69_v58 = vld [vmem:[%s321_s2] sm:$0x3] }
   0xe   :  { %87 = vmatprep.subr.bf16.mxu0 %v60_v21  ;;  %149 = vmatprep.subr.bf16.mxu1 %v60_v21  ;;  %v74_v60 = vrot.slane %v69_v58, %v73_v57  ;;  %v78_v61 = vrot.slane %v69_v58, %v77_v59 }
  0x11   :  { %88 = vmatpush1.bf16.msra.mxu0 %v59_v26  ;;  %157 = vmatpush1.bf16.msra.mxu1 %v59_v26 }
  0x12   :  { %89 = vmatprep.subr.bf16.mxu0 %v62_v27  ;;  %150 = vmatprep.subr.bf16.mxu1 %v62_v27 }
  0x15   :  { %90 = vmatpush1.bf16.msra.mxu0 %v61_v32  ;;  %158 = vmatpush1.bf16.msra.mxu1 %v61_v32 }
  0x16   :  { %91 = vmatprep.subr.bf16.mxu0 %v64_v33  ;;  %151 = vmatprep.subr.bf16.mxu1 %v64_v33 }
  0x19   :  { %92 = vmatpush1.bf16.msra.mxu0 %v63_v38  ;;  %159 = vmatpush1.bf16.msra.mxu1 %v63_v38 }
  0x1a   :  { %93 = vmatprep.subr.bf16.mxu0 %v66_v39  ;;  %152 = vmatprep.subr.bf16.mxu1 %v66_v39 }
  0x1d   :  { %94 = vmatpush1.bf16.msra.mxu0 %v65_v44  ;;  %160 = vmatpush1.bf16.msra.mxu1 %v65_v44 }
  0x1e   :  { %95 = vmatprep.subr.bf16.mxu0 %v68_v45  ;;  %153 = vmatprep.subr.bf16.mxu1 %v68_v45 }
  0x21   :  { %96 = vmatpush1.bf16.msra.mxu0 %v67_v49  ;;  %161 = vmatpush1.bf16.msra.mxu1 %v67_v49 }
  0x24   :  { %114 = vmatmul.mubr.bf16.vlgmr.msra.gmra.mrb[0].mxu0 %v19_v53  ;;  %124 = vmatmul.mubr.bf16.vlgmr.msra.gmra.mrb[0].mxu1 %v20_v54 }
  0xf7   :  { %v115_v62 = vpop.f32.mrb[0].mxu0  ;;  %v125_v63 = vpop.f32.mrb[0].mxu1 }
  0xf8   :  { %v116_v0 = vadd.f32 %v115_v62, %v74_v60  ;;  %v126_v1 = vadd.f32 %v125_v63, %v74_v60  ;;  %v117_v2 = vpop.f32.mrb[1].mxu0  ;;  %v127_v3 = vpop.f32.mrb[1].mxu1 }
  0xf9   :  { %v118_v4 = vadd.f32 %v117_v2, %v78_v61  ;;  %v128_v5 = vadd.f32 %v127_v3, %v78_v61  ;;  %v119_v6 = vpop.f32.mrb[2].mxu0  ;;  %v129_v7 = vpop.f32.mrb[2].mxu1 }
  0xfa   :  { %134 = vst [vmem:[%s322_s3] sm:$0xff] %v116_v0  ;;  %138 = vst [vmem:[%s322_s3 + $0x20] sm:$0xff] %v126_v1  ;;  %v120_v8 = vadd.f32 %v119_v6, %v74_v60  ;;  %v130_v9 = vadd.f32 %v129_v7, %v74_v60  ;;  %v121_v10 = vpop.f32.mrb[3].mxu0  ;;  %v131_v11 = vpop.f32.mrb[3].mxu1 }
  0xfb   :  { %135 = vst [vmem:[%s322_s3 + $0x8] sm:$0xff] %v118_v4  ;;  %139 = vst [vmem:[%s322_s3 + $0x28] sm:$0xff] %v128_v5  ;;  %v122_v12 = vadd.f32 %v121_v10, %v78_v61  ;;  %v132_v13 = vadd.f32 %v131_v11, %v78_v61 }
  0xfc   :  { %136 = vst [vmem:[%s322_s3 + $0x10] sm:$0xff] %v120_v8  ;;  %140 = vst [vmem:[%s322_s3 + $0x30] sm:$0xff] %v130_v9 }
  0xfd   :  { %137 = vst [vmem:[%s322_s3 + $0x18] sm:$0xff] %v122_v12  ;;  %141 = vst [vmem:[%s322_s3 + $0x38] sm:$0xff] %v132_v13 }

// kernel: stack_forward.33
= control target key start
LH: loop header
LB: loop body
LE: loop exit
PB: predicated region body
PF: predicated region fallthrough
CT: control target
= control target key end

     0   :  { %v233_v0 = vmov 0.0   ;;  %vm234_vm0 = vmmov 0   ;;  %v235_v8 = vmov 0   ;;  %s436_s1 = inlined_call_operand.vmem [shape: f32[128,384], index: 1, kind: input, shape index: {}]   ;;  %s437_s0 = inlined_call_operand.vmem [shape: f32[16,128], index: 0, kind: input, shape index: {}]   ;;  %s438_s2 = inlined_call_operand.vmem [shape: f32[1,384], index: 2, kind: input, shape index: {}]   ;;  %s439_s3 = inlined_call_operand.vmem [shape: f32[16,384], index: 3, kind: output, shape index: {}]  }
   0x1   :  { %210 = vmatprep.subr.bf16.mxu1 %v233_v0  ;;  %v19_v1 = vld [vmem:[%s436_s1 + $0x8] sm:$0xff]  ;;  %v22_v2 = vld [vmem:[%s436_s1 + $0x20] sm:$0xff]  ;;  %v20_v3 = vld [vmem:[%s436_s1 + $0x10] sm:$0xff]  ;;  %226 = vmatprep.mubr.msk.bf16.mxu1 %vm234_vm0, %v233_v0 }
   0x2   :  { %v67_v4 = vpack.c.bf16 %v22_v2, %v19_v1  ;;  %v23_v5 = vld [vmem:[%s436_s1 + $0x28] sm:$0xff]  ;;  %v18_v6 = vld [vmem:[%s436_s1] sm:$0xff]  ;;  %v21_v7 = vld [vmem:[%s436_s1 + $0x18] sm:$0xff]  ;;  %139 = vmatprep.mubr.bf16.mxu0 %v235_v8 }
   0x3   :  { %v68_v9 = vpack.c.bf16 %v23_v5, %v20_v3  ;;  %v66_v10 = vpack.c.bf16 %v21_v7, %v18_v6  ;;  %v25_v11 = vld [vmem:[%s436_s1 + $0x38] sm:$0xff]  ;;  %v28_v12 = vld [vmem:[%s436_s1 + $0x50] sm:$0xff]  ;;  %v26_v13 = vld [vmem:[%s436_s1 + $0x40] sm:$0xff] }
   0x4   :  { %107 = vmatprep.subr.bf16.mxu0 %v67_v4  ;;  %v70_v14 = vpack.c.bf16 %v28_v12, %v25_v11  ;;  %v29_v15 = vld [vmem:[%s436_s1 + $0x58] sm:$0xff]  ;;  %v24_v16 = vld [vmem:[%s436_s1 + $0x30] sm:$0xff]  ;;  %v27_v17 = vld [vmem:[%s436_s1 + $0x48] sm:$0xff] }
   0x5   :  { %211 = vmatpush3.bf16.msra.mxu1 %v68_v9  ;;  %108 = vmatpush1.bf16.msra.mxu0 %v66_v10  ;;  %v71_v18 = vpack.c.bf16 %v29_v15, %v26_v13  ;;  %v69_v19 = vpack.c.bf16 %v27_v17, %v24_v16  ;;  %v31_v20 = vld [vmem:[%s436_s1 + $0x68] sm:$0xff]  ;;  %v34_v21 = vld [vmem:[%s436_s1 + $0x80] sm:$0xff]  ;;  %v32_v22 = vld [vmem:[%s436_s1 + $0x70] sm:$0xff] }
   0x6   :  { %212 = vmatprep.subr.bf16.mxu1 %v233_v0  ;;  %109 = vmatprep.subr.bf16.mxu0 %v70_v14  ;;  %v73_v23 = vpack.c.bf16 %v34_v21, %v31_v20  ;;  %v35_v24 = vld [vmem:[%s436_s1 + $0x88] sm:$0xff]  ;;  %v30_v25 = vld [vmem:[%s436_s1 + $0x60] sm:$0xff]  ;;  %v33_v26 = vld [vmem:[%s436_s1 + $0x78] sm:$0xff]  ;;  %v92_v14 = vlaneseq }
   0x7   :  { %v37_v27 = vld [vmem:[%s436_s1 + $0x98] sm:$0xff]  ;;  %v40_v28 = vld [vmem:[%s436_s1 + $0xb0] sm:$0xff]  ;;  %v74_v29 = vpack.c.bf16 %v35_v24, %v32_v22  ;;  %v72_v30 = vpack.c.bf16 %v33_v26, %v30_v25  ;;  %v38_v31 = vld [vmem:[%s436_s1 + $0xa0] sm:$0xff] }
   0x8   :  { %v76_v32 = vpack.c.bf16 %v40_v28, %v37_v27  ;;  %v41_v33 = vld [vmem:[%s436_s1 + $0xb8] sm:$0xff]  ;;  %v36_v34 = vld [vmem:[%s436_s1 + $0x90] sm:$0xff]  ;;  %v39_v35 = vld [vmem:[%s436_s1 + $0xa8] sm:$0xff]  ;;  %v93_v15 = vshrl.u32 %v92_v14, 7 }
   0x9   :  { %213 = vmatpush3.bf16.msra.mxu1 %v71_v18  ;;  %110 = vmatpush1.bf16.msra.mxu0 %v69_v19  ;;  %v43_v36 = vld [vmem:[%s436_s1 + $0xc8] sm:$0xff]  ;;  %v46_v37 = vld [vmem:[%s436_s1 + $0xe0] sm:$0xff]  ;;  %v77_v38 = vpack.c.bf16 %v41_v33, %v38_v31  ;;  %v75_v39 = vpack.c.bf16 %v39_v35, %v36_v34  ;;  %v44_v40 = vld [vmem:[%s436_s1 + $0xd0] sm:$0xff] }
   0xa   :  { %214 = vmatprep.subr.bf16.mxu1 %v233_v0  ;;  %111 = vmatprep.subr.bf16.mxu0 %v73_v23  ;;  %v79_v41 = vpack.c.bf16 %v46_v37, %v43_v36  ;;  %v47_v42 = vld [vmem:[%s436_s1 + $0xe8] sm:$0xff]  ;;  %v42_v43 = vld [vmem:[%s436_s1 + $0xc0] sm:$0xff]  ;;  %v45_v44 = vld [vmem:[%s436_s1 + $0xd8] sm:$0xff]  ;;  %v102_v16 = vsub.s32 2, %v93_v15  ;;  %v94_v17 = vsub.s32 0, %v93_v15  ;;  %v98_v19 = vsub.s32 1, %v93_v15 }
   0xb   :  { %v49_v45 = vld [vmem:[%s436_s1 + $0xf8] sm:$0xff]  ;;  %v52_v46 = vld [vmem:[%s436_s1 + $0x110] sm:$0xff]  ;;  %v80_v47 = vpack.c.bf16 %v47_v42, %v44_v40  ;;  %v78_v48 = vpack.c.bf16 %v45_v44, %v42_v43  ;;  %v50_v49 = vld [vmem:[%s436_s1 + $0x100] sm:$0xff] }
   0xc   :  { %v82_v50 = vpack.c.bf16 %v52_v46, %v49_v45  ;;  %v53_v51 = vld [vmem:[%s436_s1 + $0x118] sm:$0xff]  ;;  %v48_v52 = vld [vmem:[%s436_s1 + $0xf0] sm:$0xff]  ;;  %v51_v53 = vld [vmem:[%s436_s1 + $0x108] sm:$0xff] }
   0xd   :  { %215 = vmatpush3.bf16.msra.mxu1 %v74_v29  ;;  %112 = vmatpush1.bf16.msra.mxu0 %v72_v30  ;;  %v55_v54 = vld [vmem:[%s436_s1 + $0x128] sm:$0xff]  ;;  %v58_v55 = vld [vmem:[%s436_s1 + $0x140] sm:$0xff]  ;;  %v83_v56 = vpack.c.bf16 %v53_v51, %v50_v49  ;;  %v81_v57 = vpack.c.bf16 %v51_v53, %v48_v52  ;;  %v56_v58 = vld [vmem:[%s436_s1 + $0x130] sm:$0xff] }
   0xe   :  { %216 = vmatprep.subr.bf16.mxu1 %v233_v0  ;;  %113 = vmatprep.subr.bf16.mxu0 %v76_v32  ;;  %v85_v59 = vpack.c.bf16 %v58_v55, %v55_v54  ;;  %v59_v60 = vld [vmem:[%s436_s1 + $0x148] sm:$0xff]  ;;  %v54_v61 = vld [vmem:[%s436_s1 + $0x120] sm:$0xff]  ;;  %v57_v62 = vld [vmem:[%s436_s1 + $0x138] sm:$0xff] }
   0xf   :  { %v61_v63 = vld [vmem:[%s436_s1 + $0x158] sm:$0xff]  ;;  %v64_v1 = vld [vmem:[%s436_s1 + $0x170] sm:$0xff]  ;;  %v86_v2 = vpack.c.bf16 %v59_v60, %v56_v58  ;;  %v84_v3 = vpack.c.bf16 %v57_v62, %v54_v61  ;;  %v62_v4 = vld [vmem:[%s436_s1 + $0x160] sm:$0xff] }
  0x10   :  { %v88_v5 = vpack.c.bf16 %v64_v1, %v61_v63  ;;  %v65_v6 = vld [vmem:[%s436_s1 + $0x178] sm:$0xff]  ;;  %v60_v7 = vld [vmem:[%s436_s1 + $0x150] sm:$0xff]  ;;  %v63_v8 = vld [vmem:[%s436_s1 + $0x168] sm:$0xff] }
  0x11   :  { %217 = vmatpush3.bf16.msra.mxu1 %v77_v38  ;;  %114 = vmatpush1.bf16.msra.mxu0 %v75_v39  ;;  %v89_v9 = vpack.c.bf16 %v65_v6, %v62_v4  ;;  %v87_v10 = vpack.c.bf16 %v63_v8, %v60_v7  ;;  %v15_v11 = vld [vmem:[%s437_s0] sm:$0xff]  ;;  %v16_v12 = vld [vmem:[%s437_s0 + $0x8] sm:$0xff] }
  0x12   :  { %218 = vmatprep.subr.bf16.mxu1 %v233_v0  ;;  %115 = vmatprep.subr.bf16.mxu0 %v79_v41  ;;  %v17_v13 = vpack.c.bf16 %v16_v12, %v15_v11  ;;  %v90_v18 = vld [vmem:[%s438_s2] sm:$0x7] }
  0x13   :  { %v103_v20 = vrot.slane %v90_v18, %v102_v16  ;;  %v95_v21 = vrot.slane %v90_v18, %v94_v17  ;;  %v99_v22 = vrot.slane %v90_v18, %v98_v19 }
  0x15   :  { %219 = vmatpush3.bf16.msra.mxu1 %v80_v47  ;;  %116 = vmatpush1.bf16.msra.mxu0 %v78_v48 }
  0x16   :  { %220 = vmatprep.subr.bf16.mxu1 %v233_v0  ;;  %117 = vmatprep.subr.bf16.mxu0 %v82_v50 }
  0x19   :  { %221 = vmatpush3.bf16.msra.mxu1 %v83_v56  ;;  %118 = vmatpush1.bf16.msra.mxu0 %v81_v57 }
  0x1a   :  { %222 = vmatprep.subr.bf16.mxu1 %v233_v0  ;;  %119 = vmatprep.subr.bf16.mxu0 %v85_v59 }
  0x1d   :  { %223 = vmatpush3.bf16.msra.mxu1 %v86_v2  ;;  %120 = vmatpush1.bf16.msra.mxu0 %v84_v3 }
  0x1e   :  { %224 = vmatprep.subr.bf16.mxu1 %v233_v0  ;;  %121 = vmatprep.subr.bf16.mxu0 %v88_v5 }
  0x21   :  { %225 = vmatpush3.bf16.msra.mxu1 %v89_v9  ;;  %122 = vmatpush1.bf16.msra.mxu0 %v87_v10 }
  0x24   :  { %227 = vmatmul.mubr.bf16.vlgmr.msra.gmra.mrb[0].mxu1 %v17_v13  ;;  %140 = vmatmul.mubr.bf16.vlgmr.msra.gmra.mrb[0].mxu0 %v17_v13 }
  0xf7   :  { %v184_v23 = vpop.f32.mrb[0].mxu1  ;;  %v141_v0 = vpop.f32.mrb[0].mxu0 }
  0xf8   :  { %v185_v24 = vadd.f32 %v184_v23, %v103_v20  ;;  %v142_v25 = vadd.f32 %v141_v0, %v95_v21  ;;  %v228_v26 = vpop.f32.mrb[1].mxu1  ;;  %v143_v27 = vpop.f32.mrb[1].mxu0 }
  0xf9   :  { %v144_v28 = vadd.f32 %v143_v27, %v99_v22  ;;  %v187_v29 = vpop.f32.mrb[2].mxu1  ;;  %v145_v30 = vpop.f32.mrb[2].mxu0 }
  0xfa   :  { %193 = vst [vmem:[%s439_s3 + $0x10] sm:$0xff] %v185_v24  ;;  %191 = vst [vmem:[%s439_s3] sm:$0xff] %v142_v25  ;;  %v188_v31 = vadd.f32 %v187_v29, %v103_v20  ;;  %v146_v32 = vadd.f32 %v145_v30, %v95_v21  ;;  %v229_v33 = vpop.f32.mrb[3].mxu1  ;;  %v147_v34 = vpop.f32.mrb[3].mxu0 }
  0xfb   :  { %192 = vst [vmem:[%s439_s3 + $0x8] sm:$0xff] %v144_v28  ;;  %v148_v35 = vadd.f32 %v147_v34, %v99_v22 }
  0xfc   :  { %196 = vst [vmem:[%s439_s3 + $0x28] sm:$0xff] %v188_v31  ;;  %194 = vst [vmem:[%s439_s3 + $0x18] sm:$0xff] %v146_v32 }
  0xfd   :  { %195 = vst [vmem:[%s439_s3 + $0x20] sm:$0xff] %v148_v35 }

// kernel: stack_forward.35
= control target key start
LH: loop header
LB: loop body
LE: loop exit
PB: predicated region body
PF: predicated region fallthrough
CT: control target
= control target key end

     0   :  { %v188_v0 = vmov 0.0   ;;  %vm189_vm0 = vmmov 0   ;;  %s300_s1 = inlined_call_operand.vmem [shape: f32[128,128], index: 1, kind: input, shape index: {}]   ;;  %s301_s0 = inlined_call_operand.vmem [shape: f32[16,128], index: 0, kind: input, shape index: {}]   ;;  %s302_s2 = inlined_call_operand.vmem [shape: f32[1,128], index: 2, kind: input, shape index: {}, may-alias: {2,5}]   ;;  %s303_s3 = inlined_call_operand.vmem [shape: f32[16,128], index: 3, kind: input, shape index: {}]   ;;  %s304_s4 = inlined_call_operand.vmem [shape: f32[1,128], index: 4, kind: input, shape index: {}]   ;;  %s305_s5 = inlined_call_operand.vmem [shape: f32[1,128], index: 5, kind: input, shape index: {}, may-alias: {2,5}]   ;;  %s306_s6 = inlined_call_operand.vmem [shape: f32[16,128], index: 6, kind: output, shape index: {}]  }
   0x1   :  { %162 = vmatprep.subr.bf16.mxu0 %v188_v0  ;;  %v27_v1 = vld [vmem:[%s300_s1] sm:$0xff]  ;;  %v28_v2 = vld [vmem:[%s300_s1 + $0x8] sm:$0xff]  ;;  %v29_v3 = vld [vmem:[%s300_s1 + $0x10] sm:$0xff]  ;;  %178 = vmatprep.mubr.msk.bf16.mxu0 %vm189_vm0, %v188_v0 }
   0x2   :  { %v43_v4 = vpack.c.bf16 %v28_v2, %v27_v1  ;;  %v30_v5 = vld [vmem:[%s300_s1 + $0x18] sm:$0xff]  ;;  %v31_v7 = vld [vmem:[%s300_s1 + $0x20] sm:$0xff]  ;;  %v32_v8 = vld [vmem:[%s300_s1 + $0x28] sm:$0xff] }
   0x3   :  { %v44_v6 = vpack.c.bf16 %v30_v5, %v29_v3  ;;  %v45_v9 = vpack.c.bf16 %v32_v8, %v31_v7  ;;  %v33_v10 = vld [vmem:[%s300_s1 + $0x30] sm:$0xff]  ;;  %v34_v11 = vld [vmem:[%s300_s1 + $0x38] sm:$0xff]  ;;  %v35_v13 = vld [vmem:[%s300_s1 + $0x40] sm:$0xff] }
   0x4   :  { %163 = vmatpush3.bf16.msra.mxu0 %v43_v4  ;;  %v46_v12 = vpack.c.bf16 %v34_v11, %v33_v10  ;;  %v36_v14 = vld [vmem:[%s300_s1 + $0x48] sm:$0xff]  ;;  %v37_v16 = vld [vmem:[%s300_s1 + $0x50] sm:$0xff]  ;;  %v38_v17 = vld [vmem:[%s300_s1 + $0x58] sm:$0xff] }
   0x5   :  { %164 = vmatprep.subr.bf16.mxu0 %v188_v0  ;;  %v47_v15 = vpack.c.bf16 %v36_v14, %v35_v13  ;;  %v48_v18 = vpack.c.bf16 %v38_v17, %v37_v16  ;;  %v39_v19 = vld [vmem:[%s300_s1 + $0x60] sm:$0xff]  ;;  %v40_v20 = vld [vmem:[%s300_s1 + $0x68] sm:$0xff]  ;;  %v41_v22 = vld [vmem:[%s300_s1 + $0x70] sm:$0xff] }
   0x6   :  { %v49_v21 = vpack.c.bf16 %v40_v20, %v39_v19  ;;  %v42_v23 = vld [vmem:[%s300_s1 + $0x78] sm:$0xff]  ;;  %v24_v25 = vld [vmem:[%s301_s0] sm:$0xff]  ;;  %v25_v26 = vld [vmem:[%s301_s0 + $0x8] sm:$0xff] }
   0x7   :  { %v50_v24 = vpack.c.bf16 %v42_v23, %v41_v22  ;;  %v26_v27 = vpack.c.bf16 %v25_v26, %v24_v25  ;;  %v150_v28 = vld [vmem:[%s302_s2] ss:$0 sm:$0xff]  ;;  %v100_v37 = vld [vmem:[%s303_s3 + $0x8] sm:$0xff] }
   0x8   :  { %165 = vmatpush3.bf16.msra.mxu0 %v44_v6  ;;  %v99_v30 = vld [vmem:[%s303_s3] sm:$0xff] }
   0x9   :  { %166 = vmatprep.subr.bf16.mxu0 %v188_v0  ;;  %v151_v54 = vld [vmem:[%s304_s4] ss:$0 sm:$0xff] }
   0xa   :  { %v152_v56 = vld [vmem:[%s305_s5] ss:$0 sm:$0xff] }
   0xc   :  { %167 = vmatpush3.bf16.msra.mxu0 %v45_v9 }
   0xd   :  { %168 = vmatprep.subr.bf16.mxu0 %v188_v0 }
  0x10   :  { %169 = vmatpush3.bf16.msra.mxu0 %v46_v12 }
  0x11   :  { %170 = vmatprep.subr.bf16.mxu0 %v188_v0 }
  0x14   :  { %171 = vmatpush3.bf16.msra.mxu0 %v47_v15 }
  0x15   :  { %172 = vmatprep.subr.bf16.mxu0 %v188_v0 }
  0x18   :  { %173 = vmatpush3.bf16.msra.mxu0 %v48_v18 }
  0x19   :  { %174 = vmatprep.subr.bf16.mxu0 %v188_v0 }
  0x1c   :  { %175 = vmatpush3.bf16.msra.mxu0 %v49_v21 }
  0x1d   :  { %176 = vmatprep.subr.bf16.mxu0 %v188_v0 }
  0x20   :  { %177 = vmatpush3.bf16.msra.mxu0 %v50_v24 }
  0x23   :  { %179 = vmatmul.mubr.bf16.vlgmr.msra.gmra.mrb[0].mxu0 %v26_v27 }
  0xf6   :  { %v92_v29 = vpop.f32.mrb[0].mxu0 }
  0xf7   :  { %v93_v31 = vadd.f32 %v150_v28, %v92_v29  ;;  %v180_v32 = vpop.f32.mrb[1].mxu0 }
  0xf8   :  { %v95_v33 = vpop.f32.mrb[2].mxu0 }
  0xf9   :  { %v96_v34 = vadd.f32 %v150_v28, %v95_v33  ;;  %v181_v35 = vpop.f32.mrb[3].mxu0  ;;  %v101_v36 = vadd.f32 %v99_v30, %v93_v31 }
  0xfb   :  { %105 = vadd.xlane.f32.xlu0 %v101_v36  ;;  %v102_v38 = vadd.f32 %v100_v37, %v96_v34 }
  0xff   :  { %107 = vadd.xlane.f32.xlu0 %v102_v38 }
 0x188   :  { %v106_v39 = vpop.xlane.xlu0 %105 }
 0x189   :  { %v110_v40 = vmul.f32 0.0078125, %v106_v39 }
 0x18b   :  { %v112_v41 = vsub.f32 %v101_v36, %v110_v40 }
 0x18c   :  { %v108_v42 = vpop.xlane.xlu0 %107 }
 0x18d   :  { %v111_v43 = vmul.f32 0.0078125, %v108_v42  ;;  %v114_v44 = vmul.f32 %v112_v41, %v112_v41 }
 0x18f   :  { %v113_v45 = vsub.f32 %v102_v38, %v111_v43  ;;  %116 = vadd.xlane.f32.xlu1 %v114_v44 }
 0x191   :  { %v115_v46 = vmul.f32 %v113_v45, %v113_v45 }
 0x193   :  { %118 = vadd.xlane.f32.xlu1 %v115_v46 }
 0x21c   :  { %v117_v47 = vpop.xlane.xlu1 %116 }
 0x21d   :  { %v120_v48 = vmul.f32 0.0078125, %v117_v47 }
 0x21f   :  { %v122_v49 = vadd.f32 1e-05, %v120_v48 }
 0x220   :  { %v119_v50 = vpop.xlane.xlu1 %118 }
 0x221   :  { %184 = vrsqrt.f32 %v122_v49  ;;  %v121_v51 = vmul.f32 0.0078125, %v119_v50 }
 0x223   :  { %v123_v52 = vadd.f32 1e-05, %v121_v51 }
 0x225   :  { %186 = vrsqrt.f32 %v123_v52 }
 0x22b   :  { %v185_v53 = vpop.eup %184 }
 0x22c   :  { %v126_v55 = vmul.f32 %v185_v53, %v112_v41 }
 0x22e   :  { %v134_v57 = vmul.f32 %v151_v54, %v126_v55 }
 0x22f   :  { %v187_v58 = vpop.eup %186 }
 0x230   :  { %v142_v59 = vadd.f32 %v152_v56, %v134_v57  ;;  %v127_v60 = vmul.f32 %v187_v58, %v113_v45 }
 0x232   :  { %144 = vst [vmem:[%s306_s6] sm:$0xff] %v142_v59  ;;  %v135_v61 = vmul.f32 %v151_v54, %v127_v60 }
 0x234   :  { %v143_v62 = vadd.f32 %v152_v56, %v135_v61 }
 0x236   :  { %145 = vst [vmem:[%s306_s6 + $0x8] sm:$0xff] %v143_v62 }

// kernel: stack_forward.34
= control target key start
LH: loop header
LB: loop body
LE: loop exit
PB: predicated region body
PF: predicated region fallthrough
CT: control target
= control target key end

     0   :  { %s839_s9 = smov 0   ;;  %s946_s0 = inlined_call_operand.vmem [shape: f32[2,8,384], index: 0, kind: input, shape index: {}]   ;;  %s947_s1 = inlined_call_operand.vmem [shape: f32[2,1,8], index: 1, kind: input, shape index: {}]   ;;  %s948_s2 = inlined_call_operand.vmem [shape: f32[2,8,128], index: 2, kind: output, shape index: {}]  }
   0x1 LB: > { %s700_s10 = sadd.s32 4294967295, %s817_s9   ;;  %p704_p0 = scmp.ge.s32.totalorder %s817_s9, 1  ;;  %s817_s9 = sphi %s839_s9, %s12_s9  }
   0x2   : > { %p120_p1 = scmp.lt.s32.totalorder %s817_s9, 3 }
   0x4   : > { %p121_p2 = pnand %p704_p0, %p120_p1 }
   0x5   : > { %p144_p3 = scmp.lt.s32.totalorder (!%p121_p2), %s700_s10, 1  ;;  %v819_v0 = vmov (!%p121_p2), 0.0   ;;  %vm820_vm0 = vmmov (!%p121_p2), 0   ;;  %vm180_vm1 = vcmask (!%p121_p2), 261120   ;;  %v163_v7 = vlaneseq (!%p121_p2)  ;;  %s821_s18 = smov (!%p121_p2), 96  }
   0x6   : > { %124 = sbr.rel (%p121_p2) target bundleno = 1478 (0x5c6), region = 28  ;;  %733 = vmatprep.subr.bf16.mxu0 (!%p121_p2), %v819_v0  ;;  %735 = vmatprep.mubr.msk.bf16.mxu0 (!%p121_p2), %vm820_vm0, %v819_v0  ;;  %vm227_vm3 = vcmask (!%p121_p2), 64512   ;;  %s822_s19 = smov (!%p121_p2), 64   ;;  %vm243_vm4 = vcmask (!%p121_p2), 1043456   ;;  %vm633_vm5 = vcmask (!%p121_p2), 523264   ;;  %vm635_vm6 = vcmask (!%p121_p2), 785408  }
   0x7   : > { %739 = vmatprep.subr.bf16.mxu1 (!%p121_p2), %v819_v0  ;;  %741 = vmatprep.mubr.msk.bf16.mxu1 (!%p121_p2), %vm820_vm0, %v819_v0  ;;  %v164_v10 = vshrl.u32 (!%p121_p2), %v163_v7, 7  ;;  %v166_v11 = vand.u32 (!%p121_p2), 127, %v163_v7  ;;  %s823_s20 = smov (!%p121_p2), 32  }
   0x9   : > { %v172_v13 = vsub.s32 (!%p121_p2), 0, %v164_v10  ;;  %vm167_vm2 = vcmp.gt.s32.totalorder (!%p121_p2), %v166_v11, %v164_v10 }
   0xa   : > { %v168_v15 = vsel (!%p121_p2), %vm167_vm2, -1e+09, %v819_v0 }
   0xd   : > { %s950_s10 = smov (!%p144_p3, %s700_s10), 1 }
   0xe   : > { %s781_s11 = smul.u32 24, %s950_s10  ;;  %s151_s17 = scalar_lea.vmem %s947_s1, %s950_s10 }
   0xf   : > { %v160_v8 = vld [vmem:[%s151_s17] sm:$0x1]  ;;  %s706_s21 = sshll.u32 %s950_s10, 3 }
  0x10   : > { %s859_s14 = scalar_lea.vmem %s946_s0, %s781_s11  ;;  %v161_v9 = vsub.f32 1.0, %v160_v8  ;;  %s155_s24 = scalar_lea.vmem %s948_s2, %s706_s21 }
  0x11   : > { %v158_v1 = vld [vmem:[%s859_s14 + $0x8] sm:$0xff]  ;;  %v157_v2 = vld [vmem:[%s859_s14] sm:$0xff]  ;;  %v159_v28 = vld [vmem:[%s859_s14 + $0x10] sm:$0xff] }
  0x12   : > { %v178_v3 = vpack.c.bf16 %v158_v1, %v158_v1  ;;  %v176_v5 = vmul.f32 0.17677669, %v157_v2  ;;  %v162_v12 = vmul.f32 -1e+09, %v161_v9  ;;  %v884_v29 = vpack.c.bf16 %v159_v28, %v159_v28 }
  0x14   : > { %v185_v4 = vsel %vm180_vm1, %v178_v3, 0  ;;  %v177_v6 = vpack.c.bf16 %v176_v5, %v176_v5  ;;  %v173_v14 = vrot.slane %v162_v12, %v172_v13  ;;  %291 = vrot.lane.b32.xlu1 %v178_v3, %s821_s18  ;;  %v245_v30 = vsel %vm243_vm4, %v884_v29, 0 }
  0x15   : > { %734 = vmatpush3.bf16.xpose.msra.mxu0 %v185_v4  ;;  %740 = vmatpush3.bf16.msra.mxu1 %v245_v30 }
  0x16   : > { %751 = vmatprep.subr.bf16.mxu0 %v819_v0  ;;  %v873_v16 = vadd.f32 %v173_v14, %v168_v15  ;;  %745 = vmatprep.subr.bf16.mxu1 %v819_v0 }
  0x18   : > { %288 = vrot.lane.b32.xlu1 %v177_v6, %s821_s18 }
  0x1c   : > { %736 = vmatmul.mubr.msk.bf16.vlgmr.msra.gmra.mrb[0].mxu0 %vm180_vm1, %v177_v6  ;;  %400 = vrot.lane.b32.xlu1 %v177_v6, %s822_s19 }
  0x1d   : > { %753 = vmatprep.mubr.msk.bf16.mxu0 %vm820_vm0, %v819_v0 }
  0x20   : > { %512 = vrot.lane.b32.xlu1 %v178_v3, %s823_s20 }
  0x24   : > { %510 = vrot.lane.b32.xlu1 %v177_v6, %s823_s20 }
  0x86   : > { %v292_v33 = vpop.permute.xlu1 %291 }
  0x87   : > { %v297_v35 = vsel %vm180_vm1, %v292_v33, 0 }
  0x8a   : > { %v289_v37 = vpop.permute.xlu1 %288 }
  0x8e   : > { %v401_v39 = vpop.permute.xlu1 %400 }
  0x92   : > { %v513_v41 = vpop.permute.xlu1 %512 }
  0x93   : > { %v518_v42 = vsel %vm180_vm1, %v513_v41, 0 }
  0x96   : > { %v511_v43 = vpop.permute.xlu1 %510 }
  0xef   : > { %v221_v17 = vpop.f32.mrb[0].mxu0 }
  0xf0   : > { %v222_v18 = vadd.f32 %v221_v17, %v873_v16  ;;  %v737_v19 = vpop.f32.mrb[1].mxu0 }
  0xf1   : > { %v224_v20 = vpop.f32.mrb[2].mxu0 }
  0xf2   : > { %v738_v21 = vpop.f32.mrb[3].mxu0  ;;  %v228_v22 = vsel %vm227_vm3, %v222_v18, -inf }
  0xf3   : > { %229 = vmax.xlane.f32.xlu0 %v228_v22 }
 0x180   : > { %v230_v23 = vpop.xlane.xlu0 %229 }
 0x181   : > { %v231_v24 = vsub.f32 %v222_v18, %v230_v23 }
 0x183   : > { %v232_v25 = vmul.f32 1.442695, %v231_v24 }
 0x185   : > { %795 = vpow2.f32 %v232_v25 }
 0x18f   : > { %v796_v26 = vpop.eup %795 }
 0x190   : > { %v234_v27 = vsel %vm227_vm3, %v796_v26, 0.0 }
 0x191   : > { %235 = vadd.xlane.f32.xlu0 %v234_v27 }
 0x1a7   : > { %402 = vrot.lane.b32.xlu0 %v178_v3, %s822_s19 }
 0x21e   : > { %v236_v31 = vpop.xlane.xlu0 %235 }
 0x21f   : > { %797 = vrcp.f32 %v236_v31 }
 0x222   : > { %v403_v38 = vpop.permute.xlu0 %402 }
 0x223   : > { %v408_v40 = vsel %vm180_vm1, %v403_v38, 0 }
 0x229   : > { %v798_v32 = vpop.eup %797 }
 0x22a   : > { %v238_v34 = vmul.f32 %v798_v32, %v796_v26 }
 0x22c   : > { %v239_v36 = vpack.c.bf16 %v238_v34, %v238_v34 }
 0x22e   : > { %742 = vmatmul.mubr.msk.bf16.vlgmr.msra.gmra.mrb[0].mxu1 %vm227_vm3, %v239_v36 }
 0x22f   : > { %746 = vmatpush3.bf16.xpose.msra.mxu1 %v297_v35  ;;  %747 = vmatprep.mubr.msk.bf16.mxu1 %vm820_vm0, %v819_v0 }
 0x230   : > { %757 = vmatprep.subr.bf16.mxu1 %v819_v0 }
 0x236   : > { %748 = vmatmul.mubr.msk.bf16.vlgmr.msra.gmra.mrb[4].mxu1 %vm180_vm1, %v289_v37 }
 0x237   : > { %758 = vmatpush3.bf16.xpose.msra.mxu1 %v408_v40  ;;  %759 = vmatprep.mubr.msk.bf16.mxu1 %vm820_vm0, %v819_v0 }
 0x238   : > { %769 = vmatprep.subr.bf16.mxu1 %v819_v0 }
 0x23e   : > { %760 = vmatmul.mubr.msk.bf16.vlgmr.msra.gmra.mrb[8].mxu1 %vm180_vm1, %v401_v39 }
 0x23f   : > { %770 = vmatpush3.bf16.xpose.msra.mxu1 %v518_v42  ;;  %771 = vmatprep.mubr.msk.bf16.mxu1 %vm820_vm0, %v819_v0 }
 0x246   : > { %772 = vmatmul.mubr.msk.bf16.vlgmr.msra.gmra.mrb[12].mxu1 %vm180_vm1, %v511_v43 }
 0x301   : > { %v905_v44 = vpop.f32.mrb[0].mxu1 }
 0x302   : > { %v743_v45 = vpop.f32.mrb[1].mxu1 }
 0x303   : > { %v284_v46 = vpop.f32.mrb[2].mxu1 }
 0x304   : > { %v744_v47 = vpop.f32.mrb[3].mxu1 }
 0x309   : > { %v333_v48 = vpop.f32.mrb[4].mxu1 }
 0x30a   : > { %v334_v49 = vadd.f32 %v333_v48, %v873_v16  ;;  %v749_v50 = vpop.f32.mrb[5].mxu1 }
 0x30b   : > { %v336_v51 = vpop.f32.mrb[6].mxu1 }
 0x30c   : > { %v750_v52 = vpop.f32.mrb[7].mxu1  ;;  %v339_v53 = vsel %vm227_vm3, %v334_v49, -inf }
 0x30d   : > { %340 = vmax.xlane.f32.xlu1 %v339_v53 }
 0x311   : > { %v444_v54 = vpop.f32.mrb[8].mxu1 }
 0x312   : > { %v445_v55 = vadd.f32 %v444_v54, %v873_v16  ;;  %v761_v56 = vpop.f32.mrb[9].mxu1 }
 0x313   : > { %v447_v57 = vpop.f32.mrb[10].mxu1 }
 0x314   : > { %v450_v58 = vsel %vm227_vm3, %v445_v55, -inf  ;;  %v762_v59 = vpop.f32.mrb[11].mxu1 }
 0x315   : > { %451 = vmax.xlane.f32.xlu0 %v450_v58 }
 0x319   : > { %v554_v60 = vpop.f32.mrb[12].mxu1 }
 0x31a   : > { %v555_v61 = vadd.f32 %v554_v60, %v873_v16  ;;  %v773_v62 = vpop.f32.mrb[13].mxu1 }
 0x31b   : > { %v557_v63 = vpop.f32.mrb[14].mxu1 }
 0x31c   : > { %v560_v1 = vsel %vm227_vm3, %v555_v61, -inf  ;;  %v774_v2 = vpop.f32.mrb[15].mxu1 }
 0x31d   : > { %561 = vmax.xlane.f32.xlu1 %v560_v1 }
 0x39a   : > { %v341_v3 = vpop.xlane.xlu1 %340 }
 0x39b   : > { %v342_v4 = vsub.f32 %v334_v49, %v341_v3 }
 0x39d   : > { %v343_v5 = vmul.f32 1.442695, %v342_v4 }
 0x39f   : > { %799 = vpow2.f32 %v343_v5 }
 0x3a2   : > { %v452_v6 = vpop.xlane.xlu0 %451 }
 0x3a3   : > { %v453_v7 = vsub.f32 %v445_v55, %v452_v6 }
 0x3a5   : > { %v454_v8 = vmul.f32 1.442695, %v453_v7 }
 0x3a7   : > { %801 = vpow2.f32 %v454_v8 }
 0x3a9   : > { %v800_v9 = vpop.eup %799 }
 0x3aa   : > { %v345_v10 = vsel %vm227_vm3, %v800_v9, 0.0  ;;  %v562_v13 = vpop.xlane.xlu1 %561 }
 0x3ab   : > { %346 = vadd.xlane.f32.xlu1 %v345_v10  ;;  %v563_v14 = vsub.f32 %v555_v61, %v562_v13 }
 0x3ad   : > { %v564_v15 = vmul.f32 1.442695, %v563_v14 }
 0x3af   : > { %803 = vpow2.f32 %v564_v15 }
 0x3b1   : > { %v802_v11 = vpop.eup %801 }
 0x3b2   : > { %v456_v12 = vsel %vm227_vm3, %v802_v11, 0.0 }
 0x3b3   : > { %457 = vadd.xlane.f32.xlu0 %v456_v12 }
 0x3b9   : > { %v804_v16 = vpop.eup %803 }
 0x3ba   : > { %v566_v17 = vsel %vm227_vm3, %v804_v16, 0.0 }
 0x3bc   : > { %462 = vrot.lane.b32.xlu1 %v884_v29, %s822_s19 }
 0x3c9   : > { %352 = vrot.lane.b32.xlu0 %v884_v29, %s821_s18 }
 0x3e0   : > { %567 = vadd.xlane.f32.xlu1 %v566_v17 }
 0x3f1   : > { %572 = vrot.lane.b32.xlu1 %v884_v29, %s823_s20 }
 0x438   : > { %v347_v18 = vpop.xlane.xlu1 %346 }
 0x439   : > { %805 = vrcp.f32 %v347_v18 }
 0x43c   : > { %v463_v24 = vpop.permute.xlu1 %462 }
 0x43d   : > { %v468_v26 = vsel %vm243_vm4, %v463_v24, 0 }
 0x440   : > { %v458_v19 = vpop.xlane.xlu0 %457 }
 0x441   : > { %807 = vrcp.f32 %v458_v19 }
 0x443   : > { %v806_v20 = vpop.eup %805 }
 0x444   : > { %v349_v21 = vmul.f32 %v806_v20, %v800_v9  ;;  %v353_v22 = vpop.permute.xlu0 %352 }
 0x445   : > { %v358_v23 = vsel %vm243_vm4, %v353_v22, 0 }
 0x446   : > { %752 = vmatpush3.bf16.msra.mxu0 %v358_v23  ;;  %v350_v25 = vpack.c.bf16 %v349_v21, %v349_v21 }
 0x447   : > { %763 = vmatprep.subr.bf16.mxu0 %v819_v0 }
 0x449   : > { %754 = vmatmul.mubr.msk.bf16.vlgmr.msra.gmra.mrb[4].mxu0 %vm227_vm3, %v350_v25 }
 0x44a   : > { %764 = vmatpush3.bf16.msra.mxu0 %v468_v26  ;;  %765 = vmatprep.mubr.msk.bf16.mxu0 %vm820_vm0, %v819_v0 }
 0x44b   : > { %v808_v27 = vpop.eup %807  ;;  %775 = vmatprep.subr.bf16.mxu0 %v819_v0 }
 0x44c   : > { %v460_v28 = vmul.f32 %v808_v27, %v802_v11 }
 0x44e   : > { %v461_v29 = vpack.c.bf16 %v460_v28, %v460_v28 }
 0x451   : > { %766 = vmatmul.mubr.msk.bf16.vlgmr.msra.gmra.mrb[8].mxu0 %vm227_vm3, %v461_v29 }
 0x452   : > { %777 = vmatprep.mubr.msk.bf16.mxu0 %vm820_vm0, %v819_v0 }
 0x46d   : > { %v568_v30 = vpop.xlane.xlu1 %567 }
 0x46e   : > { %809 = vrcp.f32 %v568_v30 }
 0x471   : > { %v573_v31 = vpop.permute.xlu1 %572 }
 0x472   : > { %v578_v32 = vsel %vm243_vm4, %v573_v31, 0 }
 0x473   : > { %776 = vmatpush3.bf16.msra.mxu0 %v578_v32 }
 0x478   : > { %v810_v33 = vpop.eup %809 }
 0x479   : > { %v570_v34 = vmul.f32 %v810_v33, %v804_v16 }
 0x47b   : > { %v571_v35 = vpack.c.bf16 %v570_v34, %v570_v34 }
 0x47d   : > { %778 = vmatmul.mubr.msk.bf16.vlgmr.msra.gmra.mrb[12].mxu0 %vm227_vm3, %v571_v35 }
 0x51c   : > { %v394_v36 = vpop.f32.mrb[4].mxu0 }
 0x51d   : > { %621 = vrot.lane.b32.xlu0 %v394_v36, %s823_s20  ;;  %v755_v37 = vpop.f32.mrb[5].mxu0 }
 0x51e   : > { %v397_v38 = vpop.f32.mrb[6].mxu0 }
 0x51f   : > { %v756_v39 = vpop.f32.mrb[7].mxu0 }
 0x524   : > { %v504_v40 = vpop.f32.mrb[8].mxu0 }
 0x525   : > { %625 = vrot.lane.b32.xlu1 %v504_v40, %s822_s19  ;;  %v767_v0 = vpop.f32.mrb[9].mxu0 }
 0x526   : > { %v507_v41 = vpop.f32.mrb[10].mxu0 }
 0x527   : > { %v768_v42 = vpop.f32.mrb[11].mxu0 }
 0x550   : > { %v614_v43 = vpop.f32.mrb[12].mxu0 }
 0x551   : > { %629 = vrot.lane.b32.xlu0 %v614_v43, %s821_s18  ;;  %v779_v45 = vpop.f32.mrb[13].mxu0 }
 0x552   : > { %v617_v46 = vpop.f32.mrb[14].mxu0 }
 0x553   : > { %v780_v47 = vpop.f32.mrb[15].mxu0 }
 0x58f   : > { %v622_v48 = vpop.permute.xlu0 %621 }
 0x590   : > { %v632_v50 = vsel %vm180_vm1, %v905_v44, %v622_v48 }
 0x597   : > { %v626_v49 = vpop.permute.xlu1 %625 }
 0x598   : > { %v634_v51 = vsel %vm633_vm5, %v632_v50, %v626_v49 }
 0x5c3   : > { %v630_v52 = vpop.permute.xlu0 %629 }
 0x5c4   : > { %v636_v53 = vsel %vm635_vm6, %v634_v51, %v630_v52 }
 0x5c5   : > { %637 = vst [vmem:[%s155_s24] sm:$0xff] %v636_v53 }
 0x5c6 PF: > { %s12_s9 = sadd.s32 1, %s817_s9  }
 0x5c7   : > { %p9_p4 = scmp.ge.s32.totalorder %s12_s9, 4  }
 0x5c9   :  { %11 = sbr.rel (!%p9_p4) target bundleno = 1 (0x1), region = 61 }

// kernel: stack_forward.36
= control target key start
LH: loop header
LB: loop body
LE: loop exit
PB: predicated region body
PF: predicated region fallthrough
CT: control target
= control target key end

     0   :  { %v128_v0 = vmov 0.0   ;;  %vm129_vm0 = vmmov 0   ;;  %s213_s1 = inlined_call_operand.vmem [shape: f32[128,128], index: 1, kind: input, shape index: {}]   ;;  %s214_s0 = inlined_call_operand.vmem [shape: f32[16,128], index: 0, kind: input, shape index: {}]   ;;  %s215_s2 = inlined_call_operand.vmem [shape: f32[1,128], index: 2, kind: input, shape index: {}]   ;;  %s216_s3 = inlined_call_operand.vmem [shape: f32[16,128], index: 3, kind: output, shape index: {}]  }
   0x1   :  { %106 = vmatprep.subr.bf16.mxu0 %v128_v0  ;;  %v18_v1 = vld [vmem:[%s213_s1] sm:$0xff]  ;;  %v19_v2 = vld [vmem:[%s213_s1 + $0x8] sm:$0xff]  ;;  %v20_v3 = vld [vmem:[%s213_s1 + $0x10] sm:$0xff]  ;;  %122 = vmatprep.mubr.msk.bf16.mxu0 %vm129_vm0, %v128_v0 }
   0x2   :  { %v34_v4 = vpack.c.bf16 %v19_v2, %v18_v1  ;;  %v21_v5 = vld [vmem:[%s213_s1 + $0x18] sm:$0xff]  ;;  %v22_v7 = vld [vmem:[%s213_s1 + $0x20] sm:$0xff]  ;;  %v23_v8 = vld [vmem:[%s213_s1 + $0x28] sm:$0xff] }
   0x3   :  { %v35_v6 = vpack.c.bf16 %v21_v5, %v20_v3  ;;  %v36_v9 = vpack.c.bf16 %v23_v8, %v22_v7  ;;  %v24_v10 = vld [vmem:[%s213_s1 + $0x30] sm:$0xff]  ;;  %v25_v11 = vld [vmem:[%s213_s1 + $0x38] sm:$0xff]  ;;  %v26_v13 = vld [vmem:[%s213_s1 + $0x40] sm:$0xff] }
   0x4   :  { %107 = vmatpush3.bf16.msra.mxu0 %v34_v4  ;;  %v37_v12 = vpack.c.bf16 %v25_v11, %v24_v10  ;;  %v27_v14 = vld [vmem:[%s213_s1 + $0x48] sm:$0xff]  ;;  %v28_v16 = vld [vmem:[%s213_s1 + $0x50] sm:$0xff]  ;;  %v29_v17 = vld [vmem:[%s213_s1 + $0x58] sm:$0xff] }
   0x5   :  { %108 = vmatprep.subr.bf16.mxu0 %v128_v0  ;;  %v38_v15 = vpack.c.bf16 %v27_v14, %v26_v13  ;;  %v39_v18 = vpack.c.bf16 %v29_v17, %v28_v16  ;;  %v30_v19 = vld [vmem:[%s213_s1 + $0x60] sm:$0xff]  ;;  %v31_v20 = vld [vmem:[%s213_s1 + $0x68] sm:$0xff]  ;;  %v32_v22 = vld [vmem:[%s213_s1 + $0x70] sm:$0xff] }
   0x6   :  { %v40_v21 = vpack.c.bf16 %v31_v20, %v30_v19  ;;  %v33_v23 = vld [vmem:[%s213_s1 + $0x78] sm:$0xff]  ;;  %v15_v25 = vld [vmem:[%s214_s0] sm:$0xff]  ;;  %v16_v26 = vld [vmem:[%s214_s0 + $0x8] sm:$0xff] }
   0x7   :  { %v41_v24 = vpack.c.bf16 %v33_v23, %v32_v22  ;;  %v17_v27 = vpack.c.bf16 %v16_v26, %v15_v25  ;;  %v96_v28 = vld [vmem:[%s215_s2] ss:$0 sm:$0xff] }
   0x8   :  { %109 = vmatpush3.bf16.msra.mxu0 %v35_v6 }
   0x9   :  { %110 = vmatprep.subr.bf16.mxu0 %v128_v0 }
   0xc   :  { %111 = vmatpush3.bf16.msra.mxu0 %v36_v9 }
   0xd   :  { %112 = vmatprep.subr.bf16.mxu0 %v128_v0 }
  0x10   :  { %113 = vmatpush3.bf16.msra.mxu0 %v37_v12 }
  0x11   :  { %114 = vmatprep.subr.bf16.mxu0 %v128_v0 }
  0x14   :  { %115 = vmatpush3.bf16.msra.mxu0 %v38_v15 }
  0x15   :  { %116 = vmatprep.subr.bf16.mxu0 %v128_v0 }
  0x18   :  { %117 = vmatpush3.bf16.msra.mxu0 %v39_v18 }
  0x19   :  { %118 = vmatprep.subr.bf16.mxu0 %v128_v0 }
  0x1c   :  { %119 = vmatpush3.bf16.msra.mxu0 %v40_v21 }
  0x1d   :  { %120 = vmatprep.subr.bf16.mxu0 %v128_v0 }
  0x20   :  { %121 = vmatpush3.bf16.msra.mxu0 %v41_v24 }
  0x23   :  { %123 = vmatmul.mubr.bf16.vlgmr.msra.gmra.mrb[0].mxu0 %v17_v27 }
  0xf6   :  { %v83_v29 = vpop.f32.mrb[0].mxu0 }
  0xf7   :  { %v84_v30 = vadd.f32 %v96_v28, %v83_v29  ;;  %v124_v31 = vpop.f32.mrb[1].mxu0 }
  0xf8   :  { %v86_v32 = vpop.f32.mrb[2].mxu0 }
  0xf9   :  { %90 = vst [vmem:[%s216_s3] sm:$0xff] %v84_v30  ;;  %v87_v33 = vadd.f32 %v96_v28, %v86_v32  ;;  %v125_v34 = vpop.f32.mrb[3].mxu0 }
  0xfb   :  { %91 = vst [vmem:[%s216_s3 + $0x8] sm:$0xff] %v87_v33 }

// kernel: stack_forward.40
= control target key start
LH: loop header
LB: loop body
LE: loop exit
PB: predicated region body
PF: predicated region fallthrough
CT: control target
= control target key end

     0   :  { %v314_v0 = vmov 0.0   ;;  %vm315_vm0 = vmmov 0   ;;  %s502_s1 = inlined_call_operand.vmem [shape: f32[128,128], index: 1, kind: input, shape index: {}]   ;;  %s503_s0 = inlined_call_operand.vmem [shape: f32[16,128], index: 0, kind: input, shape index: {}]   ;;  %s504_s3 = inlined_call_operand.vmem [shape: f32[128,128], index: 3, kind: input, shape index: {}]   ;;  %s505_s2 = inlined_call_operand.vmem [shape: f32[1,128], index: 2, kind: input, shape index: {}, may-alias: {2,4,6}]   ;;  %s506_s4 = inlined_call_operand.vmem [shape: f32[1,128], index: 4, kind: input, shape index: {}, may-alias: {2,4,6}]   ;;  %s507_s5 = inlined_call_operand.vmem [shape: f32[1,128], index: 5, kind: input, shape index: {}]   ;;  %s508_s6 = inlined_call_operand.vmem [shape: f32[1,128], index: 6, kind: input, shape index: {}, may-alias: {2,4,6}]   ;;  %s509_s7 = inlined_call_operand.vmem [shape: f32[16,128], index: 7, kind: output, shape index: {}]  }
   0x1   :  { %264 = vmatprep.subr.bf16.mxu0 %v314_v0  ;;  %v30_v1 = vld [vmem:[%s502_s1] sm:$0xff]  ;;  %v31_v2 = vld [vmem:[%s502_s1 + $0x8] sm:$0xff]  ;;  %v32_v3 = vld [vmem:[%s502_s1 + $0x10] sm:$0xff]  ;;  %280 = vmatprep.mubr.msk.bf16.mxu0 %vm315_vm0, %v314_v0 }
   0x2   :  { %v46_v4 = vpack.c.bf16 %v31_v2, %v30_v1  ;;  %v33_v5 = vld [vmem:[%s502_s1 + $0x18] sm:$0xff]  ;;  %284 = vmatprep.subr.bf16.mxu1 %v314_v0  ;;  %300 = vmatprep.mubr.msk.bf16.mxu1 %vm315_vm0, %v314_v0  ;;  %v34_v7 = vld [vmem:[%s502_s1 + $0x20] sm:$0xff]  ;;  %v35_v8 = vld [vmem:[%s502_s1 + $0x28] sm:$0xff] }
   0x3   :  { %v47_v6 = vpack.c.bf16 %v33_v5, %v32_v3  ;;  %v48_v9 = vpack.c.bf16 %v35_v8, %v34_v7  ;;  %v36_v10 = vld [vmem:[%s502_s1 + $0x30] sm:$0xff]  ;;  %v37_v11 = vld [vmem:[%s502_s1 + $0x38] sm:$0xff]  ;;  %v38_v13 = vld [vmem:[%s502_s1 + $0x40] sm:$0xff] }
   0x4   :  { %265 = vmatpush3.bf16.msra.mxu0 %v46_v4  ;;  %v49_v12 = vpack.c.bf16 %v37_v11, %v36_v10  ;;  %v39_v14 = vld [vmem:[%s502_s1 + $0x48] sm:$0xff]  ;;  %v40_v16 = vld [vmem:[%s502_s1 + $0x50] sm:$0xff]  ;;  %v41_v17 = vld [vmem:[%s502_s1 + $0x58] sm:$0xff] }
   0x5   :  { %266 = vmatprep.subr.bf16.mxu0 %v314_v0  ;;  %v50_v15 = vpack.c.bf16 %v39_v14, %v38_v13  ;;  %v51_v18 = vpack.c.bf16 %v41_v17, %v40_v16  ;;  %v42_v19 = vld [vmem:[%s502_s1 + $0x60] sm:$0xff]  ;;  %v43_v20 = vld [vmem:[%s502_s1 + $0x68] sm:$0xff]  ;;  %v44_v22 = vld [vmem:[%s502_s1 + $0x70] sm:$0xff] }
   0x6   :  { %v52_v21 = vpack.c.bf16 %v43_v20, %v42_v19  ;;  %v45_v23 = vld [vmem:[%s502_s1 + $0x78] sm:$0xff]  ;;  %v417_v25 = vld [vmem:[%s503_s0] sm:$0xff]  ;;  %v422_v26 = vld [vmem:[%s503_s0 + $0x8] sm:$0xff] }
   0x7   :  { %v53_v24 = vpack.c.bf16 %v45_v23, %v44_v22  ;;  %v29_v27 = vpack.c.bf16 %v422_v26, %v417_v25  ;;  %v121_v28 = vld [vmem:[%s504_s3] sm:$0xff]  ;;  %v122_v29 = vld [vmem:[%s504_s3 + $0x8] sm:$0xff]  ;;  %v123_v31 = vld [vmem:[%s504_s3 + $0x10] sm:$0xff] }
   0x8   :  { %267 = vmatpush3.bf16.msra.mxu0 %v47_v6  ;;  %v137_v30 = vpack.c.bf16 %v122_v29, %v121_v28  ;;  %v124_v32 = vld [vmem:[%s504_s3 + $0x18] sm:$0xff]  ;;  %v125_v34 = vld [vmem:[%s504_s3 + $0x20] sm:$0xff]  ;;  %v126_v35 = vld [vmem:[%s504_s3 + $0x28] sm:$0xff] }
   0x9   :  { %268 = vmatprep.subr.bf16.mxu0 %v314_v0  ;;  %v138_v33 = vpack.c.bf16 %v124_v32, %v123_v31  ;;  %v139_v36 = vpack.c.bf16 %v126_v35, %v125_v34  ;;  %v127_v37 = vld [vmem:[%s504_s3 + $0x30] sm:$0xff]  ;;  %v128_v38 = vld [vmem:[%s504_s3 + $0x38] sm:$0xff]  ;;  %v129_v40 = vld [vmem:[%s504_s3 + $0x40] sm:$0xff] }
   0xa   :  { %285 = vmatpush3.bf16.msra.mxu1 %v137_v30  ;;  %v140_v39 = vpack.c.bf16 %v128_v38, %v127_v37  ;;  %v130_v41 = vld [vmem:[%s504_s3 + $0x48] sm:$0xff]  ;;  %v131_v43 = vld [vmem:[%s504_s3 + $0x50] sm:$0xff]  ;;  %v132_v44 = vld [vmem:[%s504_s3 + $0x58] sm:$0xff] }
   0xb   :  { %286 = vmatprep.subr.bf16.mxu1 %v314_v0  ;;  %v141_v42 = vpack.c.bf16 %v130_v41, %v129_v40  ;;  %v142_v45 = vpack.c.bf16 %v132_v44, %v131_v43  ;;  %v133_v46 = vld [vmem:[%s504_s3 + $0x60] sm:$0xff]  ;;  %v134_v47 = vld [vmem:[%s504_s3 + $0x68] sm:$0xff]  ;;  %v135_v49 = vld [vmem:[%s504_s3 + $0x70] sm:$0xff] }
   0xc   :  { %269 = vmatpush3.bf16.msra.mxu0 %v48_v9  ;;  %v143_v48 = vpack.c.bf16 %v134_v47, %v133_v46  ;;  %v136_v50 = vld [vmem:[%s504_s3 + $0x78] sm:$0xff]  ;;  %v242_v52 = vld [vmem:[%s505_s2] ss:$0 sm:$0xff] }
   0xd   :  { %270 = vmatprep.subr.bf16.mxu0 %v314_v0  ;;  %v144_v51 = vpack.c.bf16 %v136_v50, %v135_v49  ;;  %v243_v14 = vld [vmem:[%s506_s4] ss:$0 sm:$0xff] }
   0xe   :  { %287 = vmatpush3.bf16.msra.mxu1 %v138_v33  ;;  %v244_v38 = vld [vmem:[%s507_s5] ss:$0 sm:$0xff] }
   0xf   :  { %288 = vmatprep.subr.bf16.mxu1 %v314_v0  ;;  %v245_v40 = vld [vmem:[%s508_s6] ss:$0 sm:$0xff] }
  0x10   :  { %271 = vmatpush3.bf16.msra.mxu0 %v49_v12 }
  0x11   :  { %272 = vmatprep.subr.bf16.mxu0 %v314_v0 }
  0x12   :  { %289 = vmatpush3.bf16.msra.mxu1 %v139_v36 }
  0x13   :  { %290 = vmatprep.subr.bf16.mxu1 %v314_v0 }
  0x14   :  { %273 = vmatpush3.bf16.msra.mxu0 %v50_v15 }
  0x15   :  { %274 = vmatprep.subr.bf16.mxu0 %v314_v0 }
  0x16   :  { %291 = vmatpush3.bf16.msra.mxu1 %v140_v39 }
  0x17   :  { %292 = vmatprep.subr.bf16.mxu1 %v314_v0 }
  0x18   :  { %275 = vmatpush3.bf16.msra.mxu0 %v51_v18 }
  0x19   :  { %276 = vmatprep.subr.bf16.mxu0 %v314_v0 }
  0x1a   :  { %293 = vmatpush3.bf16.msra.mxu1 %v141_v42 }
  0x1b   :  { %294 = vmatprep.subr.bf16.mxu1 %v314_v0 }
  0x1c   :  { %277 = vmatpush3.bf16.msra.mxu0 %v52_v21 }
  0x1d   :  { %278 = vmatprep.subr.bf16.mxu0 %v314_v0 }
  0x1e   :  { %295 = vmatpush3.bf16.msra.mxu1 %v142_v45 }
  0x1f   :  { %296 = vmatprep.subr.bf16.mxu1 %v314_v0 }
  0x20   :  { %279 = vmatpush3.bf16.msra.mxu0 %v53_v24 }
  0x22   :  { %297 = vmatpush3.bf16.msra.mxu1 %v143_v48 }
  0x23   :  { %281 = vmatmul.mubr.bf16.vlgmr.msra.gmra.mrb[0].mxu0 %v29_v27  ;;  %298 = vmatprep.subr.bf16.mxu1 %v314_v0 }
  0x26   :  { %299 = vmatpush3.bf16.msra.mxu1 %v144_v51 }
  0xf6   :  { %v95_v53 = vpop.f32.mrb[0].mxu0 }
  0xf7   :  { %v96_v54 = vadd.f32 %v242_v52, %v95_v53  ;;  %v282_v55 = vpop.f32.mrb[1].mxu0 }
  0xf8   :  { %v98_v56 = vpop.f32.mrb[2].mxu0 }
  0xf9   :  { %v102_v57 = vmul.f32 %v96_v54, %v96_v54  ;;  %v99_v58 = vadd.f32 %v242_v52, %v98_v56  ;;  %v283_v59 = vpop.f32.mrb[3].mxu0 }
  0xfb   :  { %v104_v60 = vmul.f32 %v102_v57, %v96_v54  ;;  %v103_v61 = vmul.f32 %v99_v58, %v99_v58 }
  0xfd   :  { %v106_v62 = vmul.f32 0.044715, %v104_v60  ;;  %v105_v63 = vmul.f32 %v103_v61, %v99_v58 }
  0xff   :  { %v108_v1 = vadd.f32 %v106_v62, %v96_v54  ;;  %v107_v2 = vmul.f32 0.044715, %v105_v63 }
 0x101   :  { %v110_v3 = vmul.f32 0.7978846, %v108_v1  ;;  %v109_v0 = vadd.f32 %v107_v2, %v99_v58 }
 0x103   :  { %306 = vtanh.f32 %v110_v3  ;;  %v111_v4 = vmul.f32 0.7978846, %v109_v0 }
 0x105   :  { %308 = vtanh.f32 %v111_v4 }
 0x10d   :  { %v307_v5 = vpop.eup %306 }
 0x10e   :  { %v114_v6 = vadd.f32 1.0, %v307_v5 }
 0x10f   :  { %v309_v7 = vpop.eup %308 }
 0x110   :  { %v115_v8 = vadd.f32 1.0, %v309_v7  ;;  %v116_v9 = vmul.f32 0.5, %v114_v6 }
 0x112   :  { %v117_v10 = vmul.f32 0.5, %v115_v8  ;;  %v118_v11 = vmul.f32 %v116_v9, %v96_v54 }
 0x114   :  { %v119_v12 = vmul.f32 %v117_v10, %v99_v58 }
 0x116   :  { %v120_v13 = vpack.c.bf16 %v119_v12, %v118_v11 }
 0x118   :  { %301 = vmatmul.mubr.bf16.vlgmr.msra.gmra.mrb[0].mxu1 %v120_v13 }
 0x1eb   :  { %v186_v15 = vpop.f32.mrb[0].mxu1 }
 0x1ec   :  { %v187_v16 = vadd.f32 %v243_v14, %v186_v15  ;;  %v302_v17 = vpop.f32.mrb[1].mxu1 }
 0x1ed   :  { %v189_v18 = vpop.f32.mrb[2].mxu1 }
 0x1ee   :  { %v190_v19 = vadd.f32 %v243_v14, %v189_v18  ;;  %v303_v20 = vpop.f32.mrb[3].mxu1  ;;  %v193_v21 = vadd.f32 %v187_v16, %v417_v25 }
 0x1f0   :  { %197 = vadd.xlane.f32.xlu0 %v193_v21  ;;  %v194_v22 = vadd.f32 %v190_v19, %v422_v26 }
 0x1f4   :  { %199 = vadd.xlane.f32.xlu0 %v194_v22 }
 0x27d   :  { %v198_v23 = vpop.xlane.xlu0 %197 }
 0x27e   :  { %v202_v24 = vmul.f32 0.0078125, %v198_v23 }
 0x280   :  { %v204_v27 = vsub.f32 %v193_v21, %v202_v24 }
 0x281   :  { %v200_v28 = vpop.xlane.xlu0 %199 }
 0x282   :  { %v203_v29 = vmul.f32 0.0078125, %v200_v28  ;;  %v206_v30 = vmul.f32 %v204_v27, %v204_v27 }
 0x284   :  { %v205_v31 = vsub.f32 %v194_v22, %v203_v29  ;;  %208 = vadd.xlane.f32.xlu1 %v206_v30 }
 0x286   :  { %v207_v32 = vmul.f32 %v205_v31, %v205_v31 }
 0x288   :  { %210 = vadd.xlane.f32.xlu1 %v207_v32 }
 0x311   :  { %v209_v33 = vpop.xlane.xlu1 %208 }
 0x312   :  { %v212_v34 = vmul.f32 0.0078125, %v209_v33 }
 0x314   :  { %v214_v35 = vadd.f32 1e-05, %v212_v34 }
 0x315   :  { %v211_v36 = vpop.xlane.xlu1 %210 }
 0x316   :  { %310 = vrsqrt.f32 %v214_v35  ;;  %v213_v25 = vmul.f32 0.0078125, %v211_v36 }
 0x318   :  { %v215_v37 = vadd.f32 1e-05, %v213_v25 }
 0x31a   :  { %312 = vrsqrt.f32 %v215_v37 }
 0x320   :  { %v311_v26 = vpop.eup %310 }
 0x321   :  { %v218_v39 = vmul.f32 %v311_v26, %v204_v27 }
 0x323   :  { %v226_v41 = vmul.f32 %v244_v38, %v218_v39 }
 0x324   :  { %v313_v42 = vpop.eup %312 }
 0x325   :  { %v234_v43 = vadd.f32 %v245_v40, %v226_v41  ;;  %v219_v44 = vmul.f32 %v313_v42, %v205_v31 }
 0x327   :  { %236 = vst [vmem:[%s509_s7] sm:$0xff] %v234_v43  ;;  %v227_v45 = vmul.f32 %v244_v38, %v219_v44 }
 0x329   :  { %v235_v46 = vadd.f32 %v245_v40, %v227_v45 }
 0x32b   :  { %237 = vst [vmem:[%s509_s7 + $0x8] sm:$0xff] %v235_v46 }

// kernel: stack_forward.49
= control target key start
LH: loop header
LB: loop body
LE: loop exit
PB: predicated region body
PF: predicated region fallthrough
CT: control target
= control target key end

     0   :  { %v168_v3 = vmov 0.0   ;;  %vm169_vm0 = vmmov 0   ;;  %s262_s0 = inlined_call_operand.vmem [shape: f32[16,128], index: 0, kind: input, shape index: {}]   ;;  %s263_s1 = inlined_call_operand.vmem [shape: f32[128,128], index: 1, kind: input, shape index: {}]   ;;  %s264_s2 = inlined_call_operand.vmem [shape: f32[1,128], index: 2, kind: input, shape index: {}]   ;;  %s265_s3 = inlined_call_operand.hbm [shape: f32[16,128], index: 3, kind: output, shape index: {}]  }
   0x1   :  { %v19_v0 = vld [vmem:[%s263_s1] sm:$0xff]  ;;  %v20_v1 = vld [vmem:[%s263_s1 + $0x8] sm:$0xff]  ;;  %v21_v2 = vld [vmem:[%s263_s1 + $0x10] sm:$0xff]  ;;  %119 = vmatprep.subr.bf16.mxu0 %v168_v3  ;;  %135 = vmatprep.mubr.msk.bf16.mxu0 %vm169_vm0, %v168_v3 }
   0x2   :  { %v35_v4 = vpack.c.bf16 %v20_v1, %v19_v0  ;;  %v22_v5 = vld [vmem:[%s263_s1 + $0x18] sm:$0xff]  ;;  %v23_v7 = vld [vmem:[%s263_s1 + $0x20] sm:$0xff]  ;;  %v24_v8 = vld [vmem:[%s263_s1 + $0x28] sm:$0xff] }
   0x3   :  { %v36_v6 = vpack.c.bf16 %v22_v5, %v21_v2 }
   0x4   :  { %120 = vmatpush3.bf16.msra.mxu0 %v35_v4 }
   0x5   :  { %121 = vmatprep.subr.bf16.mxu0 %v168_v3 }
   0x6   :  { %8 = vsyncpa [#allocation3], 0  ;;  %v37_v9 = vpack.c.bf16 %v24_v8, %v23_v7  ;;  %v25_v10 = vld [vmem:[%s263_s1 + $0x30] sm:$0xff]  ;;  %v26_v11 = vld [vmem:[%s263_s1 + $0x38] sm:$0xff]  ;;  %s170_s23 = smov [#allocation2]  }
   0x7   :  { %v38_v12 = vpack.c.bf16 %v26_v11, %v25_v10  ;;  %v27_v13 = vld [vmem:[%s263_s1 + $0x40] sm:$0xff]  ;;  %v28_v14 = vld [vmem:[%s263_s1 + $0x48] sm:$0xff]  ;;  %v29_v16 = vld [vmem:[%s263_s1 + $0x50] sm:$0xff] }
   0x8   :  { %122 = vmatpush3.bf16.msra.mxu0 %v36_v6  ;;  %v39_v15 = vpack.c.bf16 %v28_v14, %v27_v13  ;;  %v30_v17 = vld [vmem:[%s263_s1 + $0x58] sm:$0xff]  ;;  %v31_v19 = vld [vmem:[%s263_s1 + $0x60] sm:$0xff]  ;;  %v32_v20 = vld [vmem:[%s263_s1 + $0x68] sm:$0xff] }
   0x9   :  { %123 = vmatprep.subr.bf16.mxu0 %v168_v3  ;;  %v40_v18 = vpack.c.bf16 %v30_v17, %v29_v16  ;;  %v41_v21 = vpack.c.bf16 %v32_v20, %v31_v19  ;;  %v33_v22 = vld [vmem:[%s263_s1 + $0x70] sm:$0xff]  ;;  %v34_v23 = vld [vmem:[%s263_s1 + $0x78] sm:$0xff]  ;;  %v16_v25 = vld [vmem:[%s262_s0] sm:$0xff]  ;;  %s98_s1 = sshll.u32 %s170_s23, 4  ;;  %s99_s1 = int_to_ptr.vmem [resolvable:$true] %s98_s1 }
   0xa   :  { %v42_v24 = vpack.c.bf16 %v34_v23, %v33_v22  ;;  %v17_v26 = vld [vmem:[%s262_s0 + $0x8] sm:$0xff]  ;;  %v109_v28 = vld [vmem:[%s264_s2] ss:$0 sm:$0xff]  ;;  %s144_s0 = scalar_lea.vmem %s99_s1, 256  ;;  %p149_p1 = scmp.lt.s32.totalorder %s99_s1, %s99_s1 }
   0xb   :  { %v18_v27 = vpack.c.bf16 %v17_v26, %v16_v25  ;;  %p145_p0 = scmp.ne.s32.totalorder %s99_s1, %s144_s0  ;;  %p150_p2 = scmp.lt.s32.totalorder %s144_s0, %s144_s0 }
   0xc   :  { %124 = vmatpush3.bf16.msra.mxu0 %v37_v9 }
   0xd   :  { %125 = vmatprep.subr.bf16.mxu0 %v168_v3  ;;  %p151_p3 = por %p150_p2, %p149_p1 }
   0xf   :  { %p152_p4 = pnand %p151_p3, %p145_p0 }
  0x10   :  { %126 = vmatpush3.bf16.msra.mxu0 %v38_v12 }
  0x11   :  { %127 = vmatprep.subr.bf16.mxu0 %v168_v3 }
  0x14   :  { %128 = vmatpush3.bf16.msra.mxu0 %v39_v15 }
  0x15   :  { %129 = vmatprep.subr.bf16.mxu0 %v168_v3 }
  0x18   :  { %130 = vmatpush3.bf16.msra.mxu0 %v40_v18 }
  0x19   :  { %131 = vmatprep.subr.bf16.mxu0 %v168_v3 }
  0x1c   :  { %132 = vmatpush3.bf16.msra.mxu0 %v41_v21 }
  0x1d   :  { %133 = vmatprep.subr.bf16.mxu0 %v168_v3 }
  0x20   :  { %134 = vmatpush3.bf16.msra.mxu0 %v42_v24 }
  0x23   :  { %136 = vmatmul.mubr.bf16.vlgmr.msra.gmra.mrb[0].mxu0 %v18_v27 }
  0xf6   :  { %v84_v29 = vpop.f32.mrb[0].mxu0 }
  0xf7   :  { %v85_v30 = vadd.f32 %v109_v28, %v84_v29  ;;  %v137_v31 = vpop.f32.mrb[1].mxu0 }
  0xf8   :  { %v87_v32 = vpop.f32.mrb[2].mxu0 }
  0xf9   :  { %91 = vst [vmem:[#allocation2] sm:$0xff] %v85_v30  ;;  %v88_v33 = vadd.f32 %v109_v28, %v87_v32  ;;  %v138_v34 = vpop.f32.mrb[3].mxu0 }
  0xfb   :  { %92 = vst [vmem:[#allocation2 + $0x8] sm:$0xff] %v88_v33 }
  0xfc   :  { %155 = shalt.err (!%p152_p4)
}
  0xfd   :  { %s156_s25 = scalar_lea.hbm %s265_s3, 256 }
  0xfe   :  { %p157_p5 = scmp.ne.s32.totalorder %s265_s3, %s156_s25  ;;  %p160_p6 = scmp.lt.u32.totalorder %s156_s25, %s265_s3 }
 0x100   :  { %p162_p7 = pnand %p160_p6, %p157_p5 }
 0x102   :  { %165 = shalt.err (!%p162_p7)
}
 0x103   :  { %s171_s30 = smov 128   ;;  %s172_s4 = smov 8  }
 0x104   :  { %104 = dma.vmem_to_hbm [thread:$0]  %s99_s1, 256, %s265_s3, [#allocation3], %s171_s30, %s171_s30, %s172_s4  }
 0x105   :  { %166 = dma.done.wait [#allocation3], 256  }
 0x106   :  { %167 = vsyncadd [#allocation3], 4294967040 }
 0x107   :  { %108 = vsyncpa [#allocation3], 1 }

// kernel: stack_forward.38
= control target key start
LH: loop header
LB: loop body
LE: loop exit
PB: predicated region body
PF: predicated region fallthrough
CT: control target
= control target key end

     0   :  { %s887_s12 = smov 0   ;;  %s997_s0 = inlined_call_operand.vmem [shape: f32[2,8,128], index: 0, kind: input, shape index: {}]   ;;  %s998_s1 = inlined_call_operand.vmem [shape: f32[2,16,256], index: 1, kind: input, shape index: {}]   ;;  %s999_s2 = inlined_call_operand.vmem [shape: f32[2,1,16], index: 2, kind: input, shape index: {}]   ;;  %s1000_s3 = inlined_call_operand.vmem [shape: f32[2,8,128], index: 3, kind: output, shape index: {}]  }
   0x1 LB: > { %s741_s13 = sadd.s32 4294967295, %s860_s12   ;;  %p745_p0 = scmp.ge.s32.totalorder %s860_s12, 1  ;;  %s860_s12 = sphi %s887_s12, %s13_s12  }
   0x2   : > { %p154_p1 = scmp.lt.s32.totalorder %s860_s12, 3 }
   0x4   : > { %p155_p2 = pnand %p745_p0, %p154_p1 }
   0x5   : > { %p184_p3 = scmp.lt.s32.totalorder (!%p155_p2), %s741_s13, 1  ;;  %v862_v0 = vmov (!%p155_p2), 0.0   ;;  %vm863_vm0 = vmmov (!%p155_p2), 0   ;;  %vm219_vm1 = vcmask (!%p155_p2), 261120   ;;  %v214_v8 = vlaneseq (!%p155_p2)  ;;  %s864_s25 = smov (!%p155_p2), 96  }
   0x6   : > { %158 = sbr.rel (%p155_p2) target bundleno = 1477 (0x5c5), region = 32  ;;  %777 = vmatprep.subr.bf16.mxu0 (!%p155_p2), %v862_v0  ;;  %779 = vmatprep.mubr.msk.bf16.mxu0 (!%p155_p2), %vm863_vm0, %v862_v0  ;;  %vm266_vm2 = vcmask (!%p155_p2), 130048   ;;  %s865_s26 = smov (!%p155_p2), 64   ;;  %vm662_vm3 = vcmask (!%p155_p2), 523264   ;;  %vm664_vm4 = vcmask (!%p155_p2), 785408  }
   0x7   : > { %783 = vmatprep.subr.bf16.mxu1 (!%p155_p2), %v862_v0  ;;  %785 = vmatprep.mubr.msk.bf16.mxu1 (!%p155_p2), %vm863_vm0, %v862_v0  ;;  %v215_v11 = vshrl.u32 (!%p155_p2), %v214_v8, 7  ;;  %s866_s27 = smov (!%p155_p2), 32  }
   0x9   : > { %v216_v13 = vsub.s32 (!%p155_p2), 0, %v215_v11 }
   0xd   : > { %s1002_s13 = smov (!%p184_p3, %s741_s13), 1 }
   0xe   : > { %s760_s14 = sshll.u32 %s1002_s13, 5  ;;  %s746_s15 = sshll.u32 %s1002_s13, 3 }
   0xf   : > { %s908_s18 = scalar_lea.vmem %s998_s1, %s760_s14  ;;  %s187_s21 = scalar_lea.vmem %s997_s0, %s746_s15 }
  0x10   : > { %v202_v1 = vld [vmem:[%s908_s18] sm:$0xff]  ;;  %v204_v2 = vld [vmem:[%s908_s18 + $0x10] sm:$0xff]  ;;  %s195_s24 = scalar_lea.vmem %s999_s2, %s1002_s13  ;;  %v203_v26 = vld [vmem:[%s908_s18 + $0x8] sm:$0xff]  ;;  %s199_s30 = scalar_lea.vmem %s1000_s3, %s746_s15 }
  0x11   : > { %v201_v3 = vld [vmem:[%s187_s21] sm:$0xff]  ;;  %v211_v4 = vpack.c.bf16 %v204_v2, %v202_v1  ;;  %v205_v27 = vld [vmem:[%s908_s18 + $0x18] sm:$0xff] }
  0x12   : > { %v209_v6 = vmul.f32 0.17677669, %v201_v3  ;;  %v206_v9 = vld [vmem:[%s195_s24] sm:$0x1]  ;;  %v938_v28 = vpack.c.bf16 %v205_v27, %v203_v26 }
  0x13   : > { %v224_v5 = vsel %vm219_vm1, %v211_v4, 0  ;;  %v207_v10 = vsub.f32 1.0, %v206_v9  ;;  %326 = vrot.lane.b32.xlu1 %v211_v4, %s864_s25 }
  0x14   : > { %778 = vmatpush3.bf16.xpose.msra.mxu0 %v224_v5  ;;  %v210_v7 = vpack.c.bf16 %v209_v6, %v209_v6  ;;  %784 = vmatpush3.bf16.msra.mxu1 %v938_v28 }
  0x15   : > { %795 = vmatprep.subr.bf16.mxu0 %v862_v0  ;;  %v208_v12 = vmul.f32 -1e+09, %v207_v10  ;;  %789 = vmatprep.subr.bf16.mxu1 %v862_v0 }
  0x17   : > { %v926_v14 = vrot.slane %v208_v12, %v216_v13  ;;  %323 = vrot.lane.b32.xlu1 %v210_v7, %s864_s25 }
  0x1b   : > { %780 = vmatmul.mubr.msk.bf16.vlgmr.msra.gmra.mrb[0].mxu0 %vm219_vm1, %v210_v7  ;;  %433 = vrot.lane.b32.xlu1 %v210_v7, %s865_s26 }
  0x1c   : > { %797 = vmatprep.mubr.msk.bf16.mxu0 %vm863_vm0, %v862_v0 }
  0x1f   : > { %543 = vrot.lane.b32.xlu1 %v211_v4, %s866_s27 }
  0x23   : > { %541 = vrot.lane.b32.xlu1 %v210_v7, %s866_s27 }
  0x85   : > { %v327_v31 = vpop.permute.xlu1 %326 }
  0x86   : > { %v332_v33 = vsel %vm219_vm1, %v327_v31, 0 }
  0x89   : > { %v324_v35 = vpop.permute.xlu1 %323 }
  0x8d   : > { %v434_v37 = vpop.permute.xlu1 %433 }
  0x91   : > { %v544_v39 = vpop.permute.xlu1 %543 }
  0x92   : > { %v549_v40 = vsel %vm219_vm1, %v544_v39, 0 }
  0x95   : > { %v542_v41 = vpop.permute.xlu1 %541 }
  0xee   : > { %v260_v15 = vpop.f32.mrb[0].mxu0 }
  0xef   : > { %v261_v16 = vadd.f32 %v260_v15, %v926_v14  ;;  %v781_v17 = vpop.f32.mrb[1].mxu0 }
  0xf0   : > { %v263_v18 = vpop.f32.mrb[2].mxu0 }
  0xf1   : > { %v782_v19 = vpop.f32.mrb[3].mxu0  ;;  %v267_v20 = vsel %vm266_vm2, %v261_v16, -inf }
  0xf2   : > { %268 = vmax.xlane.f32.xlu0 %v267_v20 }
 0x17f   : > { %v269_v21 = vpop.xlane.xlu0 %268 }
 0x180   : > { %v270_v22 = vsub.f32 %v261_v16, %v269_v21 }
 0x182   : > { %v271_v23 = vmul.f32 1.442695, %v270_v22 }
 0x184   : > { %838 = vpow2.f32 %v271_v23 }
 0x18e   : > { %v839_v24 = vpop.eup %838 }
 0x18f   : > { %v273_v25 = vsel %vm266_vm2, %v839_v24, 0.0 }
 0x190   : > { %274 = vadd.xlane.f32.xlu0 %v273_v25 }
 0x1a6   : > { %435 = vrot.lane.b32.xlu0 %v211_v4, %s865_s26 }
 0x21d   : > { %v275_v29 = vpop.xlane.xlu0 %274 }
 0x21e   : > { %840 = vrcp.f32 %v275_v29 }
 0x221   : > { %v436_v36 = vpop.permute.xlu0 %435 }
 0x222   : > { %v441_v38 = vsel %vm219_vm1, %v436_v36, 0 }
 0x228   : > { %v841_v30 = vpop.eup %840 }
 0x229   : > { %v277_v32 = vmul.f32 %v841_v30, %v839_v24 }
 0x22b   : > { %v278_v34 = vpack.c.bf16 %v277_v32, %v277_v32 }
 0x22d   : > { %786 = vmatmul.mubr.msk.bf16.vlgmr.msra.gmra.mrb[0].mxu1 %vm266_vm2, %v278_v34 }
 0x22e   : > { %790 = vmatpush3.bf16.xpose.msra.mxu1 %v332_v33  ;;  %791 = vmatprep.mubr.msk.bf16.mxu1 %vm863_vm0, %v862_v0 }
 0x22f   : > { %801 = vmatprep.subr.bf16.mxu1 %v862_v0 }
 0x235   : > { %792 = vmatmul.mubr.msk.bf16.vlgmr.msra.gmra.mrb[4].mxu1 %vm219_vm1, %v324_v35 }
 0x236   : > { %802 = vmatpush3.bf16.xpose.msra.mxu1 %v441_v38  ;;  %803 = vmatprep.mubr.msk.bf16.mxu1 %vm863_vm0, %v862_v0 }
 0x237   : > { %813 = vmatprep.subr.bf16.mxu1 %v862_v0 }
 0x23d   : > { %804 = vmatmul.mubr.msk.bf16.vlgmr.msra.gmra.mrb[8].mxu1 %vm219_vm1, %v434_v37 }
 0x23e   : > { %814 = vmatpush3.bf16.xpose.msra.mxu1 %v549_v40  ;;  %815 = vmatprep.mubr.msk.bf16.mxu1 %vm863_vm0, %v862_v0 }
 0x245   : > { %816 = vmatmul.mubr.msk.bf16.vlgmr.msra.gmra.mrb[12].mxu1 %vm219_vm1, %v542_v41 }
 0x300   : > { %v958_v42 = vpop.f32.mrb[0].mxu1 }
 0x301   : > { %v787_v43 = vpop.f32.mrb[1].mxu1 }
 0x302   : > { %v319_v44 = vpop.f32.mrb[2].mxu1 }
 0x303   : > { %v788_v45 = vpop.f32.mrb[3].mxu1 }
 0x308   : > { %v368_v46 = vpop.f32.mrb[4].mxu1 }
 0x309   : > { %v369_v47 = vadd.f32 %v368_v46, %v926_v14  ;;  %v793_v48 = vpop.f32.mrb[5].mxu1 }
 0x30a   : > { %v371_v49 = vpop.f32.mrb[6].mxu1 }
 0x30b   : > { %v794_v50 = vpop.f32.mrb[7].mxu1  ;;  %v374_v51 = vsel %vm266_vm2, %v369_v47, -inf }
 0x30c   : > { %375 = vmax.xlane.f32.xlu1 %v374_v51 }
 0x310   : > { %v477_v52 = vpop.f32.mrb[8].mxu1 }
 0x311   : > { %v478_v53 = vadd.f32 %v477_v52, %v926_v14  ;;  %v805_v54 = vpop.f32.mrb[9].mxu1 }
 0x312   : > { %v480_v55 = vpop.f32.mrb[10].mxu1 }
 0x313   : > { %v483_v56 = vsel %vm266_vm2, %v478_v53, -inf  ;;  %v806_v57 = vpop.f32.mrb[11].mxu1 }
 0x314   : > { %484 = vmax.xlane.f32.xlu0 %v483_v56 }
 0x318   : > { %v585_v58 = vpop.f32.mrb[12].mxu1 }
 0x319   : > { %v586_v59 = vadd.f32 %v585_v58, %v926_v14  ;;  %v817_v60 = vpop.f32.mrb[13].mxu1 }
 0x31a   : > { %v588_v61 = vpop.f32.mrb[14].mxu1 }
 0x31b   : > { %v591_v62 = vsel %vm266_vm2, %v586_v59, -inf  ;;  %v818_v63 = vpop.f32.mrb[15].mxu1 }
 0x31c   : > { %592 = vmax.xlane.f32.xlu1 %v591_v62 }
 0x399   : > { %v376_v1 = vpop.xlane.xlu1 %375 }
 0x39a   : > { %v377_v2 = vsub.f32 %v369_v47, %v376_v1 }
 0x39c   : > { %v378_v3 = vmul.f32 1.442695, %v377_v2 }
 0x39e   : > { %842 = vpow2.f32 %v378_v3 }
 0x3a1   : > { %v485_v4 = vpop.xlane.xlu0 %484 }
 0x3a2   : > { %v486_v5 = vsub.f32 %v478_v53, %v485_v4 }
 0x3a4   : > { %v487_v6 = vmul.f32 1.442695, %v486_v5 }
 0x3a6   : > { %844 = vpow2.f32 %v487_v6 }
 0x3a8   : > { %v843_v7 = vpop.eup %842 }
 0x3a9   : > { %v380_v8 = vsel %vm266_vm2, %v843_v7, 0.0  ;;  %v593_v11 = vpop.xlane.xlu1 %592 }
 0x3aa   : > { %381 = vadd.xlane.f32.xlu1 %v380_v8  ;;  %v594_v12 = vsub.f32 %v586_v59, %v593_v11 }
 0x3ac   : > { %v595_v13 = vmul.f32 1.442695, %v594_v12 }
 0x3ae   : > { %846 = vpow2.f32 %v595_v13 }
 0x3b0   : > { %v845_v9 = vpop.eup %844 }
 0x3b1   : > { %v489_v10 = vsel %vm266_vm2, %v845_v9, 0.0 }
 0x3b2   : > { %490 = vadd.xlane.f32.xlu0 %v489_v10 }
 0x3b8   : > { %v847_v14 = vpop.eup %846 }
 0x3b9   : > { %v597_v15 = vsel %vm266_vm2, %v847_v14, 0.0 }
 0x3bb   : > { %495 = vrot.lane.b32.xlu1 %v938_v28, %s865_s26 }
 0x3c8   : > { %387 = vrot.lane.b32.xlu0 %v938_v28, %s864_s25 }
 0x3df   : > { %598 = vadd.xlane.f32.xlu1 %v597_v15 }
 0x3f0   : > { %603 = vrot.lane.b32.xlu1 %v938_v28, %s866_s27 }
 0x437   : > { %v382_v16 = vpop.xlane.xlu1 %381 }
 0x438   : > { %848 = vrcp.f32 %v382_v16 }
 0x43b   : > { %v496_v22 = vpop.permute.xlu1 %495 }
 0x43f   : > { %v491_v17 = vpop.xlane.xlu0 %490 }
 0x440   : > { %850 = vrcp.f32 %v491_v17 }
 0x442   : > { %v849_v18 = vpop.eup %848 }
 0x443   : > { %v384_v19 = vmul.f32 %v849_v18, %v843_v7  ;;  %v388_v20 = vpop.permute.xlu0 %387 }
 0x444   : > { %796 = vmatpush3.bf16.msra.mxu0 %v388_v20 }
 0x445   : > { %v385_v21 = vpack.c.bf16 %v384_v19, %v384_v19  ;;  %807 = vmatprep.subr.bf16.mxu0 %v862_v0 }
 0x447   : > { %798 = vmatmul.mubr.msk.bf16.vlgmr.msra.gmra.mrb[4].mxu0 %vm266_vm2, %v385_v21 }
 0x448   : > { %808 = vmatpush3.bf16.msra.mxu0 %v496_v22  ;;  %809 = vmatprep.mubr.msk.bf16.mxu0 %vm863_vm0, %v862_v0 }
 0x449   : > { %819 = vmatprep.subr.bf16.mxu0 %v862_v0 }
 0x44a   : > { %v851_v23 = vpop.eup %850 }
 0x44b   : > { %v493_v24 = vmul.f32 %v851_v23, %v845_v9 }
 0x44d   : > { %v494_v25 = vpack.c.bf16 %v493_v24, %v493_v24 }
 0x44f   : > { %810 = vmatmul.mubr.msk.bf16.vlgmr.msra.gmra.mrb[8].mxu0 %vm266_vm2, %v494_v25 }
 0x450   : > { %821 = vmatprep.mubr.msk.bf16.mxu0 %vm863_vm0, %v862_v0 }
 0x46c   : > { %v599_v26 = vpop.xlane.xlu1 %598 }
 0x46d   : > { %852 = vrcp.f32 %v599_v26 }
 0x470   : > { %v604_v27 = vpop.permute.xlu1 %603 }
 0x471   : > { %820 = vmatpush3.bf16.msra.mxu0 %v604_v27 }
 0x477   : > { %v853_v28 = vpop.eup %852 }
 0x478   : > { %v601_v29 = vmul.f32 %v853_v28, %v847_v14 }
 0x47a   : > { %v602_v30 = vpack.c.bf16 %v601_v29, %v601_v29 }
 0x47c   : > { %822 = vmatmul.mubr.msk.bf16.vlgmr.msra.gmra.mrb[12].mxu0 %vm266_vm2, %v602_v30 }
 0x51a   : > { %v427_v31 = vpop.f32.mrb[4].mxu0 }
 0x51b   : > { %650 = vrot.lane.b32.xlu0 %v427_v31, %s866_s27  ;;  %v799_v32 = vpop.f32.mrb[5].mxu0 }
 0x51c   : > { %v430_v33 = vpop.f32.mrb[6].mxu0 }
 0x51d   : > { %v800_v34 = vpop.f32.mrb[7].mxu0 }
 0x522   : > { %v535_v35 = vpop.f32.mrb[8].mxu0 }
 0x523   : > { %654 = vrot.lane.b32.xlu1 %v535_v35, %s865_s26  ;;  %v811_v0 = vpop.f32.mrb[9].mxu0 }
 0x524   : > { %v538_v36 = vpop.f32.mrb[10].mxu0 }
 0x525   : > { %v812_v37 = vpop.f32.mrb[11].mxu0 }
 0x54f   : > { %v643_v38 = vpop.f32.mrb[12].mxu0 }
 0x550   : > { %658 = vrot.lane.b32.xlu0 %v643_v38, %s864_s25  ;;  %v823_v39 = vpop.f32.mrb[13].mxu0 }
 0x551   : > { %v646_v40 = vpop.f32.mrb[14].mxu0 }
 0x552   : > { %v824_v41 = vpop.f32.mrb[15].mxu0 }
 0x58d   : > { %v651_v43 = vpop.permute.xlu0 %650 }
 0x58e   : > { %v661_v45 = vsel %vm219_vm1, %v958_v42, %v651_v43 }
 0x595   : > { %v655_v44 = vpop.permute.xlu1 %654 }
 0x596   : > { %v663_v46 = vsel %vm662_vm3, %v661_v45, %v655_v44 }
 0x5c2   : > { %v659_v47 = vpop.permute.xlu0 %658 }
 0x5c3   : > { %v665_v48 = vsel %vm664_vm4, %v663_v46, %v659_v47 }
 0x5c4   : > { %666 = vst [vmem:[%s199_s30] sm:$0xff] %v665_v48 }
 0x5c5 PF: > { %s13_s12 = sadd.s32 1, %s860_s12  }
 0x5c6   : > { %p10_p4 = scmp.ge.s32.totalorder %s13_s12, 4  }
 0x5c8   :  { %12 = sbr.rel (!%p10_p4) target bundleno = 1 (0x1), region = 68 }

</bundles_post_ra>
